<compile_context>
chip_gen: v5e
topology: v5e:2x2
jax: 0.10.0
libtpu: 0.0.40
codegen_flags: <defaults>
</compile_context>

<pallas_src>
import jax
import jax.numpy as jnp
import numpy as np
from jax import lax
from jax.experimental import pallas as pl
from jax.experimental.pallas import tpu as pltpu


def decoder_kernel(lens_ref, emb_ref, h0_ref, enc_ref, enc_t_ref, att_bias_ref,
                   w_ih_ref, w_hh_ref, b_ih_ref, b_hh_ref,
                   w_att_ref, w_mo_ref, w_mc_ref, b_mlp_ref,
                   logp_ref, hid_ref, attn_ref,
                   gx_buf, gru_buf):
    T, Bb, Hp = gru_buf.shape
    O_pad = w_mo_ref.shape[1]

    # ---- embedding ReLU (emb_drop = identity, eval) + ALL input-side gate pre-activations
    #      in one fused bf16 (T*Bb, Hp) x (Hp, 3Hp) MXU matmul ----
    emb = jnp.maximum(emb_ref[...], 0).reshape(T * Bb, Hp)                 # bf16
    gx = jnp.dot(emb, w_ih_ref[...], preferred_element_type=jnp.float32) + b_ih_ref[...]
    gx_buf[...] = gx.reshape(T, Bb, 3 * Hp)

    # ---- batched GRU recurrence: h carried as (Bb, Hp) f32 in registers; one fused
    #      (Bb,Hp)x(Hp,3Hp) recurrent matmul per step; recurrent path stays f32 ----
    w_hh = w_hh_ref[...]                                                   # hoisted (Hp, 3Hp)
    b_hh = b_hh_ref[...]                                                   # (1, 3Hp)
    lens = lens_ref[...]                                                   # (Bb, 1) int32

    def step(t, h):
        gh = jnp.dot(h, w_hh, preferred_element_type=jnp.float32) + b_hh   # (Bb, 3Hp)
        gx_t = gx_buf[t]                                                   # (Bb, 3Hp)
        r = jax.nn.sigmoid(gx_t[:, :Hp] + gh[:, :Hp])
        z = jax.nn.sigmoid(gx_t[:, Hp:2 * Hp] + gh[:, Hp:2 * Hp])
        n = jnp.tanh(gx_t[:, 2 * Hp:] + r * gh[:, 2 * Hp:])
        h_cand = (1.0 - z) * n + z * h
        valid = (lens > t).astype(jnp.float32)                             # pack/pad length mask
        out_t = valid * h_cand                                             # padded steps -> zeros
        gru_buf[pl.ds(t, 1), :, :] = out_t[None]                           # aligned (Bb,Hp) store
        return out_t + (1.0 - valid) * h                                   # last valid h persists

    h_final = lax.fori_loop(0, T, step, h0_ref[...], unroll=min(T, 8))
    hid_ref[...] = h_final

    # ---- one lane-layout-aware transpose to batch-major for the batched attention ----
    out_bt = pltpu.einshape("tbh->bth", gru_buf[...])                      # (Bb, T, Hp) f32
    out_b16 = out_bt.astype(jnp.bfloat16)

    # ---- attention: padded keys killed by the precomputed additive -1e30 bias ----
    proj = jnp.dot(out_b16.reshape(Bb * T, Hp), w_att_ref[...],
                   preferred_element_type=jnp.float32)                     # (Bb*T, Hp)
    proj_b = proj.astype(jnp.bfloat16).reshape(Bb, T, Hp)
    e = jnp.einsum('btk,bks->bts', proj_b, enc_t_ref[...],
                   preferred_element_type=jnp.float32)                     # (Bb, T, S_pad)
    e = e + att_bias_ref[...]
    e = e - jnp.max(e, axis=-1, keepdims=True)
    p = jnp.exp(e)
    attn = p * pl.reciprocal(jnp.sum(p, axis=-1, keepdims=True), approx=True)
    attn_ref[...] = attn
    ctx = jnp.einsum('bts,bsh->bth', attn.astype(jnp.bfloat16), enc_ref[...],
                     preferred_element_type=jnp.float32)                   # (Bb, T, Hp)

    # ---- output MLP split into gru-out half + ctx half (no (T,2H) concat) + log-softmax
    #      (gru_drop = identity, eval) ----
    logits = (jnp.dot(out_b16.reshape(Bb * T, Hp), w_mo_ref[...],
                      preferred_element_type=jnp.float32)
              + jnp.dot(ctx.astype(jnp.bfloat16).reshape(Bb * T, Hp), w_mc_ref[...],
                        preferred_element_type=jnp.float32)
              + b_mlp_ref[...])                                            # (Bb*T, O_pad)
    m = jnp.max(logits, axis=-1, keepdims=True)
    lse = jnp.log(jnp.sum(jnp.exp(logits - m), axis=-1, keepdims=True)) + m
    logp_ref[...] = (logits - lse).reshape(Bb, T, O_pad)


def _round_up(x, m):
    return ((x + m - 1) // m) * m


def _vmem_limit_bytes():
    # ~100 MiB on v5e/v6e (128 MiB physical), ~56 MiB on v7x (64 MiB physical).
    try:
        cap = pltpu.get_tpu_info().vmem_capacity_bytes
        return int(min(cap - 8 * 1024 * 1024, 100 * 1024 * 1024))
    except Exception:
        return 64 * 1024 * 1024


def _num_tensorcores():
    # v7x exposes 2 TensorCores to a Pallas grid (megacore); v5e/v6e have 1.
    try:
        kind = jax.devices()[0].device_kind.lower()
        return 2 if "7" in kind else 1
    except Exception:
        return 1


@jax.jit
def sentence_decoder_forward(params, input_ids, hidden, encoder_outs, input_lengths):
    """input_ids: (B,T) int, hidden: (1,B,H), encoder_outs: (B,S,H), input_lengths: (B,)."""
    f32, bf16 = jnp.float32, jnp.bfloat16
    B, T = input_ids.shape
    S, H = encoder_outs.shape[1], encoder_outs.shape[2]
    O = params['w_mlp'].shape[0]
    Hp = _round_up(H, 128)            # full-lane hidden dim
    S_pad = _round_up(S, 128)         # lane-dense attention output
    O_pad = _round_up(O, 128)         # lane-dense log-prob output
    B_pad = _round_up(B, 8)           # sublane-aligned batch

    # Batch tiling: 2 "parallel" grid programs on v7x (both TCs busy); a single full-batch
    # block on v5e/v6e so the serial recurrence runs only once.
    n_btiles = 2 if (_num_tensorcores() >= 2 and B_pad % 16 == 0) else 1
    Bb = B_pad // n_btiles

    # Embedding as a row gather (the vocab table never enters kernel VMEM); bf16 operand.
    emb = jnp.take(params['embedding'].astype(f32), input_ids.astype(jnp.int32), axis=0)
    emb = jnp.transpose(emb, (1, 0, 2)).astype(bf16)                       # (T, B, H) time-major
    emb = jnp.pad(emb, ((0, 0), (0, B_pad - B), (0, Hp - H)))

    lens = jnp.pad(input_lengths.astype(jnp.int32), (0, B_pad - B)).reshape(B_pad, 1)
    h0 = jnp.pad(hidden.astype(f32).reshape(B, H), ((0, B_pad - B), (0, Hp - H)))
    enc = jnp.pad(encoder_outs.astype(f32), ((0, B_pad - B), (0, S_pad - S), (0, Hp - H)))
    enc_b16 = enc.astype(bf16)                                             # (B_pad, S_pad, Hp)
    enc_t_b16 = jnp.transpose(enc_b16, (0, 2, 1))                          # (B_pad, Hp, S_pad)
    # Additive attention bias: 0 on real keys, -1e30 on the S -> S_pad padding.
    att_bias = jnp.where(jnp.arange(S_pad) < S, 0.0, -1e30).astype(f32).reshape(1, S_pad)

    # Gate-fused, pre-transposed GRU weights: x @ w gives [r | z | n] blocks of width Hp.
    def fuse_gates(w):                                                     # torch (3H, H)
        w3 = jnp.transpose(w.reshape(3, H, H), (0, 2, 1))                  # (3, Hin, Hout)
        w3 = jnp.pad(w3, ((0, 0), (0, Hp - H), (0, Hp - H)))
        return jnp.concatenate([w3[0], w3[1], w3[2]], axis=1)              # (Hp, 3Hp)

    def fuse_bias(b):                                                      # torch (3H,)
        return jnp.pad(b.reshape(3, H), ((0, 0), (0, Hp - H))).reshape(1, 3 * Hp)

    w_ih = fuse_gates(params['w_ih'].astype(f32)).astype(bf16)             # input side: bf16
    w_hh = fuse_gates(params['w_hh'].astype(f32))                          # recurrent side: f32
    b_ih = fuse_bias(params['b_ih'].astype(f32))
    b_hh = fuse_bias(params['b_hh'].astype(f32))
    w_att = jnp.pad(params['w_att'].astype(f32).T, ((0, Hp - H), (0, Hp - H))).astype(bf16)
    w_mlp = params['w_mlp'].astype(f32)
    w_mo = jnp.pad(w_mlp[:, :H].T, ((0, Hp - H), (0, O_pad - O))).astype(bf16)
    w_mc = jnp.pad(w_mlp[:, H:].T, ((0, Hp - H), (0, O_pad - O))).astype(bf16)
    # Padded vocab columns get a -1e30 bias so log-softmax ignores them.
    b_mlp = jnp.pad(params['b_mlp'].astype(f32), (0, O_pad - O),
                    constant_values=-1e30).reshape(1, O_pad)

    def weight_spec(shape):
        # Loop-invariant weights: single-buffered -> half the VMEM of default pipelining.
        return pl.BlockSpec(shape, lambda i: (0,) * len(shape),
                            pipeline_mode=pl.Buffered(1))

    grid_spec = pltpu.PrefetchScalarGridSpec(
        num_scalar_prefetch=0,
        grid=(n_btiles,),
        in_specs=[
            pl.BlockSpec((Bb, 1), lambda i: (i, 0)),             # lens
            pl.BlockSpec((T, Bb, Hp), lambda i: (0, i, 0)),      # emb (time-major)
            pl.BlockSpec((Bb, Hp), lambda i: (i, 0)),            # h0
            pl.BlockSpec((Bb, S_pad, Hp), lambda i: (i, 0, 0)),  # encoder outs
            pl.BlockSpec((Bb, Hp, S_pad), lambda i: (i, 0, 0)),  # encoder outs, pre-transposed
            weight_spec((1, S_pad)),                             # attention pad bias
            weight_spec((Hp, 3 * Hp)),                           # w_ih fused (bf16)
            weight_spec((Hp, 3 * Hp)),                           # w_hh fused (f32)
            weight_spec((1, 3 * Hp)),                            # b_ih
            weight_spec((1, 3 * Hp)),                            # b_hh
            weight_spec((Hp, Hp)),                               # w_att^T (bf16)
            weight_spec((Hp, O_pad)),                            # mlp weight, gru-out half
            weight_spec((Hp, O_pad)),                            # mlp weight, ctx half
            weight_spec((1, O_pad)),                             # mlp bias (-1e30 on padding)
        ],
        out_specs=(
            pl.BlockSpec((Bb, T, O_pad), lambda i: (i, 0, 0)),   # log-probs (lane-dense)
            pl.BlockSpec((Bb, Hp), lambda i: (i, 0)),            # final hidden
            pl.BlockSpec((Bb, T, S_pad), lambda i: (i, 0, 0)),   # attention (lane-dense)
        ),
        scratch_shapes=[
            pltpu.VMEM((T, Bb, 3 * Hp), jnp.float32),            # fused input-gate preacts
            pltpu.VMEM((T, Bb, Hp), jnp.float32),                # GRU outputs (time-major)
        ],
    )

    out_shapes = (
        jax.ShapeDtypeStruct((B_pad, T, O_pad), jnp.float32),
        jax.ShapeDtypeStruct((B_pad, Hp), jnp.float32),
        jax.ShapeDtypeStruct((B_pad, T, S_pad), jnp.float32),
    )

    logp_pad, hid_pad, attn_pad = pl.pallas_call(
        decoder_kernel,
        grid_spec=grid_spec,
        out_shape=out_shapes,
        compiler_params=pltpu.CompilerParams(
            dimension_semantics=("parallel",),
            vmem_limit_bytes=_vmem_limit_bytes(),
        ),
    )(lens, emb, h0, enc_b16, enc_t_b16, att_bias,
      w_ih, w_hh, b_ih, b_hh, w_att, w_mo, w_mc, b_mlp)

    return (logp_pad[:B, :, :O],
            hid_pad[:B, :H].reshape(1, B, H),
            attn_pad[:B, :, :S])


def reference_forward(params, input_ids, hidden, encoder_outs, input_lengths):
    """Pure-JAX reference mirroring the PyTorch forward (eval mode, f32 HIGHEST)."""
    B, T = input_ids.shape
    H = params['w_att'].shape[0]
    hp = lax.Precision.HIGHEST
    emb = jnp.maximum(params['embedding'][input_ids], 0.0)                 # (B,T,H)
    w_ih, w_hh = params['w_ih'], params['w_hh']
    b_ih, b_hh = params['b_ih'], params['b_hh']

    def step(h, xs):
        x_t, t = xs
        gx = jnp.dot(x_t, w_ih.T, precision=hp) + b_ih
        gh = jnp.dot(h, w_hh.T, precision=hp) + b_hh
        r = jax.nn.sigmoid(gx[:, :H] + gh[:, :H])
        z = jax.nn.sigmoid(gx[:, H:2 * H] + gh[:, H:2 * H])
        n = jnp.tanh(gx[:, 2 * H:] + r * gh[:, 2 * H:])
        h_cand = (1.0 - z) * n + z * h
        valid = (input_lengths > t)[:, None]
        return jnp.where(valid, h_cand, h), jnp.where(valid, h_cand, 0.0)

    h_last, outs = lax.scan(step, hidden.reshape(B, H),
                            (jnp.transpose(emb, (1, 0, 2)), jnp.arange(T)))
    out = jnp.transpose(outs, (1, 0, 2))                                   # (B,T,H)
    proj = jnp.einsum('bth,kh->btk', out, params['w_att'], precision=hp)
    e = jnp.einsum('bth,bsh->bts', proj, encoder_outs, precision=hp)
    attn = jax.nn.softmax(e, axis=-1)
    ctx = jnp.einsum('bts,bsh->bth', attn, encoder_outs, precision=hp)
    full = jnp.concatenate([out, ctx], axis=-1)
    logits = jnp.einsum('btf,of->bto', full, params['w_mlp'], precision=hp) + params['b_mlp']
    logp = jax.nn.log_softmax(logits, axis=-1)
    return logp, h_last.reshape(1, B, H), attn


if __name__ == "__main__":
    B, T, S, H, V, O = 2, 8, 6, 32, 50, 40

    key = jax.random.PRNGKey(0)
    ks = jax.random.split(key, 12)
    params = {
        'embedding': 0.1 * jax.random.normal(ks[0], (V, H), jnp.float32),
        'w_ih':      0.1 * jax.random.normal(ks[1], (3 * H, H), jnp.float32),
        'w_hh':      0.1 * jax.random.normal(ks[2], (3 * H, H), jnp.float32),
        'b_ih':      0.1 * jax.random.normal(ks[3], (3 * H,), jnp.float32),
        'b_hh':      0.1 * jax.random.normal(ks[4], (3 * H,), jnp.float32),
        'w_att':     0.1 * jax.random.normal(ks[5], (H, H), jnp.float32),
        'w_mlp':     0.1 * jax.random.normal(ks[6], (O, 2 * H), jnp.float32),
        'b_mlp':     0.1 * jax.random.normal(ks[7], (O,), jnp.float32),
    }

    input_ids = jax.random.randint(ks[8], (B, T), 0, V, dtype=jnp.int32)
    input_lengths = jnp.array([T, 5], dtype=jnp.int32)
    hidden = jax.random.normal(ks[9], (1, B, H), jnp.float32)
    encoder_outs = jax.random.normal(ks[10], (B, S, H), jnp.float32)

    logp, hid, attn = sentence_decoder_forward(params, input_ids, hidden,
                                               encoder_outs, input_lengths)
    jax.block_until_ready((logp, hid, attn))

    r_logp, r_hid, r_attn = reference_forward(params, input_ids, hidden,
                                              encoder_outs, input_lengths)
    # bf16 MXU operands (f32 accumulation / f32 recurrence) -> ~1e-2-level agreement.
    np.testing.assert_allclose(np.asarray(logp), np.asarray(r_logp), rtol=2e-2, atol=2e-2)
    np.testing.assert_allclose(np.asarray(hid), np.asarray(r_hid), rtol=2e-2, atol=2e-2)
    np.testing.assert_allclose(np.asarray(attn), np.asarray(r_attn), rtol=2e-2, atol=2e-2)

    print("KERNEL_OK")
</pallas_src>

<mosaic_0001>
module attributes {stable_mosaic.version = 11 : i64} {
  func.func @decoder_kernel(%arg0: i32, %arg1: memref<8x1xi32, #tpu.memory_space<vmem>>, %arg2: memref<8x8x128xbf16, #tpu.memory_space<vmem>>, %arg3: memref<8x128xf32, #tpu.memory_space<vmem>>, %arg4: memref<8x128x128xbf16, #tpu.memory_space<vmem>>, %arg5: memref<8x128x128xbf16, #tpu.memory_space<vmem>>, %arg6: memref<1x128xf32, #tpu.memory_space<vmem>>, %arg7: memref<128x384xbf16, #tpu.memory_space<vmem>>, %arg8: memref<128x384xf32, #tpu.memory_space<vmem>>, %arg9: memref<1x384xf32, #tpu.memory_space<vmem>>, %arg10: memref<1x384xf32, #tpu.memory_space<vmem>>, %arg11: memref<128x128xbf16, #tpu.memory_space<vmem>>, %arg12: memref<128x128xbf16, #tpu.memory_space<vmem>>, %arg13: memref<128x128xbf16, #tpu.memory_space<vmem>>, %arg14: memref<1x128xf32, #tpu.memory_space<vmem>>, %arg15: memref<8x8x128xf32, #tpu.memory_space<vmem>>, %arg16: memref<8x128xf32, #tpu.memory_space<vmem>>, %arg17: memref<8x8x128xf32, #tpu.memory_space<vmem>>, %arg18: memref<8x8x384xf32, #tpu.memory_space<vmem>>, %arg19: memref<8x8x128xf32, #tpu.memory_space<vmem>>) attributes {dimension_semantics = [#tpu.dimension_semantics<parallel>], iteration_bounds = array<i64: 1>, scalar_prefetch = 0 : i64, scratch_operands = 2 : i64, tpu.core_type = #tpu.core_type<tc>, window_params = [{transform_indices = @transform_0, window_bounds = array<i64: 8, 1>}, {transform_indices = @transform_1, window_bounds = array<i64: 8, 8, 128>}, {transform_indices = @transform_2, window_bounds = array<i64: 8, 128>}, {transform_indices = @transform_3, window_bounds = array<i64: 8, 128, 128>}, {transform_indices = @transform_4, window_bounds = array<i64: 8, 128, 128>}, {pipeline_mode = #tpu.pipeline_mode<synchronous>, transform_indices = @transform_5, window_bounds = array<i64: 1, 128>}, {pipeline_mode = #tpu.pipeline_mode<synchronous>, transform_indices = @transform_6, window_bounds = array<i64: 128, 384>}, {pipeline_mode = #tpu.pipeline_mode<synchronous>, transform_indices = @transform_7, window_bounds = array<i64: 128, 384>}, {pipeline_mode = #tpu.pipeline_mode<synchronous>, transform_indices = @transform_8, window_bounds = array<i64: 1, 384>}, {pipeline_mode = #tpu.pipeline_mode<synchronous>, transform_indices = @transform_9, window_bounds = array<i64: 1, 384>}, {pipeline_mode = #tpu.pipeline_mode<synchronous>, transform_indices = @transform_10, window_bounds = array<i64: 128, 128>}, {pipeline_mode = #tpu.pipeline_mode<synchronous>, transform_indices = @transform_11, window_bounds = array<i64: 128, 128>}, {pipeline_mode = #tpu.pipeline_mode<synchronous>, transform_indices = @transform_12, window_bounds = array<i64: 128, 128>}, {pipeline_mode = #tpu.pipeline_mode<synchronous>, transform_indices = @transform_13, window_bounds = array<i64: 1, 128>}, {transform_indices = @transform_14, window_bounds = array<i64: 8, 8, 128>}, {transform_indices = @transform_15, window_bounds = array<i64: 8, 128>}, {transform_indices = @transform_16, window_bounds = array<i64: 8, 8, 128>}]} {
    %c0 = arith.constant 0 : index
    %c0_0 = arith.constant 0 : index
    %c0_1 = arith.constant 0 : index
    %0 = vector.load %arg2[%c0, %c0_0, %c0_1] : memref<8x8x128xbf16, #tpu.memory_space<vmem>>, vector<8x8x128xbf16>
    %cst = arith.constant 0.000000e+00 : bf16
    %1 = vector.broadcast %cst : bf16 to vector<8x8x128xbf16>
    %2 = arith.maximumf %0, %1 : vector<8x8x128xbf16>
    %3 = vector.shape_cast %2 : vector<8x8x128xbf16> to vector<64x128xbf16>
    %c0_2 = arith.constant 0 : index
    %c0_3 = arith.constant 0 : index
    %4 = vector.load %arg7[%c0_2, %c0_3] : memref<128x384xbf16, #tpu.memory_space<vmem>>, vector<128x384xbf16>
    %cst_4 = arith.constant dense<0.000000e+00> : vector<64x384xf32>
    %5 = tpu.matmul %3, %4, %cst_4 {dimension_numbers = #tpu.dot_dimension_numbers<[1], [0], [0], [1], [0, 0, 1, 1], [], []>} : vector<64x128xbf16>, vector<128x384xbf16>, vector<64x384xf32> -> vector<64x384xf32>
    %c0_5 = arith.constant 0 : index
    %c0_6 = arith.constant 0 : index
    %6 = vector.load %arg9[%c0_5, %c0_6] : memref<1x384xf32, #tpu.memory_space<vmem>>, vector<1x384xf32>
    %7 = vector.broadcast %6 : vector<1x384xf32> to vector<64x384xf32>
    %8 = arith.addf %5, %7 : vector<64x384xf32>
    %9 = vector.shape_cast %8 : vector<64x384xf32> to vector<8x8x384xf32>
    %c0_7 = arith.constant 0 : index
    %c0_8 = arith.constant 0 : index
    %c0_9 = arith.constant 0 : index
    %10 = vector.load %arg18[%c0_7, %c0_8, %c0_9] : memref<8x8x384xf32, #tpu.memory_space<vmem>>, vector<8x8x384xf32>
    tpu.vector_store %arg18[%c0_7, %c0_8, %c0_9], %9 {strides = array<i32>} : memref<8x8x384xf32, #tpu.memory_space<vmem>>, vector<8x8x384xf32>,
    %c0_10 = arith.constant 0 : index
    %c0_11 = arith.constant 0 : index
    %11 = vector.load %arg8[%c0_10, %c0_11] : memref<128x384xf32, #tpu.memory_space<vmem>>, vector<128x384xf32>
    %c0_12 = arith.constant 0 : index
    %c0_13 = arith.constant 0 : index
    %12 = vector.load %arg10[%c0_12, %c0_13] : memref<1x384xf32, #tpu.memory_space<vmem>>, vector<1x384xf32>
    %c0_14 = arith.constant 0 : index
    %c0_15 = arith.constant 0 : index
    %13 = vector.load %arg1[%c0_14, %c0_15] : memref<8x1xi32, #tpu.memory_space<vmem>>, vector<8x1xi32>
    %c0_16 = arith.constant 0 : index
    %c0_17 = arith.constant 0 : index
    %14 = vector.load %arg3[%c0_16, %c0_17] : memref<8x128xf32, #tpu.memory_space<vmem>>, vector<8x128xf32>
    %c0_i32 = arith.constant 0 : i32
    %cst_18 = arith.constant dense<0.000000e+00> : vector<8x384xf32>
    %15 = tpu.matmul %14, %11, %cst_18 {dimension_numbers = #tpu.dot_dimension_numbers<[1], [0], [0], [1], [0, 0, 1, 1], [], []>} : vector<8x128xf32>, vector<128x384xf32>, vector<8x384xf32> -> vector<8x384xf32>
    %16 = vector.broadcast %12 : vector<1x384xf32> to vector<8x384xf32>
    %17 = arith.addf %15, %16 : vector<8x384xf32>
    %18 = arith.index_cast %c0_i32 : i32 to index
    %c0_19 = arith.constant 0 : index
    %c0_20 = arith.constant 0 : index
    %19 = vector.load %arg18[%18, %c0_19, %c0_20] : memref<8x8x384xf32, #tpu.memory_space<vmem>>, vector<1x8x384xf32>
    %20 = vector.shape_cast %19 : vector<1x8x384xf32> to vector<8x384xf32>
    %21 = vector.extract_strided_slice %20 {offsets = [0, 0], sizes = [8, 128], strides = [1, 1]} : vector<8x384xf32> to vector<8x128xf32>
    %22 = vector.extract_strided_slice %17 {offsets = [0, 0], sizes = [8, 128], strides = [1, 1]} : vector<8x384xf32> to vector<8x128xf32>
    %23 = arith.addf %21, %22 : vector<8x128xf32>
    %24 = arith.negf %23 : vector<8x128xf32>
    %25 = math.exp %24 : vector<8x128xf32>
    %cst_21 = arith.constant 1.000000e+00 : f32
    %26 = vector.broadcast %cst_21 : f32 to vector<8x128xf32>
    %27 = arith.addf %26, %25 : vector<8x128xf32>
    %28 = arith.divf %26, %27 : vector<8x128xf32>
    %29 = vector.extract_strided_slice %20 {offsets = [0, 128], sizes = [8, 128], strides = [1, 1]} : vector<8x384xf32> to vector<8x128xf32>
    %30 = vector.extract_strided_slice %17 {offsets = [0, 128], sizes = [8, 128], strides = [1, 1]} : vector<8x384xf32> to vector<8x128xf32>
    %31 = arith.addf %29, %30 : vector<8x128xf32>
    %32 = arith.negf %31 : vector<8x128xf32>
    %33 = math.exp %32 : vector<8x128xf32>
    %cst_22 = arith.constant 1.000000e+00 : f32
    %34 = vector.broadcast %cst_22 : f32 to vector<8x128xf32>
    %35 = arith.addf %34, %33 : vector<8x128xf32>
    %36 = arith.divf %34, %35 : vector<8x128xf32>
    %37 = vector.extract_strided_slice %20 {offsets = [0, 256], sizes = [8, 128], strides = [1, 1]} : vector<8x384xf32> to vector<8x128xf32>
    %38 = vector.extract_strided_slice %17 {offsets = [0, 256], sizes = [8, 128], strides = [1, 1]} : vector<8x384xf32> to vector<8x128xf32>
    %39 = arith.mulf %28, %38 : vector<8x128xf32>
    %40 = arith.addf %37, %39 : vector<8x128xf32>
    %41 = math.tanh %40 : vector<8x128xf32>
    %cst_23 = arith.constant 1.000000e+00 : f32
    %42 = vector.broadcast %cst_23 : f32 to vector<8x128xf32>
    %43 = arith.subf %42, %36 : vector<8x128xf32>
    %44 = arith.mulf %43, %41 : vector<8x128xf32>
    %45 = arith.mulf %36, %14 : vector<8x128xf32>
    %46 = arith.addf %44, %45 : vector<8x128xf32>
    %47 = vector.broadcast %c0_i32 : i32 to vector<8x1xi32>
    %48 = arith.cmpi sgt, %13, %47 : vector<8x1xi32>
    %49 = arith.extui %48 : vector<8x1xi1> to vector<8x1xi32>
    %50 = arith.sitofp %49 : vector<8x1xi32> to vector<8x1xf32>
    %51 = vector.broadcast %50 : vector<8x1xf32> to vector<8x128xf32>
    %52 = arith.mulf %51, %46 : vector<8x128xf32>
    %53 = vector.shape_cast %52 : vector<8x128xf32> to vector<1x8x128xf32>
    %54 = arith.index_cast %c0_i32 : i32 to index
    %c0_24 = arith.constant 0 : index
    %c0_25 = arith.constant 0 : index
    %55 = vector.load %arg19[%54, %c0_24, %c0_25] : memref<8x8x128xf32, #tpu.memory_space<vmem>>, vector<1x8x128xf32>
    tpu.vector_store %arg19[%54, %c0_24, %c0_25], %53 {strides = array<i32>} : memref<8x8x128xf32, #tpu.memory_space<vmem>>, vector<1x8x128xf32>,
    %cst_26 = arith.constant 1.000000e+00 : f32
    %56 = vector.broadcast %cst_26 : f32 to vector<8x1xf32>
    %57 = arith.subf %56, %50 : vector<8x1xf32>
    %58 = vector.broadcast %57 : vector<8x1xf32> to vector<8x128xf32>
    %59 = arith.mulf %58, %14 : vector<8x128xf32>
    %60 = arith.addf %52, %59 : vector<8x128xf32>
    %c1_i32 = arith.constant 1 : i32
    %cst_27 = arith.constant dense<0.000000e+00> : vector<8x384xf32>
    %61 = tpu.matmul %60, %11, %cst_27 {dimension_numbers = #tpu.dot_dimension_numbers<[1], [0], [0], [1], [0, 0, 1, 1], [], []>} : vector<8x128xf32>, vector<128x384xf32>, vector<8x384xf32> -> vector<8x384xf32>
    %62 = vector.broadcast %12 : vector<1x384xf32> to vector<8x384xf32>
    %63 = arith.addf %61, %62 : vector<8x384xf32>
    %64 = arith.index_cast %c1_i32 : i32 to index
    %c0_28 = arith.constant 0 : index
    %c0_29 = arith.constant 0 : index
    %65 = vector.load %arg18[%64, %c0_28, %c0_29] : memref<8x8x384xf32, #tpu.memory_space<vmem>>, vector<1x8x384xf32>
    %66 = vector.shape_cast %65 : vector<1x8x384xf32> to vector<8x384xf32>
    %67 = vector.extract_strided_slice %66 {offsets = [0, 0], sizes = [8, 128], strides = [1, 1]} : vector<8x384xf32> to vector<8x128xf32>
    %68 = vector.extract_strided_slice %63 {offsets = [0, 0], sizes = [8, 128], strides = [1, 1]} : vector<8x384xf32> to vector<8x128xf32>
    %69 = arith.addf %67, %68 : vector<8x128xf32>
    %70 = arith.negf %69 : vector<8x128xf32>
    %71 = math.exp %70 : vector<8x128xf32>
    %cst_30 = arith.constant 1.000000e+00 : f32
    %72 = vector.broadcast %cst_30 : f32 to vector<8x128xf32>
    %73 = arith.addf %72, %71 : vector<8x128xf32>
    %74 = arith.divf %72, %73 : vector<8x128xf32>
    %75 = vector.extract_strided_slice %66 {offsets = [0, 128], sizes = [8, 128], strides = [1, 1]} : vector<8x384xf32> to vector<8x128xf32>
    %76 = vector.extract_strided_slice %63 {offsets = [0, 128], sizes = [8, 128], strides = [1, 1]} : vector<8x384xf32> to vector<8x128xf32>
    %77 = arith.addf %75, %76 : vector<8x128xf32>
    %78 = arith.negf %77 : vector<8x128xf32>
    %79 = math.exp %78 : vector<8x128xf32>
    %cst_31 = arith.constant 1.000000e+00 : f32
    %80 = vector.broadcast %cst_31 : f32 to vector<8x128xf32>
    %81 = arith.addf %80, %79 : vector<8x128xf32>
    %82 = arith.divf %80, %81 : vector<8x128xf32>
    %83 = vector.extract_strided_slice %66 {offsets = [0, 256], sizes = [8, 128], strides = [1, 1]} : vector<8x384xf32> to vector<8x128xf32>
    %84 = vector.extract_strided_slice %63 {offsets = [0, 256], sizes = [8, 128], strides = [1, 1]} : vector<8x384xf32> to vector<8x128xf32>
    %85 = arith.mulf %74, %84 : vector<8x128xf32>
    %86 = arith.addf %83, %85 : vector<8x128xf32>
    %87 = math.tanh %86 : vector<8x128xf32>
    %cst_32 = arith.constant 1.000000e+00 : f32
    %88 = vector.broadcast %cst_32 : f32 to vector<8x128xf32>
    %89 = arith.subf %88, %82 : vector<8x128xf32>
    %90 = arith.mulf %89, %87 : vector<8x128xf32>
    %91 = arith.mulf %82, %60 : vector<8x128xf32>
    %92 = arith.addf %90, %91 : vector<8x128xf32>
    %93 = vector.broadcast %c1_i32 : i32 to vector<8x1xi32>
    %94 = arith.cmpi sgt, %13, %93 : vector<8x1xi32>
    %95 = arith.extui %94 : vector<8x1xi1> to vector<8x1xi32>
    %96 = arith.sitofp %95 : vector<8x1xi32> to vector<8x1xf32>
    %97 = vector.broadcast %96 : vector<8x1xf32> to vector<8x128xf32>
    %98 = arith.mulf %97, %92 : vector<8x128xf32>
    %99 = vector.shape_cast %98 : vector<8x128xf32> to vector<1x8x128xf32>
    %100 = arith.index_cast %c1_i32 : i32 to index
    %c0_33 = arith.constant 0 : index
    %c0_34 = arith.constant 0 : index
    %101 = vector.load %arg19[%100, %c0_33, %c0_34] : memref<8x8x128xf32, #tpu.memory_space<vmem>>, vector<1x8x128xf32>
    tpu.vector_store %arg19[%100, %c0_33, %c0_34], %99 {strides = array<i32>} : memref<8x8x128xf32, #tpu.memory_space<vmem>>, vector<1x8x128xf32>,
    %cst_35 = arith.constant 1.000000e+00 : f32
    %102 = vector.broadcast %cst_35 : f32 to vector<8x1xf32>
    %103 = arith.subf %102, %96 : vector<8x1xf32>
    %104 = vector.broadcast %103 : vector<8x1xf32> to vector<8x128xf32>
    %105 = arith.mulf %104, %60 : vector<8x128xf32>
    %106 = arith.addf %98, %105 : vector<8x128xf32>
    %c2_i32 = arith.constant 2 : i32
    %cst_36 = arith.constant dense<0.000000e+00> : vector<8x384xf32>
    %107 = tpu.matmul %106, %11, %cst_36 {dimension_numbers = #tpu.dot_dimension_numbers<[1], [0], [0], [1], [0, 0, 1, 1], [], []>} : vector<8x128xf32>, vector<128x384xf32>, vector<8x384xf32> -> vector<8x384xf32>
    %108 = vector.broadcast %12 : vector<1x384xf32> to vector<8x384xf32>
    %109 = arith.addf %107, %108 : vector<8x384xf32>
    %110 = arith.index_cast %c2_i32 : i32 to index
    %c0_37 = arith.constant 0 : index
    %c0_38 = arith.constant 0 : index
    %111 = vector.load %arg18[%110, %c0_37, %c0_38] : memref<8x8x384xf32, #tpu.memory_space<vmem>>, vector<1x8x384xf32>
    %112 = vector.shape_cast %111 : vector<1x8x384xf32> to vector<8x384xf32>
    %113 = vector.extract_strided_slice %112 {offsets = [0, 0], sizes = [8, 128], strides = [1, 1]} : vector<8x384xf32> to vector<8x128xf32>
    %114 = vector.extract_strided_slice %109 {offsets = [0, 0], sizes = [8, 128], strides = [1, 1]} : vector<8x384xf32> to vector<8x128xf32>
    %115 = arith.addf %113, %114 : vector<8x128xf32>
    %116 = arith.negf %115 : vector<8x128xf32>
    %117 = math.exp %116 : vector<8x128xf32>
    %cst_39 = arith.constant 1.000000e+00 : f32
    %118 = vector.broadcast %cst_39 : f32 to vector<8x128xf32>
    %119 = arith.addf %118, %117 : vector<8x128xf32>
    %120 = arith.divf %118, %119 : vector<8x128xf32>
    %121 = vector.extract_strided_slice %112 {offsets = [0, 128], sizes = [8, 128], strides = [1, 1]} : vector<8x384xf32> to vector<8x128xf32>
    %122 = vector.extract_strided_slice %109 {offsets = [0, 128], sizes = [8, 128], strides = [1, 1]} : vector<8x384xf32> to vector<8x128xf32>
    %123 = arith.addf %121, %122 : vector<8x128xf32>
    %124 = arith.negf %123 : vector<8x128xf32>
    %125 = math.exp %124 : vector<8x128xf32>
    %cst_40 = arith.constant 1.000000e+00 : f32
    %126 = vector.broadcast %cst_40 : f32 to vector<8x128xf32>
    %127 = arith.addf %126, %125 : vector<8x128xf32>
    %128 = arith.divf %126, %127 : vector<8x128xf32>
    %129 = vector.extract_strided_slice %112 {offsets = [0, 256], sizes = [8, 128], strides = [1, 1]} : vector<8x384xf32> to vector<8x128xf32>
    %130 = vector.extract_strided_slice %109 {offsets = [0, 256], sizes = [8, 128], strides = [1, 1]} : vector<8x384xf32> to vector<8x128xf32>
    %131 = arith.mulf %120, %130 : vector<8x128xf32>
    %132 = arith.addf %129, %131 : vector<8x128xf32>
    %133 = math.tanh %132 : vector<8x128xf32>
    %cst_41 = arith.constant 1.000000e+00 : f32
    %134 = vector.broadcast %cst_41 : f32 to vector<8x128xf32>
    %135 = arith.subf %134, %128 : vector<8x128xf32>
    %136 = arith.mulf %135, %133 : vector<8x128xf32>
    %137 = arith.mulf %128, %106 : vector<8x128xf32>
    %138 = arith.addf %136, %137 : vector<8x128xf32>
    %139 = vector.broadcast %c2_i32 : i32 to vector<8x1xi32>
    %140 = arith.cmpi sgt, %13, %139 : vector<8x1xi32>
    %141 = arith.extui %140 : vector<8x1xi1> to vector<8x1xi32>
    %142 = arith.sitofp %141 : vector<8x1xi32> to vector<8x1xf32>
    %143 = vector.broadcast %142 : vector<8x1xf32> to vector<8x128xf32>
    %144 = arith.mulf %143, %138 : vector<8x128xf32>
    %145 = vector.shape_cast %144 : vector<8x128xf32> to vector<1x8x128xf32>
    %146 = arith.index_cast %c2_i32 : i32 to index
    %c0_42 = arith.constant 0 : index
    %c0_43 = arith.constant 0 : index
    %147 = vector.load %arg19[%146, %c0_42, %c0_43] : memref<8x8x128xf32, #tpu.memory_space<vmem>>, vector<1x8x128xf32>
    tpu.vector_store %arg19[%146, %c0_42, %c0_43], %145 {strides = array<i32>} : memref<8x8x128xf32, #tpu.memory_space<vmem>>, vector<1x8x128xf32>,
    %cst_44 = arith.constant 1.000000e+00 : f32
    %148 = vector.broadcast %cst_44 : f32 to vector<8x1xf32>
    %149 = arith.subf %148, %142 : vector<8x1xf32>
    %150 = vector.broadcast %149 : vector<8x1xf32> to vector<8x128xf32>
    %151 = arith.mulf %150, %106 : vector<8x128xf32>
    %152 = arith.addf %144, %151 : vector<8x128xf32>
    %c3_i32 = arith.constant 3 : i32
    %cst_45 = arith.constant dense<0.000000e+00> : vector<8x384xf32>
    %153 = tpu.matmul %152, %11, %cst_45 {dimension_numbers = #tpu.dot_dimension_numbers<[1], [0], [0], [1], [0, 0, 1, 1], [], []>} : vector<8x128xf32>, vector<128x384xf32>, vector<8x384xf32> -> vector<8x384xf32>
    %154 = vector.broadcast %12 : vector<1x384xf32> to vector<8x384xf32>
    %155 = arith.addf %153, %154 : vector<8x384xf32>
    %156 = arith.index_cast %c3_i32 : i32 to index
    %c0_46 = arith.constant 0 : index
    %c0_47 = arith.constant 0 : index
    %157 = vector.load %arg18[%156, %c0_46, %c0_47] : memref<8x8x384xf32, #tpu.memory_space<vmem>>, vector<1x8x384xf32>
    %158 = vector.shape_cast %157 : vector<1x8x384xf32> to vector<8x384xf32>
    %159 = vector.extract_strided_slice %158 {offsets = [0, 0], sizes = [8, 128], strides = [1, 1]} : vector<8x384xf32> to vector<8x128xf32>
    %160 = vector.extract_strided_slice %155 {offsets = [0, 0], sizes = [8, 128], strides = [1, 1]} : vector<8x384xf32> to vector<8x128xf32>
    %161 = arith.addf %159, %160 : vector<8x128xf32>
    %162 = arith.negf %161 : vector<8x128xf32>
    %163 = math.exp %162 : vector<8x128xf32>
    %cst_48 = arith.constant 1.000000e+00 : f32
    %164 = vector.broadcast %cst_48 : f32 to vector<8x128xf32>
    %165 = arith.addf %164, %163 : vector<8x128xf32>
    %166 = arith.divf %164, %165 : vector<8x128xf32>
    %167 = vector.extract_strided_slice %158 {offsets = [0, 128], sizes = [8, 128], strides = [1, 1]} : vector<8x384xf32> to vector<8x128xf32>
    %168 = vector.extract_strided_slice %155 {offsets = [0, 128], sizes = [8, 128], strides = [1, 1]} : vector<8x384xf32> to vector<8x128xf32>
    %169 = arith.addf %167, %168 : vector<8x128xf32>
    %170 = arith.negf %169 : vector<8x128xf32>
    %171 = math.exp %170 : vector<8x128xf32>
    %cst_49 = arith.constant 1.000000e+00 : f32
    %172 = vector.broadcast %cst_49 : f32 to vector<8x128xf32>
    %173 = arith.addf %172, %171 : vector<8x128xf32>
    %174 = arith.divf %172, %173 : vector<8x128xf32>
    %175 = vector.extract_strided_slice %158 {offsets = [0, 256], sizes = [8, 128], strides = [1, 1]} : vector<8x384xf32> to vector<8x128xf32>
    %176 = vector.extract_strided_slice %155 {offsets = [0, 256], sizes = [8, 128], strides = [1, 1]} : vector<8x384xf32> to vector<8x128xf32>
    %177 = arith.mulf %166, %176 : vector<8x128xf32>
    %178 = arith.addf %175, %177 : vector<8x128xf32>
    %179 = math.tanh %178 : vector<8x128xf32>
    %cst_50 = arith.constant 1.000000e+00 : f32
    %180 = vector.broadcast %cst_50 : f32 to vector<8x128xf32>
    %181 = arith.subf %180, %174 : vector<8x128xf32>
    %182 = arith.mulf %181, %179 : vector<8x128xf32>
    %183 = arith.mulf %174, %152 : vector<8x128xf32>
    %184 = arith.addf %182, %183 : vector<8x128xf32>
    %185 = vector.broadcast %c3_i32 : i32 to vector<8x1xi32>
    %186 = arith.cmpi sgt, %13, %185 : vector<8x1xi32>
    %187 = arith.extui %186 : vector<8x1xi1> to vector<8x1xi32>
    %188 = arith.sitofp %187 : vector<8x1xi32> to vector<8x1xf32>
    %189 = vector.broadcast %188 : vector<8x1xf32> to vector<8x128xf32>
    %190 = arith.mulf %189, %184 : vector<8x128xf32>
    %191 = vector.shape_cast %190 : vector<8x128xf32> to vector<1x8x128xf32>
    %192 = arith.index_cast %c3_i32 : i32 to index
    %c0_51 = arith.constant 0 : index
    %c0_52 = arith.constant 0 : index
    %193 = vector.load %arg19[%192, %c0_51, %c0_52] : memref<8x8x128xf32, #tpu.memory_space<vmem>>, vector<1x8x128xf32>
    tpu.vector_store %arg19[%192, %c0_51, %c0_52], %191 {strides = array<i32>} : memref<8x8x128xf32, #tpu.memory_space<vmem>>, vector<1x8x128xf32>,
    %cst_53 = arith.constant 1.000000e+00 : f32
    %194 = vector.broadcast %cst_53 : f32 to vector<8x1xf32>
    %195 = arith.subf %194, %188 : vector<8x1xf32>
    %196 = vector.broadcast %195 : vector<8x1xf32> to vector<8x128xf32>
    %197 = arith.mulf %196, %152 : vector<8x128xf32>
    %198 = arith.addf %190, %197 : vector<8x128xf32>
    %c4_i32 = arith.constant 4 : i32
    %cst_54 = arith.constant dense<0.000000e+00> : vector<8x384xf32>
    %199 = tpu.matmul %198, %11, %cst_54 {dimension_numbers = #tpu.dot_dimension_numbers<[1], [0], [0], [1], [0, 0, 1, 1], [], []>} : vector<8x128xf32>, vector<128x384xf32>, vector<8x384xf32> -> vector<8x384xf32>
    %200 = vector.broadcast %12 : vector<1x384xf32> to vector<8x384xf32>
    %201 = arith.addf %199, %200 : vector<8x384xf32>
    %202 = arith.index_cast %c4_i32 : i32 to index
    %c0_55 = arith.constant 0 : index
    %c0_56 = arith.constant 0 : index
    %203 = vector.load %arg18[%202, %c0_55, %c0_56] : memref<8x8x384xf32, #tpu.memory_space<vmem>>, vector<1x8x384xf32>
    %204 = vector.shape_cast %203 : vector<1x8x384xf32> to vector<8x384xf32>
    %205 = vector.extract_strided_slice %204 {offsets = [0, 0], sizes = [8, 128], strides = [1, 1]} : vector<8x384xf32> to vector<8x128xf32>
    %206 = vector.extract_strided_slice %201 {offsets = [0, 0], sizes = [8, 128], strides = [1, 1]} : vector<8x384xf32> to vector<8x128xf32>
    %207 = arith.addf %205, %206 : vector<8x128xf32>
    %208 = arith.negf %207 : vector<8x128xf32>
    %209 = math.exp %208 : vector<8x128xf32>
    %cst_57 = arith.constant 1.000000e+00 : f32
    %210 = vector.broadcast %cst_57 : f32 to vector<8x128xf32>
    %211 = arith.addf %210, %209 : vector<8x128xf32>
    %212 = arith.divf %210, %211 : vector<8x128xf32>
    %213 = vector.extract_strided_slice %204 {offsets = [0, 128], sizes = [8, 128], strides = [1, 1]} : vector<8x384xf32> to vector<8x128xf32>
    %214 = vector.extract_strided_slice %201 {offsets = [0, 128], sizes = [8, 128], strides = [1, 1]} : vector<8x384xf32> to vector<8x128xf32>
    %215 = arith.addf %213, %214 : vector<8x128xf32>
    %216 = arith.negf %215 : vector<8x128xf32>
    %217 = math.exp %216 : vector<8x128xf32>
    %cst_58 = arith.constant 1.000000e+00 : f32
    %218 = vector.broadcast %cst_58 : f32 to vector<8x128xf32>
    %219 = arith.addf %218, %217 : vector<8x128xf32>
    %220 = arith.divf %218, %219 : vector<8x128xf32>
    %221 = vector.extract_strided_slice %204 {offsets = [0, 256], sizes = [8, 128], strides = [1, 1]} : vector<8x384xf32> to vector<8x128xf32>
    %222 = vector.extract_strided_slice %201 {offsets = [0, 256], sizes = [8, 128], strides = [1, 1]} : vector<8x384xf32> to vector<8x128xf32>
    %223 = arith.mulf %212, %222 : vector<8x128xf32>
    %224 = arith.addf %221, %223 : vector<8x128xf32>
    %225 = math.tanh %224 : vector<8x128xf32>
    %cst_59 = arith.constant 1.000000e+00 : f32
    %226 = vector.broadcast %cst_59 : f32 to vector<8x128xf32>
    %227 = arith.subf %226, %220 : vector<8x128xf32>
    %228 = arith.mulf %227, %225 : vector<8x128xf32>
    %229 = arith.mulf %220, %198 : vector<8x128xf32>
    %230 = arith.addf %228, %229 : vector<8x128xf32>
    %231 = vector.broadcast %c4_i32 : i32 to vector<8x1xi32>
    %232 = arith.cmpi sgt, %13, %231 : vector<8x1xi32>
    %233 = arith.extui %232 : vector<8x1xi1> to vector<8x1xi32>
    %234 = arith.sitofp %233 : vector<8x1xi32> to vector<8x1xf32>
    %235 = vector.broadcast %234 : vector<8x1xf32> to vector<8x128xf32>
    %236 = arith.mulf %235, %230 : vector<8x128xf32>
    %237 = vector.shape_cast %236 : vector<8x128xf32> to vector<1x8x128xf32>
    %238 = arith.index_cast %c4_i32 : i32 to index
    %c0_60 = arith.constant 0 : index
    %c0_61 = arith.constant 0 : index
    %239 = vector.load %arg19[%238, %c0_60, %c0_61] : memref<8x8x128xf32, #tpu.memory_space<vmem>>, vector<1x8x128xf32>
    tpu.vector_store %arg19[%238, %c0_60, %c0_61], %237 {strides = array<i32>} : memref<8x8x128xf32, #tpu.memory_space<vmem>>, vector<1x8x128xf32>,
    %cst_62 = arith.constant 1.000000e+00 : f32
    %240 = vector.broadcast %cst_62 : f32 to vector<8x1xf32>
    %241 = arith.subf %240, %234 : vector<8x1xf32>
    %242 = vector.broadcast %241 : vector<8x1xf32> to vector<8x128xf32>
    %243 = arith.mulf %242, %198 : vector<8x128xf32>
    %244 = arith.addf %236, %243 : vector<8x128xf32>
    %c5_i32 = arith.constant 5 : i32
    %cst_63 = arith.constant dense<0.000000e+00> : vector<8x384xf32>
    %245 = tpu.matmul %244, %11, %cst_63 {dimension_numbers = #tpu.dot_dimension_numbers<[1], [0], [0], [1], [0, 0, 1, 1], [], []>} : vector<8x128xf32>, vector<128x384xf32>, vector<8x384xf32> -> vector<8x384xf32>
    %246 = vector.broadcast %12 : vector<1x384xf32> to vector<8x384xf32>
    %247 = arith.addf %245, %246 : vector<8x384xf32>
    %248 = arith.index_cast %c5_i32 : i32 to index
    %c0_64 = arith.constant 0 : index
    %c0_65 = arith.constant 0 : index
    %249 = vector.load %arg18[%248, %c0_64, %c0_65] : memref<8x8x384xf32, #tpu.memory_space<vmem>>, vector<1x8x384xf32>
    %250 = vector.shape_cast %249 : vector<1x8x384xf32> to vector<8x384xf32>
    %251 = vector.extract_strided_slice %250 {offsets = [0, 0], sizes = [8, 128], strides = [1, 1]} : vector<8x384xf32> to vector<8x128xf32>
    %252 = vector.extract_strided_slice %247 {offsets = [0, 0], sizes = [8, 128], strides = [1, 1]} : vector<8x384xf32> to vector<8x128xf32>
    %253 = arith.addf %251, %252 : vector<8x128xf32>
    %254 = arith.negf %253 : vector<8x128xf32>
    %255 = math.exp %254 : vector<8x128xf32>
    %cst_66 = arith.constant 1.000000e+00 : f32
    %256 = vector.broadcast %cst_66 : f32 to vector<8x128xf32>
    %257 = arith.addf %256, %255 : vector<8x128xf32>
    %258 = arith.divf %256, %257 : vector<8x128xf32>
    %259 = vector.extract_strided_slice %250 {offsets = [0, 128], sizes = [8, 128], strides = [1, 1]} : vector<8x384xf32> to vector<8x128xf32>
    %260 = vector.extract_strided_slice %247 {offsets = [0, 128], sizes = [8, 128], strides = [1, 1]} : vector<8x384xf32> to vector<8x128xf32>
    %261 = arith.addf %259, %260 : vector<8x128xf32>
    %262 = arith.negf %261 : vector<8x128xf32>
    %263 = math.exp %262 : vector<8x128xf32>
    %cst_67 = arith.constant 1.000000e+00 : f32
    %264 = vector.broadcast %cst_67 : f32 to vector<8x128xf32>
    %265 = arith.addf %264, %263 : vector<8x128xf32>
    %266 = arith.divf %264, %265 : vector<8x128xf32>
    %267 = vector.extract_strided_slice %250 {offsets = [0, 256], sizes = [8, 128], strides = [1, 1]} : vector<8x384xf32> to vector<8x128xf32>
    %268 = vector.extract_strided_slice %247 {offsets = [0, 256], sizes = [8, 128], strides = [1, 1]} : vector<8x384xf32> to vector<8x128xf32>
    %269 = arith.mulf %258, %268 : vector<8x128xf32>
    %270 = arith.addf %267, %269 : vector<8x128xf32>
    %271 = math.tanh %270 : vector<8x128xf32>
    %cst_68 = arith.constant 1.000000e+00 : f32
    %272 = vector.broadcast %cst_68 : f32 to vector<8x128xf32>
    %273 = arith.subf %272, %266 : vector<8x128xf32>
    %274 = arith.mulf %273, %271 : vector<8x128xf32>
    %275 = arith.mulf %266, %244 : vector<8x128xf32>
    %276 = arith.addf %274, %275 : vector<8x128xf32>
    %277 = vector.broadcast %c5_i32 : i32 to vector<8x1xi32>
    %278 = arith.cmpi sgt, %13, %277 : vector<8x1xi32>
    %279 = arith.extui %278 : vector<8x1xi1> to vector<8x1xi32>
    %280 = arith.sitofp %279 : vector<8x1xi32> to vector<8x1xf32>
    %281 = vector.broadcast %280 : vector<8x1xf32> to vector<8x128xf32>
    %282 = arith.mulf %281, %276 : vector<8x128xf32>
    %283 = vector.shape_cast %282 : vector<8x128xf32> to vector<1x8x128xf32>
    %284 = arith.index_cast %c5_i32 : i32 to index
    %c0_69 = arith.constant 0 : index
    %c0_70 = arith.constant 0 : index
    %285 = vector.load %arg19[%284, %c0_69, %c0_70] : memref<8x8x128xf32, #tpu.memory_space<vmem>>, vector<1x8x128xf32>
    tpu.vector_store %arg19[%284, %c0_69, %c0_70], %283 {strides = array<i32>} : memref<8x8x128xf32, #tpu.memory_space<vmem>>, vector<1x8x128xf32>,
    %cst_71 = arith.constant 1.000000e+00 : f32
    %286 = vector.broadcast %cst_71 : f32 to vector<8x1xf32>
    %287 = arith.subf %286, %280 : vector<8x1xf32>
    %288 = vector.broadcast %287 : vector<8x1xf32> to vector<8x128xf32>
    %289 = arith.mulf %288, %244 : vector<8x128xf32>
    %290 = arith.addf %282, %289 : vector<8x128xf32>
    %c6_i32 = arith.constant 6 : i32
    %cst_72 = arith.constant dense<0.000000e+00> : vector<8x384xf32>
    %291 = tpu.matmul %290, %11, %cst_72 {dimension_numbers = #tpu.dot_dimension_numbers<[1], [0], [0], [1], [0, 0, 1, 1], [], []>} : vector<8x128xf32>, vector<128x384xf32>, vector<8x384xf32> -> vector<8x384xf32>
    %292 = vector.broadcast %12 : vector<1x384xf32> to vector<8x384xf32>
    %293 = arith.addf %291, %292 : vector<8x384xf32>
    %294 = arith.index_cast %c6_i32 : i32 to index
    %c0_73 = arith.constant 0 : index
    %c0_74 = arith.constant 0 : index
    %295 = vector.load %arg18[%294, %c0_73, %c0_74] : memref<8x8x384xf32, #tpu.memory_space<vmem>>, vector<1x8x384xf32>
    %296 = vector.shape_cast %295 : vector<1x8x384xf32> to vector<8x384xf32>
    %297 = vector.extract_strided_slice %296 {offsets = [0, 0], sizes = [8, 128], strides = [1, 1]} : vector<8x384xf32> to vector<8x128xf32>
    %298 = vector.extract_strided_slice %293 {offsets = [0, 0], sizes = [8, 128], strides = [1, 1]} : vector<8x384xf32> to vector<8x128xf32>
    %299 = arith.addf %297, %298 : vector<8x128xf32>
    %300 = arith.negf %299 : vector<8x128xf32>
    %301 = math.exp %300 : vector<8x128xf32>
    %cst_75 = arith.constant 1.000000e+00 : f32
    %302 = vector.broadcast %cst_75 : f32 to vector<8x128xf32>
    %303 = arith.addf %302, %301 : vector<8x128xf32>
    %304 = arith.divf %302, %303 : vector<8x128xf32>
    %305 = vector.extract_strided_slice %296 {offsets = [0, 128], sizes = [8, 128], strides = [1, 1]} : vector<8x384xf32> to vector<8x128xf32>
    %306 = vector.extract_strided_slice %293 {offsets = [0, 128], sizes = [8, 128], strides = [1, 1]} : vector<8x384xf32> to vector<8x128xf32>
    %307 = arith.addf %305, %306 : vector<8x128xf32>
    %308 = arith.negf %307 : vector<8x128xf32>
    %309 = math.exp %308 : vector<8x128xf32>
    %cst_76 = arith.constant 1.000000e+00 : f32
    %310 = vector.broadcast %cst_76 : f32 to vector<8x128xf32>
    %311 = arith.addf %310, %309 : vector<8x128xf32>
    %312 = arith.divf %310, %311 : vector<8x128xf32>
    %313 = vector.extract_strided_slice %296 {offsets = [0, 256], sizes = [8, 128], strides = [1, 1]} : vector<8x384xf32> to vector<8x128xf32>
    %314 = vector.extract_strided_slice %293 {offsets = [0, 256], sizes = [8, 128], strides = [1, 1]} : vector<8x384xf32> to vector<8x128xf32>
    %315 = arith.mulf %304, %314 : vector<8x128xf32>
    %316 = arith.addf %313, %315 : vector<8x128xf32>
    %317 = math.tanh %316 : vector<8x128xf32>
    %cst_77 = arith.constant 1.000000e+00 : f32
    %318 = vector.broadcast %cst_77 : f32 to vector<8x128xf32>
    %319 = arith.subf %318, %312 : vector<8x128xf32>
    %320 = arith.mulf %319, %317 : vector<8x128xf32>
    %321 = arith.mulf %312, %290 : vector<8x128xf32>
    %322 = arith.addf %320, %321 : vector<8x128xf32>
    %323 = vector.broadcast %c6_i32 : i32 to vector<8x1xi32>
    %324 = arith.cmpi sgt, %13, %323 : vector<8x1xi32>
    %325 = arith.extui %324 : vector<8x1xi1> to vector<8x1xi32>
    %326 = arith.sitofp %325 : vector<8x1xi32> to vector<8x1xf32>
    %327 = vector.broadcast %326 : vector<8x1xf32> to vector<8x128xf32>
    %328 = arith.mulf %327, %322 : vector<8x128xf32>
    %329 = vector.shape_cast %328 : vector<8x128xf32> to vector<1x8x128xf32>
    %330 = arith.index_cast %c6_i32 : i32 to index
    %c0_78 = arith.constant 0 : index
    %c0_79 = arith.constant 0 : index
    %331 = vector.load %arg19[%330, %c0_78, %c0_79] : memref<8x8x128xf32, #tpu.memory_space<vmem>>, vector<1x8x128xf32>
    tpu.vector_store %arg19[%330, %c0_78, %c0_79], %329 {strides = array<i32>} : memref<8x8x128xf32, #tpu.memory_space<vmem>>, vector<1x8x128xf32>,
    %cst_80 = arith.constant 1.000000e+00 : f32
    %332 = vector.broadcast %cst_80 : f32 to vector<8x1xf32>
    %333 = arith.subf %332, %326 : vector<8x1xf32>
    %334 = vector.broadcast %333 : vector<8x1xf32> to vector<8x128xf32>
    %335 = arith.mulf %334, %290 : vector<8x128xf32>
    %336 = arith.addf %328, %335 : vector<8x128xf32>
    %c7_i32 = arith.constant 7 : i32
    %cst_81 = arith.constant dense<0.000000e+00> : vector<8x384xf32>
    %337 = tpu.matmul %336, %11, %cst_81 {dimension_numbers = #tpu.dot_dimension_numbers<[1], [0], [0], [1], [0, 0, 1, 1], [], []>} : vector<8x128xf32>, vector<128x384xf32>, vector<8x384xf32> -> vector<8x384xf32>
    %338 = vector.broadcast %12 : vector<1x384xf32> to vector<8x384xf32>
    %339 = arith.addf %337, %338 : vector<8x384xf32>
    %340 = arith.index_cast %c7_i32 : i32 to index
    %c0_82 = arith.constant 0 : index
    %c0_83 = arith.constant 0 : index
    %341 = vector.load %arg18[%340, %c0_82, %c0_83] : memref<8x8x384xf32, #tpu.memory_space<vmem>>, vector<1x8x384xf32>
    %342 = vector.shape_cast %341 : vector<1x8x384xf32> to vector<8x384xf32>
    %343 = vector.extract_strided_slice %342 {offsets = [0, 0], sizes = [8, 128], strides = [1, 1]} : vector<8x384xf32> to vector<8x128xf32>
    %344 = vector.extract_strided_slice %339 {offsets = [0, 0], sizes = [8, 128], strides = [1, 1]} : vector<8x384xf32> to vector<8x128xf32>
    %345 = arith.addf %343, %344 : vector<8x128xf32>
    %346 = arith.negf %345 : vector<8x128xf32>
    %347 = math.exp %346 : vector<8x128xf32>
    %cst_84 = arith.constant 1.000000e+00 : f32
    %348 = vector.broadcast %cst_84 : f32 to vector<8x128xf32>
    %349 = arith.addf %348, %347 : vector<8x128xf32>
    %350 = arith.divf %348, %349 : vector<8x128xf32>
    %351 = vector.extract_strided_slice %342 {offsets = [0, 128], sizes = [8, 128], strides = [1, 1]} : vector<8x384xf32> to vector<8x128xf32>
    %352 = vector.extract_strided_slice %339 {offsets = [0, 128], sizes = [8, 128], strides = [1, 1]} : vector<8x384xf32> to vector<8x128xf32>
    %353 = arith.addf %351, %352 : vector<8x128xf32>
    %354 = arith.negf %353 : vector<8x128xf32>
    %355 = math.exp %354 : vector<8x128xf32>
    %cst_85 = arith.constant 1.000000e+00 : f32
    %356 = vector.broadcast %cst_85 : f32 to vector<8x128xf32>
    %357 = arith.addf %356, %355 : vector<8x128xf32>
    %358 = arith.divf %356, %357 : vector<8x128xf32>
    %359 = vector.extract_strided_slice %342 {offsets = [0, 256], sizes = [8, 128], strides = [1, 1]} : vector<8x384xf32> to vector<8x128xf32>
    %360 = vector.extract_strided_slice %339 {offsets = [0, 256], sizes = [8, 128], strides = [1, 1]} : vector<8x384xf32> to vector<8x128xf32>
    %361 = arith.mulf %350, %360 : vector<8x128xf32>
    %362 = arith.addf %359, %361 : vector<8x128xf32>
    %363 = math.tanh %362 : vector<8x128xf32>
    %cst_86 = arith.constant 1.000000e+00 : f32
    %364 = vector.broadcast %cst_86 : f32 to vector<8x128xf32>
    %365 = arith.subf %364, %358 : vector<8x128xf32>
    %366 = arith.mulf %365, %363 : vector<8x128xf32>
    %367 = arith.mulf %358, %336 : vector<8x128xf32>
    %368 = arith.addf %366, %367 : vector<8x128xf32>
    %369 = vector.broadcast %c7_i32 : i32 to vector<8x1xi32>
    %370 = arith.cmpi sgt, %13, %369 : vector<8x1xi32>
    %371 = arith.extui %370 : vector<8x1xi1> to vector<8x1xi32>
    %372 = arith.sitofp %371 : vector<8x1xi32> to vector<8x1xf32>
    %373 = vector.broadcast %372 : vector<8x1xf32> to vector<8x128xf32>
    %374 = arith.mulf %373, %368 : vector<8x128xf32>
    %375 = vector.shape_cast %374 : vector<8x128xf32> to vector<1x8x128xf32>
    %376 = arith.index_cast %c7_i32 : i32 to index
    %c0_87 = arith.constant 0 : index
    %c0_88 = arith.constant 0 : index
    %377 = vector.load %arg19[%376, %c0_87, %c0_88] : memref<8x8x128xf32, #tpu.memory_space<vmem>>, vector<1x8x128xf32>
    tpu.vector_store %arg19[%376, %c0_87, %c0_88], %375 {strides = array<i32>} : memref<8x8x128xf32, #tpu.memory_space<vmem>>, vector<1x8x128xf32>,
    %cst_89 = arith.constant 1.000000e+00 : f32
    %378 = vector.broadcast %cst_89 : f32 to vector<8x1xf32>
    %379 = arith.subf %378, %372 : vector<8x1xf32>
    %380 = vector.broadcast %379 : vector<8x1xf32> to vector<8x128xf32>
    %381 = arith.mulf %380, %336 : vector<8x128xf32>
    %382 = arith.addf %374, %381 : vector<8x128xf32>
    %c8_i32 = arith.constant 8 : i32
    %c0_90 = arith.constant 0 : index
    %c0_91 = arith.constant 0 : index
    %383 = vector.load %arg16[%c0_90, %c0_91] : memref<8x128xf32, #tpu.memory_space<vmem>>, vector<8x128xf32>
    tpu.vector_store %arg16[%c0_90, %c0_91], %382 {strides = array<i32>} : memref<8x128xf32, #tpu.memory_space<vmem>>, vector<8x128xf32>,
    %c0_92 = arith.constant 0 : index
    %c0_93 = arith.constant 0 : index
    %c0_94 = arith.constant 0 : index
    %384 = vector.load %arg19[%c0_92, %c0_93, %c0_94] : memref<8x8x128xf32, #tpu.memory_space<vmem>>, vector<8x8x128xf32>
    %385 = tpu.transpose %384, [1, 0, 2] : vector<8x8x128xf32> -> vector<8x8x128xf32>
    %386 = arith.truncf %385 : vector<8x8x128xf32> to vector<8x8x128xbf16>
    %387 = vector.shape_cast %386 : vector<8x8x128xbf16> to vector<64x128xbf16>
    %c0_95 = arith.constant 0 : index
    %c0_96 = arith.constant 0 : index
    %388 = vector.load %arg11[%c0_95, %c0_96] : memref<128x128xbf16, #tpu.memory_space<vmem>>, vector<128x128xbf16>
    %cst_97 = arith.constant dense<0.000000e+00> : vector<64x128xf32>
    %389 = tpu.matmul %387, %388, %cst_97 {dimension_numbers = #tpu.dot_dimension_numbers<[1], [0], [0], [1], [0, 0, 1, 1], [], []>} : vector<64x128xbf16>, vector<128x128xbf16>, vector<64x128xf32> -> vector<64x128xf32>
    %390 = arith.truncf %389 : vector<64x128xf32> to vector<64x128xbf16>
    %391 = vector.shape_cast %390 : vector<64x128xbf16> to vector<8x8x128xbf16>
    %c0_98 = arith.constant 0 : index
    %c0_99 = arith.constant 0 : index
    %c0_100 = arith.constant 0 : index
    %392 = vector.load %arg5[%c0_98, %c0_99, %c0_100] : memref<8x128x128xbf16, #tpu.memory_space<vmem>>, vector<8x128x128xbf16>
    "tpu.trace_start"() <{level = 10 : i32, message = "btk,bks->bts"}> : () -> ()
    %cst_101 = arith.constant dense<0.000000e+00> : vector<8x8x128xf32>
    %393 = tpu.matmul %391, %392, %cst_101 {dimension_numbers = #tpu.dot_dimension_numbers<[2], [1], [1], [2], [0, 0, 0, 1, 1, 2], [0], [0]>} : vector<8x8x128xbf16>, vector<8x128x128xbf16>, vector<8x8x128xf32> -> vector<8x8x128xf32>
    "tpu.trace_stop"() : () -> ()
    %c0_102 = arith.constant 0 : index
    %c0_103 = arith.constant 0 : index
    %394 = vector.load %arg6[%c0_102, %c0_103] : memref<1x128xf32, #tpu.memory_space<vmem>>, vector<1x128xf32>
    %395 = vector.shape_cast %394 : vector<1x128xf32> to vector<1x1x128xf32>
    %396 = vector.broadcast %395 : vector<1x1x128xf32> to vector<8x8x128xf32>
    %397 = arith.addf %393, %396 : vector<8x8x128xf32>
    %cst_104 = arith.constant dense<0xFF800000> : vector<8x8xf32>
    %398 = vector.multi_reduction <maximumf>, %397, %cst_104 [2] : vector<8x8x128xf32> to vector<8x8xf32>
    %399 = vector.shape_cast %398 : vector<8x8xf32> to vector<8x8x1xf32>
    %400 = vector.broadcast %399 : vector<8x8x1xf32> to vector<8x8x128xf32>
    %401 = arith.subf %397, %400 : vector<8x8x128xf32>
    %402 = math.exp %401 : vector<8x8x128xf32>
    %cst_105 = arith.constant dense<0.000000e+00> : vector<8x8xf32>
    %403 = vector.multi_reduction <add>, %402, %cst_105 [2] : vector<8x8x128xf32> to vector<8x8xf32>
    %404 = vector.shape_cast %403 : vector<8x8xf32> to vector<8x8x1xf32>
    %405 = tpu.reciprocal %404 {approx = true} : vector<8x8x1xf32> -> vector<8x8x1xf32>
    %406 = vector.broadcast %405 : vector<8x8x1xf32> to vector<8x8x128xf32>
    %407 = arith.mulf %402, %406 : vector<8x8x128xf32>
    %c0_106 = arith.constant 0 : index
    %c0_107 = arith.constant 0 : index
    %c0_108 = arith.constant 0 : index
    %408 = vector.load %arg17[%c0_106, %c0_107, %c0_108] : memref<8x8x128xf32, #tpu.memory_space<vmem>>, vector<8x8x128xf32>
    tpu.vector_store %arg17[%c0_106, %c0_107, %c0_108], %407 {strides = array<i32>} : memref<8x8x128xf32, #tpu.memory_space<vmem>>, vector<8x8x128xf32>,
    %409 = arith.truncf %407 : vector<8x8x128xf32> to vector<8x8x128xbf16>
    %c0_109 = arith.constant 0 : index
    %c0_110 = arith.constant 0 : index
    %c0_111 = arith.constant 0 : index
    %410 = vector.load %arg4[%c0_109, %c0_110, %c0_111] : memref<8x128x128xbf16, #tpu.memory_space<vmem>>, vector<8x128x128xbf16>
    "tpu.trace_start"() <{level = 10 : i32, message = "bts,bsh->bth"}> : () -> ()
    %cst_112 = arith.constant dense<0.000000e+00> : vector<8x8x128xf32>
    %411 = tpu.matmul %409, %410, %cst_112 {dimension_numbers = #tpu.dot_dimension_numbers<[2], [1], [1], [2], [0, 0, 0, 1, 1, 2], [0], [0]>} : vector<8x8x128xbf16>, vector<8x128x128xbf16>, vector<8x8x128xf32> -> vector<8x8x128xf32>
    "tpu.trace_stop"() : () -> ()
    %412 = vector.shape_cast %386 : vector<8x8x128xbf16> to vector<64x128xbf16>
    %c0_113 = arith.constant 0 : index
    %c0_114 = arith.constant 0 : index
    %413 = vector.load %arg12[%c0_113, %c0_114] : memref<128x128xbf16, #tpu.memory_space<vmem>>, vector<128x128xbf16>
    %cst_115 = arith.constant dense<0.000000e+00> : vector<64x128xf32>
    %414 = tpu.matmul %412, %413, %cst_115 {dimension_numbers = #tpu.dot_dimension_numbers<[1], [0], [0], [1], [0, 0, 1, 1], [], []>} : vector<64x128xbf16>, vector<128x128xbf16>, vector<64x128xf32> -> vector<64x128xf32>
    %415 = arith.truncf %411 : vector<8x8x128xf32> to vector<8x8x128xbf16>
    %416 = vector.shape_cast %415 : vector<8x8x128xbf16> to vector<64x128xbf16>
    %c0_116 = arith.constant 0 : index
    %c0_117 = arith.constant 0 : index
    %417 = vector.load %arg13[%c0_116, %c0_117] : memref<128x128xbf16, #tpu.memory_space<vmem>>, vector<128x128xbf16>
    %cst_118 = arith.constant dense<0.000000e+00> : vector<64x128xf32>
    %418 = tpu.matmul %416, %417, %cst_118 {dimension_numbers = #tpu.dot_dimension_numbers<[1], [0], [0], [1], [0, 0, 1, 1], [], []>} : vector<64x128xbf16>, vector<128x128xbf16>, vector<64x128xf32> -> vector<64x128xf32>
    %419 = arith.addf %414, %418 : vector<64x128xf32>
    %c0_119 = arith.constant 0 : index
    %c0_120 = arith.constant 0 : index
    %420 = vector.load %arg14[%c0_119, %c0_120] : memref<1x128xf32, #tpu.memory_space<vmem>>, vector<1x128xf32>
    %421 = vector.broadcast %420 : vector<1x128xf32> to vector<64x128xf32>
    %422 = arith.addf %419, %421 : vector<64x128xf32>
    %cst_121 = arith.constant dense<0xFF800000> : vector<64xf32>
    %423 = vector.multi_reduction <maximumf>, %422, %cst_121 [1] : vector<64x128xf32> to vector<64xf32>
    %424 = vector.shape_cast %423 : vector<64xf32> to vector<64x1xf32>
    %425 = vector.broadcast %424 : vector<64x1xf32> to vector<64x128xf32>
    %426 = arith.subf %422, %425 : vector<64x128xf32>
    %427 = math.exp %426 : vector<64x128xf32>
    %cst_122 = arith.constant dense<0.000000e+00> : vector<64xf32>
    %428 = vector.multi_reduction <add>, %427, %cst_122 [1] : vector<64x128xf32> to vector<64xf32>
    %429 = vector.shape_cast %428 : vector<64xf32> to vector<64x1xf32>
    %430 = math.log %429 : vector<64x1xf32>
    %431 = arith.addf %430, %424 : vector<64x1xf32>
    %432 = vector.broadcast %431 : vector<64x1xf32> to vector<64x128xf32>
    %433 = arith.subf %422, %432 : vector<64x128xf32>
    %434 = vector.shape_cast %433 : vector<64x128xf32> to vector<8x8x128xf32>
    %c0_123 = arith.constant 0 : index
    %c0_124 = arith.constant 0 : index
    %c0_125 = arith.constant 0 : index
    %435 = vector.load %arg15[%c0_123, %c0_124, %c0_125] : memref<8x8x128xf32, #tpu.memory_space<vmem>>, vector<8x8x128xf32>
    tpu.vector_store %arg15[%c0_123, %c0_124, %c0_125], %434 {strides = array<i32>} : memref<8x8x128xf32, #tpu.memory_space<vmem>>, vector<8x8x128xf32>,
    return
  }
  func.func @transform_0(%arg0: i32) -> (i32, i32) {
    %c0_i32 = arith.constant 0 : i32
    %c0_i32_0 = arith.constant 0 : i32
    return %arg0, %c0_i32 : i32, i32
  }
  func.func @transform_1(%arg0: i32) -> (i32, i32, i32) {
    %c0_i32 = arith.constant 0 : i32
    %c0_i32_0 = arith.constant 0 : i32
    %c0_i32_1 = arith.constant 0 : i32
    return %c0_i32, %arg0, %c0_i32_0 : i32, i32, i32
  }
  func.func @transform_2(%arg0: i32) -> (i32, i32) {
    %c0_i32 = arith.constant 0 : i32
    %c0_i32_0 = arith.constant 0 : i32
    return %arg0, %c0_i32 : i32, i32
  }
  func.func @transform_3(%arg0: i32) -> (i32, i32, i32) {
    %c0_i32 = arith.constant 0 : i32
    %c0_i32_0 = arith.constant 0 : i32
    %c0_i32_1 = arith.constant 0 : i32
    return %arg0, %c0_i32, %c0_i32_0 : i32, i32, i32
  }
  func.func @transform_4(%arg0: i32) -> (i32, i32, i32) {
    %c0_i32 = arith.constant 0 : i32
    %c0_i32_0 = arith.constant 0 : i32
    %c0_i32_1 = arith.constant 0 : i32
    return %arg0, %c0_i32, %c0_i32_0 : i32, i32, i32
  }
  func.func @transform_5(%arg0: i32) -> (i32, i32) {
    %c0_i32 = arith.constant 0 : i32
    %c0_i32_0 = arith.constant 0 : i32
    %c0_i32_1 = arith.constant 0 : i32
    return %c0_i32, %c0_i32_0 : i32, i32
  }
  func.func @transform_6(%arg0: i32) -> (i32, i32) {
    %c0_i32 = arith.constant 0 : i32
    %c0_i32_0 = arith.constant 0 : i32
    %c0_i32_1 = arith.constant 0 : i32
    return %c0_i32, %c0_i32_0 : i32, i32
  }
  func.func @transform_7(%arg0: i32) -> (i32, i32) {
    %c0_i32 = arith.constant 0 : i32
    %c0_i32_0 = arith.constant 0 : i32
    %c0_i32_1 = arith.constant 0 : i32
    return %c0_i32, %c0_i32_0 : i32, i32
  }
  func.func @transform_8(%arg0: i32) -> (i32, i32) {
    %c0_i32 = arith.constant 0 : i32
    %c0_i32_0 = arith.constant 0 : i32
    %c0_i32_1 = arith.constant 0 : i32
    return %c0_i32, %c0_i32_0 : i32, i32
  }
  func.func @transform_9(%arg0: i32) -> (i32, i32) {
    %c0_i32 = arith.constant 0 : i32
    %c0_i32_0 = arith.constant 0 : i32
    %c0_i32_1 = arith.constant 0 : i32
    return %c0_i32, %c0_i32_0 : i32, i32
  }
  func.func @transform_10(%arg0: i32) -> (i32, i32) {
    %c0_i32 = arith.constant 0 : i32
    %c0_i32_0 = arith.constant 0 : i32
    %c0_i32_1 = arith.constant 0 : i32
    return %c0_i32, %c0_i32_0 : i32, i32
  }
  func.func @transform_11(%arg0: i32) -> (i32, i32) {
    %c0_i32 = arith.constant 0 : i32
    %c0_i32_0 = arith.constant 0 : i32
    %c0_i32_1 = arith.constant 0 : i32
    return %c0_i32, %c0_i32_0 : i32, i32
  }
  func.func @transform_12(%arg0: i32) -> (i32, i32) {
    %c0_i32 = arith.constant 0 : i32
    %c0_i32_0 = arith.constant 0 : i32
    %c0_i32_1 = arith.constant 0 : i32
    return %c0_i32, %c0_i32_0 : i32, i32
  }
  func.func @transform_13(%arg0: i32) -> (i32, i32) {
    %c0_i32 = arith.constant 0 : i32
    %c0_i32_0 = arith.constant 0 : i32
    %c0_i32_1 = arith.constant 0 : i32
    return %c0_i32, %c0_i32_0 : i32, i32
  }
  func.func @transform_14(%arg0: i32) -> (i32, i32, i32) {
    %c0_i32 = arith.constant 0 : i32
    %c0_i32_0 = arith.constant 0 : i32
    %c0_i32_1 = arith.constant 0 : i32
    return %arg0, %c0_i32, %c0_i32_0 : i32, i32, i32
  }
  func.func @transform_15(%arg0: i32) -> (i32, i32) {
    %c0_i32 = arith.constant 0 : i32
    %c0_i32_0 = arith.constant 0 : i32
    return %arg0, %c0_i32 : i32, i32
  }
  func.func @transform_16(%arg0: i32) -> (i32, i32, i32) {
    %c0_i32 = arith.constant 0 : i32
    %c0_i32_0 = arith.constant 0 : i32
    %c0_i32_1 = arith.constant 0 : i32
    return %arg0, %c0_i32, %c0_i32_0 : i32, i32, i32
  }
}

</mosaic_0001>

<bundles_post_ra>
// kernel: sentence_decoder_forward.1
= control target key start
LH: loop header
LB: loop body
LE: loop exit
PB: predicated region body
PF: predicated region fallthrough
CT: control target
= control target key end

     0   :  { %s6582_s6 = inlined_call_operand.vmem [shape: bf16[128,384], index: 6, kind: input, shape index: {}]   ;;  %s6583_s1 = inlined_call_operand.vmem [shape: bf16[8,8,128], index: 1, kind: input, shape index: {}]   ;;  %s6584_s7 = inlined_call_operand.vmem [shape: f32[128,384], index: 7, kind: input, shape index: {}]   ;;  %s6585_s0 = inlined_call_operand.vmem [shape: s32[8,1], index: 0, kind: input, shape index: {}]   ;;  %s6586_s2 = inlined_call_operand.vmem [shape: f32[8,128], index: 2, kind: input, shape index: {}]   ;;  %s6587_s8 = inlined_call_operand.vmem [shape: f32[1,384], index: 8, kind: input, shape index: {}]   ;;  %s6588_s9 = inlined_call_operand.vmem [shape: f32[1,384], index: 9, kind: input, shape index: {}]   ;;  %s6589_s10 = inlined_call_operand.vmem [shape: bf16[128,128], index: 10, kind: input, shape index: {}]   ;;  %s6590_s4 = inlined_call_operand.vmem [shape: bf16[8,128,128], index: 4, kind: input, shape index: {}]   ;;  %s6591_s5 = inlined_call_operand.vmem [shape: f32[1,128], index: 5, kind: input, shape index: {}]   ;;  %s6592_s3 = inlined_call_operand.vmem [shape: bf16[8,128,128], index: 3, kind: input, shape index: {}]   ;;  %s6593_s16 = inlined_call_operand.vmem [shape: f32[8,8,128], index: 16, kind: output, shape index: {2}]   ;;  %s6594_s11 = inlined_call_operand.vmem [shape: bf16[128,128], index: 11, kind: input, shape index: {}]   ;;  %s6595_s12 = inlined_call_operand.vmem [shape: bf16[128,128], index: 12, kind: input, shape index: {}]   ;;  %s6596_s13 = inlined_call_operand.vmem [shape: f32[1,128], index: 13, kind: input, shape index: {}]   ;;  %s6597_s14 = inlined_call_operand.vmem [shape: f32[8,8,128], index: 14, kind: output, shape index: {0}]   ;;  %s6598_s15 = inlined_call_operand.vmem [shape: f32[8,128], index: 15, kind: output, shape index: {1}]  }
   0x1   :  { %6645 = sst [smem:[#allocation31_spill]] %s6582_s6  ;;  %v4319_v20 = vld [vmem:[%s6583_s1 + $0x10] sm:$0xff]   ;;  %v4320_v51 = vld [vmem:[%s6583_s1 + $0x18] sm:$0xff]   ;;  %v4726_v54 = vld [vmem:[%s6584_s7 + $0x168] sm:$0xff] }
   0x2   :  { %s6646_s23 = sld [smem:[#allocation31_spill]]  ;;  %v4312_v26 = vunpack.c.l.bf16 %v4319_v20  ;;  %v4313_v27 = vunpack.c.h.bf16 %v4319_v20  ;;  %v4731_v56 = vld [vmem:[%s6584_s7 + $0x150] sm:$0xff]  ;;  %v4316_v58 = vunpack.c.l.bf16 %v4320_v51  ;;  %v4317_v59 = vunpack.c.h.bf16 %v4320_v51  ;;  %v4303_v60 = vld [vmem:[%s6583_s1] sm:$0xff]  }
   0x3   :  { %v4304_v63 = vunpack.c.l.bf16 %v4303_v60 }
   0x4   :  { %v70_v34 = vmax.f32 %v4312_v26, 0.0  ;;  %v71_v35 = vmax.f32 %v4313_v27, 0.0 }
   0x6   :  { %v78_v42 = vpack.c.bf16 %v70_v34, %v70_v34  ;;  %v79_v43 = vpack.c.bf16 %v71_v35, %v71_v35  ;;  %v4835_v34 = vld [vmem:[%s6584_s7 + $0x90] sm:$0xff] }
   0x8   :  { %v4147_v0 = vld [vmem:[%s6646_s23 + $0xac] sm:$0xf]  ;;  %v3486_v1 = vld [vmem:[%s6646_s23 + $0xb4] sm:$0xf0]  ;;  %v4144_v2 = vld [vmem:[%s6646_s23 + $0x94] sm:$0xf]  ;;  %v134_v49 = vunpack.c.l.b16 %v78_v42  ;;  %v135_v50 = vunpack.c.l.b16 %v79_v43 }
   0x9   :  { %v3489_v3 = vor.u32 %v4147_v0, %v3486_v1  ;;  %v3474_v4 = vld [vmem:[%s6646_s23 + $0x9c] sm:$0xf0]  ;;  %v4141_v6 = vld [vmem:[%s6646_s23 + $0x7c] sm:$0xf]  ;;  %v3462_v7 = vld [vmem:[%s6646_s23 + $0x84] sm:$0xf0]  ;;  %v4305_v0 = vunpack.c.h.bf16 %v4303_v60 }
   0xa   :  { %v3477_v5 = vor.u32 %v4144_v2, %v3474_v4  ;;  %v3465_v8 = vor.u32 %v4141_v6, %v3462_v7  ;;  %v4138_v9 = vld [vmem:[%s6646_s23 + $0x64] sm:$0xf]  ;;  %v3484_v10 = vld [vmem:[%s6646_s23 + $0xa8] sm:$0xf]  ;;  %v4148_v11 = vld [vmem:[%s6646_s23 + $0xb0] sm:$0xf0]  ;;  %v4733_v57 = vpack.c.b16 %v135_v50, %v134_v49 }
   0xb   :  { %4329 = vmatpush.bf16.msra.mxu3 %v3489_v3  ;;  %303 = vmatpush.bf16.msra.mxu1 %v3489_v3  ;;  %v3450_v12 = vld [vmem:[%s6646_s23 + $0x6c] sm:$0xf0]  ;;  %v3485_v13 = vor.u32 %v4148_v11, %v3484_v10  ;;  %v4145_v15 = vld [vmem:[%s6646_s23 + $0x98] sm:$0xf0]  ;;  %v4135_v18 = vld [vmem:[%s6646_s23 + $0x4c] sm:$0xf] }
   0xc   :  { %v3472_v14 = vld [vmem:[%s6646_s23 + $0x90] sm:$0xf]  ;;  %v3453_v17 = vor.u32 %v4138_v9, %v3450_v12  ;;  %v3438_v19 = vld [vmem:[%s6646_s23 + $0x54] sm:$0xf0]  ;;  %v4142_v22 = vld [vmem:[%s6646_s23 + $0x80] sm:$0xf0] }
   0xd   :  { %4321 = vmatpush.bf16.msra.mxu2 %v3485_v13  ;;  %274 = vmatpush.bf16.msra.mxu0 %v3485_v13  ;;  %v3473_v16 = vor.u32 %v4145_v15, %v3472_v14  ;;  %v3460_v21 = vld [vmem:[%s6646_s23 + $0x78] sm:$0xf]  ;;  %v3441_v24 = vor.u32 %v4135_v18, %v3438_v19  ;;  %v4132_v25 = vld [vmem:[%s6646_s23 + $0x34] sm:$0xf]  ;;  %v3426_v28 = vld [vmem:[%s6646_s23 + $0x3c] sm:$0xf0] }
   0xe   :  { %v3461_v23 = vor.u32 %v4142_v22, %v3460_v21  ;;  %v3448_v29 = vld [vmem:[%s6646_s23 + $0x60] sm:$0xf]  ;;  %v4139_v30 = vld [vmem:[%s6646_s23 + $0x68] sm:$0xf0]  ;;  %v3429_v32 = vor.u32 %v4132_v25, %v3426_v28  ;;  %v4129_v33 = vld [vmem:[%s6646_s23 + $0x1c] sm:$0xf] }
   0xf   :  { %4330 = vmatpush.bf16.msra.mxu3 %v3477_v5  ;;  %304 = vmatpush.bf16.msra.mxu1 %v3477_v5  ;;  %v3449_v31 = vor.u32 %v4139_v30, %v3448_v29  ;;  %v3414_v36 = vld [vmem:[%s6646_s23 + $0x24] sm:$0xf0]  ;;  %v4136_v38 = vld [vmem:[%s6646_s23 + $0x50] sm:$0xf0]  ;;  %v4126_v41 = vld [vmem:[%s6646_s23 + $0x4] sm:$0xf] }
  0x10   :  { %v3436_v37 = vld [vmem:[%s6646_s23 + $0x48] sm:$0xf]  ;;  %v3417_v40 = vor.u32 %v4129_v33, %v3414_v36  ;;  %v3402_v44 = vld [vmem:[%s6646_s23 + $0xc] sm:$0xf0]  ;;  %v4133_v46 = vld [vmem:[%s6646_s23 + $0x38] sm:$0xf0] }
  0x11   :  { %4322 = vmatpush.bf16.msra.mxu2 %v3473_v16  ;;  %275 = vmatpush.bf16.msra.mxu0 %v3473_v16  ;;  %v3437_v39 = vor.u32 %v4136_v38, %v3436_v37  ;;  %v3424_v45 = vld [vmem:[%s6646_s23 + $0x30] sm:$0xf]  ;;  %v3405_v48 = vor.u32 %v4126_v41, %v3402_v44  ;;  %v3412_v52 = vld [vmem:[%s6646_s23 + $0x18] sm:$0xf]  ;;  %v4130_v53 = vld [vmem:[%s6646_s23 + $0x20] sm:$0xf0] }
  0x12   :  { %v3425_v47 = vor.u32 %v4133_v46, %v3424_v45  ;;  %v3413_v55 = vor.u32 %v4130_v53, %v3412_v52  ;;  %v3400_v61 = vld [vmem:[%s6646_s23] sm:$0xf]  ;;  %v4127_v62 = vld [vmem:[%s6646_s23 + $0x8] sm:$0xf0]  ;;  %v4749_v1 = vld [vmem:[%s6584_s7 + $0x138] sm:$0xff]  ;;  %v66_v3 = vmax.f32 %v4304_v63, 0.0 }
  0x13   :  { %4331 = vmatpush.bf16.msra.mxu3 %v3465_v8  ;;  %305 = vmatpush.bf16.msra.mxu1 %v3465_v8  ;;  %v3401_v2 = vor.u32 %v4127_v62, %v3400_v61  ;;  %v67_v4 = vmax.f32 %v4305_v0, 0.0  ;;  %v4756_v5 = vld [vmem:[%s6584_s7 + $0x120] sm:$0xff]  ;;  %v72_v6 = vmax.f32 %v4316_v58, 0.0  ;;  %v73_v7 = vmax.f32 %v4317_v59, 0.0  ;;  %v3492_v8 = vld [vmem:[%s6646_s23 + $0xb0] sm:$0xf] }
  0x14   :  { %v4149_v9 = vld [vmem:[%s6646_s23 + $0xb8] sm:$0xf0]  ;;  %v74_v10 = vpack.c.bf16 %v66_v3, %v66_v3  ;;  %v4769_v12 = vld [vmem:[%s6584_s7 + $0x108] sm:$0xff]  ;;  %v4775_v16 = vld [vmem:[%s6584_s7 + $0xf0] sm:$0xff] }
  0x15   :  { %4323 = vmatpush.bf16.msra.mxu2 %v3461_v23  ;;  %276 = vmatpush.bf16.msra.mxu0 %v3461_v23  ;;  %v75_v11 = vpack.c.bf16 %v67_v4, %v67_v4  ;;  %v3493_v13 = vor.u32 %v4149_v9, %v3492_v8  ;;  %v81_v18 = vpack.c.bf16 %v73_v7, %v73_v7  ;;  %v3480_v20 = vld [vmem:[%s6646_s23 + $0x98] sm:$0xf]  ;;  %v4146_v21 = vld [vmem:[%s6646_s23 + $0xa0] sm:$0xf0]  ;;  %v3468_v29 = vld [vmem:[%s6646_s23 + $0x80] sm:$0xf] }
  0x16   :  { %v130_v14 = vunpack.c.l.b16 %v74_v10  ;;  %v4790_v22 = vld [vmem:[%s6584_s7 + $0xd8] sm:$0xff]  ;;  %v3481_v23 = vor.u32 %v4146_v21, %v3480_v20  ;;  %v4803_v25 = vld [vmem:[%s6584_s7 + $0xc0] sm:$0xff]  ;;  %v4143_v30 = vld [vmem:[%s6646_s23 + $0x88] sm:$0xf0] }
  0x17   :  { %4332 = vmatpush.bf16.msra.mxu3 %v3453_v17  ;;  %306 = vmatpush.bf16.msra.mxu1 %v3453_v17  ;;  %v131_v15 = vunpack.c.l.b16 %v75_v11  ;;  %v80_v17 = vpack.c.bf16 %v72_v6, %v72_v6  ;;  %v137_v27 = vunpack.c.l.b16 %v81_v18  ;;  %v4810_v28 = vld [vmem:[%s6584_s7 + $0x160] sm:$0xff]  ;;  %v4830_v33 = vld [vmem:[%s6584_s7 + $0x148] sm:$0xff]  ;;  %v4847_v37 = vld [vmem:[%s6584_s7 + $0x130] sm:$0xff] }
  0x18   :  { %v4318_v36 = vld [vmem:[%s6583_s1 + $0x8] sm:$0xff]   ;;  %v4859_v42 = vld [vmem:[%s6584_s7 + $0x78] sm:$0xff]  ;;  %v3444_v49 = vld [vmem:[%s6646_s23 + $0x50] sm:$0xf] }
  0x19   :  { %4324 = vmatpush.bf16.msra.mxu2 %v3449_v31  ;;  %277 = vmatpush.bf16.msra.mxu0 %v3449_v31  ;;  %v4778_v19 = vpack.c.b16 %v131_v15, %v130_v14  ;;  %v136_v26 = vunpack.c.l.b16 %v80_v17  ;;  %v4822_v31 = vld [vmem:[%s6584_s7 + $0xa8] sm:$0xff]  ;;  %v4309_v41 = vunpack.c.h.bf16 %v4318_v36  ;;  %v4866_v44 = vld [vmem:[%s6584_s7 + $0x118] sm:$0xff]  ;;  %v4904_v61 = vld [vmem:[%s6584_s7 + $0x30] sm:$0xff] }
  0x1a   :  { %v3456_v38 = vld [vmem:[%s6646_s23 + $0x68] sm:$0xf]  ;;  %v4137_v50 = vld [vmem:[%s6646_s23 + $0x58] sm:$0xf0]  ;;  %6647 = vst [vmem:[#allocation4_spill] sm:$0xff] %v4904_v61  ;;  %v4912_v62 = vld [vmem:[%s6584_s7 + $0xd0] sm:$0xff] }
  0x1b   :  { %4333 = vmatpush.bf16.msra.mxu3 %v3441_v24  ;;  %307 = vmatpush.bf16.msra.mxu1 %v3441_v24  ;;  %v4798_v24 = vld [vmem:[%s6584_s7 + $0x178] sm:$0xff]  ;;  %v4837_v35 = vpack.c.b16 %v137_v27, %v136_v26  ;;  %v69_v46 = vmax.f32 %v4309_v41, 0.0  ;;  %v4891_v53 = vld [vmem:[%s6584_s7 + $0x48] sm:$0xff]  ;;  %v4939_v7 = vld [vmem:[%s6584_s7] sm:$0xff]  ;;  %v4538_v26 = vmov 0  }
  0x1c   :  { %v4899_v58 = vld [vmem:[%s6584_s7 + $0xe8] sm:$0xff]  ;;  %v3432_v0 = vld [vmem:[%s6646_s23 + $0x38] sm:$0xf]  ;;  %6649 = vst [vmem:[#allocation6_spill] sm:$0xff] %v4939_v7  ;;  %v4944_v8 = vld [vmem:[%s6584_s7 + $0x170] sm:$0xff]  ;;  %4341 = vset.pattern.permute.xlu0 %v4538_v26  ;;  %4342 = vset.pattern.permute.xlu1 %v4538_v26 }
  0x1d   :  { %4325 = vmatpush.bf16.msra.mxu2 %v3437_v39  ;;  %278 = vmatpush.bf16.msra.mxu0 %v3437_v39  ;;  %v4140_v39 = vld [vmem:[%s6646_s23 + $0x70] sm:$0xf0]  ;;  %v77_v52 = vpack.c.bf16 %v69_v46, %v69_v46  ;;  %v4925_v3 = vld [vmem:[%s6584_s7 + $0x18] sm:$0xff]  ;;  %v4952_v9 = vld [vmem:[%s6584_s7 + $0xa0] sm:$0xff] }
  0x1e   :  { %v3457_v43 = vor.u32 %v4140_v39, %v3456_v38  ;;  %6648 = vst [vmem:[#allocation5_spill] sm:$0xff] %v4925_v3  ;;  %v4934_v6 = vld [vmem:[%s6584_s7 + $0xb8] sm:$0xff]  ;;  %v3420_v10 = vld [vmem:[%s6646_s23 + $0x20] sm:$0xf]  ;;  %v4131_v11 = vld [vmem:[%s6646_s23 + $0x28] sm:$0xf0]  ;;  %4343 = vset.pattern.permute.xlu2 %v4538_v26 }
  0x1f   :  { %4334 = vmatpush.bf16.msra.mxu3 %v3429_v32  ;;  %308 = vmatpush.bf16.msra.mxu1 %v3429_v32  ;;  %v3469_v32 = vor.u32 %v4143_v30, %v3468_v29  ;;  %v133_v60 = vunpack.c.l.b16 %v77_v52  ;;  %v4965_v14 = vld [vmem:[%s6584_s7 + $0x158] sm:$0xff]  ;;  %v4971_v15 = vld [vmem:[%s6584_s7 + $0x88] sm:$0xff]  ;;  %v4980_v18 = vld [vmem:[%s6584_s7 + $0x70] sm:$0xff] }
  0x20   :  { %v3408_v17 = vld [vmem:[%s6646_s23 + $0x8] sm:$0xf]  ;;  %v4128_v20 = vld [vmem:[%s6646_s23 + $0x10] sm:$0xf0]  ;;  %v4988_v21 = vld [vmem:[%s6584_s7 + $0x140] sm:$0xff] }
  0x21   :  { %4326 = vmatpush.bf16.msra.mxu2 %v3425_v47  ;;  %279 = vmatpush.bf16.msra.mxu0 %v3425_v47  ;;  %v4873_v47 = vld [vmem:[%s6584_s7 + $0x60] sm:$0xff]  ;;  %v5005_v30 = vld [vmem:[%s6584_s7 + $0x58] sm:$0xff]  ;;  %v5033_v41 = vld [vmem:[%s6584_s7 + $0x28] sm:$0xff] }
  0x22   :  { %v4994_v27 = vld [vmem:[%s6585_s0] sm:$0xff]  ;;  %6652 = vst [vmem:[#allocation9_spill] sm:$0xff] %v5033_v41  ;;  %v5048_v46 = vld [vmem:[%s6584_s7 + $0x10] sm:$0xff] }
  0x23   :  { %4335 = vmatpush.bf16.msra.mxu3 %v3417_v40  ;;  %309 = vmatpush.bf16.msra.mxu1 %v3417_v40  ;;  %v4308_v40 = vunpack.c.l.bf16 %v4318_v36  ;;  %6650 = vst [vmem:[#allocation7_spill] sm:$0xff] %v4994_v27  ;;  %v5000_v29 = vld [vmem:[%s6586_s2] sm:$0xff]  ;;  %vm553_vm0 = vcmp.gt.s32.totalorder %v4994_v27, 0  ;;  %v6600_v36 = vmov 0.0   ;;  %vm682_vm1 = vcmp.gt.s32.totalorder %v4994_v27, 1 }
  0x24   :  { %v3496_v38 = vsel %vm553_vm0, 1.0, %v6600_v36  ;;  %v5020_v39 = vld [vmem:[%s6584_s7 + $0x40] sm:$0xff]  ;;  %6653 = vst [vmem:[#allocation10_spill] sm:$0xff] %v5048_v46  ;;  %vm942_vm2 = vcmp.gt.s32.totalorder %v4994_v27, 3  ;;  %vm1072_vm3 = vcmp.gt.s32.totalorder %v4994_v27, 4  ;;  %vm1332_vm4 = vcmp.gt.s32.totalorder %v4994_v27, 6 }
  0x25   :  { %4327 = vmatpush.bf16.msra.mxu2 %v3413_v55  ;;  %280 = vmatpush.bf16.msra.mxu0 %v3413_v55  ;;  %v68_v45 = vmax.f32 %v4308_v40, 0.0  ;;  %v3445_v55 = vor.u32 %v4137_v50, %v3444_v49  ;;  %6651 = vst [vmem:[#allocation8_spill] sm:$0xff] %v5020_v39  ;;  %v5026_v40 = vld [vmem:[%s6584_s7 + $0x110] sm:$0xff]  ;;  %v5053_v49 = vld [vmem:[%s6584_s7 + $0xe0] sm:$0xff]  ;;  %v563_v50 = vsub.f32 1.0, %v3496_v38  ;;  %vm1202_vm8 = vcmp.gt.s32.totalorder %v4994_v27, 5 }
  0x26   :  { %558 = vperm.xlu0 %4341, %v3496_v38   ;;  %vm812_vm9 = vcmp.gt.s32.totalorder %v4994_v27, 2 }
  0x27   :  { %4336 = vmatpush.bf16.msra.mxu3 %v3405_v48  ;;  %310 = vmatpush.bf16.msra.mxu1 %v3405_v48  ;;  %v4880_v48 = vld [vmem:[%s6584_s7 + $0x100] sm:$0xff]  ;;  %v76_v51 = vpack.c.bf16 %v68_v45, %v68_v45  ;;  %v3499_v45 = vsel %vm682_vm1, 1.0, %v6600_v36 }
  0x28   :  { %687 = vperm.xlu1 %4342, %v3499_v45   ;;  %v693_v52 = vsub.f32 1.0, %v3499_v45  ;;  %v114_v45 = vld [vmem:[%s6587_s8] sm:$0x7] }
  0x29   :  { %4328 = vmatpush.bf16.msra.mxu2 %v3401_v2  ;;  %281 = vmatpush.bf16.msra.mxu0 %v3401_v2  ;;  %v132_v59 = vunpack.c.l.b16 %v76_v51  ;;  %v4134_v2 = vld [vmem:[%s6646_s23 + $0x40] sm:$0xf0]  ;;  %v5062_v51 = vld [vmem:[%s6584_s7 + $0xc8] sm:$0xff] }
  0x2a   :  { %321 = vmatmul.bf16.vlgmr.msra.gmra.mxu3 %v4733_v57  ;;  %311 = vmatmul.bf16.vlgmr.msra.gmra.mxu1 %v4778_v19  ;;  %v3433_v4 = vor.u32 %v4134_v2, %v3432_v0  ;;  %v3505_v0 = vsel %vm942_vm2, 1.0, %v6600_v36 }
  0x2b   :  { %443 = vmatpush.msrb.mxu3 %v4726_v54  ;;  %571 = vmatpush.msrb.mxu1 %v4726_v54  ;;  %v4914_v63 = vpack.c.b16 %v133_v60, %v132_v59  ;;  %v5088_v59 = vld [vmem:[%s6584_s7 + $0x80] sm:$0xff]  ;;  %v5096_v60 = vld [vmem:[%s6584_s7 + $0x68] sm:$0xff]  ;;  %v953_v2 = vsub.f32 1.0, %v3505_v0 }
  0x2c   :  { %292 = vmatmul.bf16.vlgmr.msra.gmra.mxu2 %v4733_v57  ;;  %282 = vmatmul.bf16.vlgmr.msra.gmra.mxu0 %v4778_v19 }
  0x2d   :  { %444 = vmatpush.msrb.mxu3 %v4731_v56  ;;  %572 = vmatpush.msrb.mxu1 %v4731_v56 }
  0x2e   :  { %332 = vmatpush.bf16.msrb.mxu2 %v3493_v13  ;;  %483 = vmatpush.msrb.mxu0 %v4798_v24  ;;  %v3421_v13 = vor.u32 %v4131_v11, %v3420_v10  ;;  %v5115_v10 = vld [vmem:[%s6584_s7 + $0x38] sm:$0xff]  ;;  %v5118_v11 = vsel %vm1072_vm3, 1.0, %v6600_v36 }
  0x2f   :  { %445 = vmatpush.msrb.mxu3 %v4749_v1  ;;  %573 = vmatpush.msrb.mxu1 %v4749_v1  ;;  %6654 = vst [vmem:[#allocation11_spill] sm:$0xff] %v5115_v10 }
  0x30   :  { %484 = vmatpush.msrb.mxu0 %v4810_v28  ;;  %566 = vperm.xlu0 %4341, %v563_v50  }
  0x31   :  { %446 = vmatpush.msrb.mxu3 %v4756_v5  ;;  %574 = vmatpush.msrb.mxu1 %v4756_v5 }
  0x32   :  { %333 = vmatpush.bf16.msrb.mxu2 %v3481_v23  ;;  %485 = vmatpush.msrb.mxu0 %v4830_v33  ;;  %v3409_v23 = vor.u32 %v4128_v20, %v3408_v17  ;;  %v1083_v17 = vsub.f32 1.0, %v5118_v11  ;;  %v5136_v20 = vld [vmem:[%s6584_s7 + $0x8] sm:$0xff] }
  0x33   :  { %447 = vmatpush.msrb.mxu3 %v4769_v12  ;;  %575 = vmatpush.msrb.mxu1 %v4769_v12  ;;  %6656 = vst [vmem:[#allocation13_spill] sm:$0xff] %v5136_v20 }
  0x34   :  { %486 = vmatpush.msrb.mxu0 %v4847_v37  ;;  %696 = vperm.xlu1 %4342, %v693_v52   ;;  %v5259_v52 = vperm.slane %v114_v45, 0 }
  0x35   :  { %448 = vmatpush.msrb.mxu3 %v4775_v16  ;;  %576 = vmatpush.msrb.mxu1 %v4775_v16 }
  0x36   :  { %334 = vmatpush.bf16.msrb.mxu2 %v3469_v32  ;;  %487 = vmatpush.msrb.mxu0 %v4866_v44  ;;  %v5011_v32 = vld [vmem:[%s6584_s7 + $0x128] sm:$0xff]  ;;  %6661 = vst [vmem:[#allocation18_spill] sm:$0xff] %v5259_v52 }
  0x37   :  { %449 = vmatpush.msrb.mxu3 %v4790_v22  ;;  %577 = vmatpush.msrb.mxu1 %v4790_v22 }
  0x38   :  { %488 = vmatpush.msrb.mxu0 %v4880_v48  ;;  %947 = vperm.xlu0 %4341, %v3505_v0  }
  0x39   :  { %450 = vmatpush.msrb.mxu3 %v4803_v25  ;;  %578 = vmatpush.msrb.mxu1 %v4803_v25 }
  0x3a   :  { %326 = vmatmul.bf16.gmra.mxu3 %v4837_v35  ;;  %335 = vmatpush.bf16.msrb.mxu2 %v3457_v43  ;;  %v5039_v43 = vld [vmem:[%s6584_s7 + $0xf8] sm:$0xff] }
  0x3b   :  { %451 = vmatpush.msrb.mxu3 %v4822_v31  ;;  %489 = vmatpush.msrb.mxu0 %v4899_v58 }
  0x3c   :  { %297 = vmatmul.bf16.gmra.mxu2 %v4837_v35  ;;  %579 = vmatpush.msrb.mxu1 %v4822_v31 }
  0x3d   :  { %452 = vmatpush.msrb.mxu3 %v4835_v34  ;;  %490 = vmatpush.msrb.mxu0 %v4912_v62 }
  0x3e   :  { %336 = vmatpush.bf16.msrb.mxu2 %v3445_v55  ;;  %287 = vmatmul.bf16.gmra.mxu0 %v4914_v63  ;;  %v5071_v55 = vld [vmem:[%s6584_s7 + $0xb0] sm:$0xff] }
  0x3f   :  { %453 = vmatpush.msrb.mxu3 %v4859_v42  ;;  %491 = vmatpush.msrb.mxu0 %v4934_v6 }
  0x40   :  { %316 = vmatmul.bf16.gmra.mxu1 %v4914_v63  ;;  %956 = vperm.xlu1 %4342, %v953_v2  }
  0x41   :  { %454 = vmatpush.msrb.mxu3 %v4873_v47  ;;  %492 = vmatpush.msrb.mxu0 %v4952_v9 }
  0x42   :  { %337 = vmatpush.bf16.msrb.mxu2 %v3433_v4  ;;  %580 = vmatpush.msrb.mxu1 %v4835_v34  ;;  %v5107_v4 = vld [vmem:[%s6584_s7 + $0x50] sm:$0xff] }
  0x43   :  { %455 = vmatpush.msrb.mxu3 %v4891_v53  ;;  %493 = vmatpush.msrb.mxu0 %v4971_v15 }
  0x44   :  { %581 = vmatpush.msrb.mxu1 %v4859_v42  ;;  %1086 = vperm.xlu0 %4341, %v1083_v17  }
  0x45   :  { %456 = vmatpush.msrb.mxu3 %v4904_v61  ;;  %494 = vmatpush.msrb.mxu0 %v4980_v18 }
  0x46   :  { %338 = vmatpush.bf16.msrb.mxu2 %v3421_v13  ;;  %582 = vmatpush.msrb.mxu1 %v4873_v47  ;;  %v5126_v13 = vld [vmem:[%s6584_s7 + $0x20] sm:$0xff] }
  0x47   :  { %457 = vmatpush.msrb.mxu3 %v4925_v3  ;;  %495 = vmatpush.msrb.mxu0 %v5005_v30  ;;  %6655 = vst [vmem:[#allocation12_spill] sm:$0xff] %v5126_v13 }
  0x48   :  { %583 = vmatpush.msrb.mxu1 %v4891_v53 }
  0x49   :  { %458 = vmatpush.msrb.mxu3 %v4939_v7  ;;  %496 = vmatpush.msrb.mxu0 %v5020_v39 }
  0x4a   :  { %339 = vmatpush.bf16.msrb.mxu2 %v3409_v23  ;;  %459 = vmatmul.f32.vlgmr.msrb.gmra.mxu3 %v5000_v29 }
  0x4b   :  { %463 = vmatpush.msra.mxu3 %v4944_v8  ;;  %497 = vmatpush.msrb.mxu0 %v5033_v41 }
  0x4c   :  { %584 = vmatpush.msrb.mxu1 %v4904_v61 }
  0x4d   :  { %464 = vmatpush.msra.mxu3 %v4965_v14  ;;  %340 = vmatmul.bf16.vlgmr.msrb.gmra.mxu2 %v4778_v19  ;;  %v5079_v19 = vld [vmem:[%s6584_s7 + $0x98] sm:$0xff] }
  0x4e   :  { %591 = vmatpush.msra.mxu2 %v4944_v8  ;;  %498 = vmatpush.msrb.mxu0 %v5048_v46 }
  0x4f   :  { %465 = vmatpush.msra.mxu3 %v4988_v21  ;;  %499 = vmatmul.f32.vlgmr.msrb.gmra.mxu0 %v5000_v29 }
  0x50   :  { %592 = vmatpush.msra.mxu2 %v4965_v14  ;;  %701 = vmatpush.msra.mxu0 %v4726_v54 }
  0x51   :  { %466 = vmatpush.msra.mxu3 %v5011_v32  ;;  %585 = vmatpush.msrb.mxu1 %v4925_v3 }
  0x52   :  { %593 = vmatpush.msra.mxu2 %v4988_v21  ;;  %702 = vmatpush.msra.mxu0 %v4731_v56 }
  0x53   :  { %467 = vmatpush.msra.mxu3 %v5026_v40  ;;  %586 = vmatpush.msrb.mxu1 %v4939_v7 }
  0x54   :  { %594 = vmatpush.msra.mxu2 %v5011_v32  ;;  %703 = vmatpush.msra.mxu0 %v4749_v1 }
  0x55   :  { %468 = vmatpush.msra.mxu3 %v5039_v43  ;;  %721 = vmatpush.msra.mxu1 %v4944_v8 }
  0x56   :  { %595 = vmatpush.msra.mxu2 %v5026_v40  ;;  %704 = vmatpush.msra.mxu0 %v4756_v5 }
  0x57   :  { %469 = vmatpush.msra.mxu3 %v5053_v49  ;;  %722 = vmatpush.msra.mxu1 %v4965_v14 }
  0x58   :  { %596 = vmatpush.msra.mxu2 %v5039_v43  ;;  %705 = vmatpush.msra.mxu0 %v4769_v12 }
  0x59   :  { %470 = vmatpush.msra.mxu3 %v5062_v51  ;;  %723 = vmatpush.msra.mxu1 %v4988_v21 }
  0x5a   :  { %597 = vmatpush.msra.mxu2 %v5053_v49  ;;  %706 = vmatpush.msra.mxu0 %v4775_v16 }
  0x5b   :  { %471 = vmatpush.msra.mxu3 %v5071_v55  ;;  %724 = vmatpush.msra.mxu1 %v5011_v32 }
  0x5c   :  { %598 = vmatpush.msra.mxu2 %v5062_v51  ;;  %707 = vmatpush.msra.mxu0 %v4790_v22 }
  0x5d   :  { %472 = vmatpush.msra.mxu3 %v5079_v19  ;;  %345 = vmatmul.bf16.gmra.mxu2 %v4914_v63  ;;  %v5155_v63 = vsel %vm1332_vm4, 1.0, %v6600_v36 }
  0x5e   :  { %599 = vmatpush.msra.mxu2 %v5071_v55  ;;  %725 = vmatpush.msra.mxu1 %v5026_v40 }
  0x5f   :  { %473 = vmatpush.msra.mxu3 %v5088_v59  ;;  %1337 = vperm.xlu0 %4341, %v5155_v63  }
  0x60   :  { %600 = vmatpush.msra.mxu2 %v5079_v19  ;;  %726 = vmatpush.msra.mxu1 %v5039_v43 }
  0x61   :  { %474 = vmatpush.msra.mxu3 %v5096_v60  ;;  %708 = vmatpush.msra.mxu0 %v4803_v25 }
  0x62   :  { %601 = vmatpush.msra.mxu2 %v5088_v59  ;;  %727 = vmatpush.msra.mxu1 %v5053_v49 }
  0x63   :  { %475 = vmatpush.msra.mxu3 %v5107_v4  ;;  %709 = vmatpush.msra.mxu0 %v4822_v31 }
  0x64   :  { %602 = vmatpush.msra.mxu2 %v5096_v60  ;;  %728 = vmatpush.msra.mxu1 %v5062_v51 }
  0x65   :  { %476 = vmatpush.msra.mxu3 %v5115_v10  ;;  %710 = vmatpush.msra.mxu0 %v4835_v34 }
  0x66   :  { %603 = vmatpush.msra.mxu2 %v5107_v4  ;;  %729 = vmatpush.msra.mxu1 %v5071_v55 }
  0x67   :  { %477 = vmatpush.msra.mxu3 %v5126_v13  ;;  %711 = vmatpush.msra.mxu0 %v4859_v42 }
  0x68   :  { %604 = vmatpush.msra.mxu2 %v5115_v10  ;;  %730 = vmatpush.msra.mxu1 %v5079_v19 }
  0x69   :  { %478 = vmatpush.msra.mxu3 %v5136_v20  ;;  %712 = vmatpush.msra.mxu0 %v4873_v47 }
  0x6a   :  { %479 = vmatmul.f32.vlgmr.msra.gmra.mxu3 %v5000_v29  ;;  %605 = vmatpush.msra.mxu2 %v5126_v13 }
  0x6b   :  { %611 = vmatpush.msrb.mxu3 %v4798_v24  ;;  %731 = vmatpush.msra.mxu1 %v5088_v59 }
  0x6c   :  { %606 = vmatpush.msra.mxu2 %v5136_v20  ;;  %713 = vmatpush.msra.mxu0 %v4891_v53 }
  0x6d   :  { %612 = vmatpush.msrb.mxu3 %v4810_v28  ;;  %350 = vmatmul.bf16.gmra.mxu2 %v4733_v57 }
  0x6e   :  { %741 = vmatpush.msrb.mxu2 %v4798_v24  ;;  %732 = vmatpush.msra.mxu1 %v5096_v60 }
  0x6f   :  { %613 = vmatpush.msrb.mxu3 %v4830_v33  ;;  %714 = vmatpush.msra.mxu0 %v4904_v61 }
  0x70   :  { %742 = vmatpush.msrb.mxu2 %v4810_v28  ;;  %733 = vmatpush.msra.mxu1 %v5107_v4 }
  0x71   :  { %614 = vmatpush.msrb.mxu3 %v4847_v37  ;;  %715 = vmatpush.msra.mxu0 %v4925_v3 }
  0x72   :  { %743 = vmatpush.msrb.mxu2 %v4830_v33  ;;  %734 = vmatpush.msra.mxu1 %v5115_v10 }
  0x73   :  { %615 = vmatpush.msrb.mxu3 %v4866_v44  ;;  %716 = vmatpush.msra.mxu0 %v4939_v7 }
  0x74   :  { %744 = vmatpush.msrb.mxu2 %v4847_v37  ;;  %735 = vmatpush.msra.mxu1 %v5126_v13 }
  0x75   :  { %616 = vmatpush.msrb.mxu3 %v4880_v48  ;;  %851 = vmatpush.msrb.mxu0 %v4944_v8 }
  0x76   :  { %745 = vmatpush.msrb.mxu2 %v4866_v44  ;;  %736 = vmatpush.msra.mxu1 %v5136_v20 }
  0x77   :  { %617 = vmatpush.msrb.mxu3 %v4899_v58  ;;  %852 = vmatpush.msrb.mxu0 %v4965_v14 }
  0x78   :  { %746 = vmatpush.msrb.mxu2 %v4880_v48 }
  0x79   :  { %618 = vmatpush.msrb.mxu3 %v4912_v62  ;;  %853 = vmatpush.msrb.mxu0 %v4988_v21 }
  0x7a   :  { %747 = vmatpush.msrb.mxu2 %v4899_v58 }
  0x7b   :  { %619 = vmatpush.msrb.mxu3 %v4934_v6  ;;  %854 = vmatpush.msrb.mxu0 %v5011_v32 }
  0x7c   :  { %748 = vmatpush.msrb.mxu2 %v4912_v62 }
  0x7d   :  { %620 = vmatpush.msrb.mxu3 %v4952_v9  ;;  %355 = vmatmul.bf16.gmra.mxu2 %v4837_v35 }
  0x7e   :  { %749 = vmatpush.msrb.mxu2 %v4934_v6  ;;  %855 = vmatpush.msrb.mxu0 %v5026_v40 }
  0x7f   :  { %621 = vmatpush.msrb.mxu3 %v4971_v15 }
  0x80   :  { %750 = vmatpush.msrb.mxu2 %v4952_v9  ;;  %856 = vmatpush.msrb.mxu0 %v5039_v43 }
  0x81   :  { %622 = vmatpush.msrb.mxu3 %v4980_v18 }
  0x82   :  { %751 = vmatpush.msrb.mxu2 %v4971_v15  ;;  %857 = vmatpush.msrb.mxu0 %v5053_v49 }
  0x83   :  { %623 = vmatpush.msrb.mxu3 %v5005_v30 }
  0x84   :  { %752 = vmatpush.msrb.mxu2 %v4980_v18  ;;  %858 = vmatpush.msrb.mxu0 %v5062_v51 }
  0x85   :  { %624 = vmatpush.msrb.mxu3 %v5020_v39 }
  0x86   :  { %753 = vmatpush.msrb.mxu2 %v5005_v30  ;;  %859 = vmatpush.msrb.mxu0 %v5071_v55 }
  0x87   :  { %625 = vmatpush.msrb.mxu3 %v5033_v41 }
  0x88   :  { %754 = vmatpush.msrb.mxu2 %v5020_v39  ;;  %860 = vmatpush.msrb.mxu0 %v5079_v19 }
  0x89   :  { %626 = vmatpush.msrb.mxu3 %v5048_v46 }
  0x8a   :  { %755 = vmatpush.msrb.mxu2 %v5033_v41  ;;  %861 = vmatpush.msrb.mxu0 %v5088_v59 }
  0x8b   :  { %831 = vmatpush.msra.mxu3 %v4726_v54 }
  0x8c   :  { %756 = vmatpush.msrb.mxu2 %v5048_v46  ;;  %862 = vmatpush.msrb.mxu0 %v5096_v60 }
  0x8d   :  { %832 = vmatpush.msra.mxu3 %v4731_v56 }
  0x8e   :  { %863 = vmatpush.msrb.mxu0 %v5107_v4 }
  0x8f   :  { %833 = vmatpush.msra.mxu3 %v4749_v1 }
  0x90   :  { %864 = vmatpush.msrb.mxu0 %v5115_v10 }
  0x91   :  { %834 = vmatpush.msra.mxu3 %v4756_v5 }
  0x92   :  { %865 = vmatpush.msrb.mxu0 %v5126_v13 }
  0x93   :  { %835 = vmatpush.msra.mxu3 %v4769_v12 }
  0x94   :  { %866 = vmatpush.msrb.mxu0 %v5136_v20 }
  0x95   :  { %836 = vmatpush.msra.mxu3 %v4775_v16 }
  0x97   :  { %837 = vmatpush.msra.mxu3 %v4790_v22 }
  0x99   :  { %838 = vmatpush.msra.mxu3 %v4803_v25 }
  0x9b   :  { %839 = vmatpush.msra.mxu3 %v4822_v31 }
  0x9d   :  { %840 = vmatpush.msra.mxu3 %v4835_v34 }
  0x9f   :  { %841 = vmatpush.msra.mxu3 %v4859_v42 }
  0xa1   :  { %842 = vmatpush.msra.mxu3 %v4873_v47 }
  0xa3   :  { %843 = vmatpush.msra.mxu3 %v4891_v53 }
  0xa5   :  { %844 = vmatpush.msra.mxu3 %v4904_v61 }
  0xa7   :  { %845 = vmatpush.msra.mxu3 %v4925_v3  ;;  %v312_v41 = vpop.f32.mrf.mxu1 }
  0xa9   :  { %846 = vmatpush.msra.mxu3 %v4939_v7  ;;  %v283_v35 = vpop.f32.mrf.mxu0 }
  0xad   :  { %v5248_v57 = vpop.f32.mrf.mxu3 }
  0xae   :  { %6657 = vst [vmem:[#allocation14_spill] sm:$0xff] %v5248_v57 }
  0xaf   :  { %v5250_v23 = vpop.f32.mrf.mxu2 }
  0xb0   :  { %6658 = vst [vmem:[#allocation15_spill] sm:$0xff] %v5250_v23 }
  0xb1   :  { %v5254_v38 = vpop.f32.mrf.mxu0 }
  0xb2   :  { %6660 = vst [vmem:[#allocation17_spill] sm:$0xff] %v5254_v38  ;;  %v433_v38 = vld [vmem:[%s6588_s9] sm:$0x7] }
  0xb3   :  { %v5296_v61 = vperm.slane %v433_v38, 2 }
  0xb5   :  { %v5252_v26 = vpop.f32.mrf.mxu3 }
  0xb6   :  { %6659 = vst [vmem:[#allocation16_spill] sm:$0xff] %v5252_v26 }
  0xb7   :  { %v295_v50 = vpop.f32.mrf.mxu2 }
  0xb8   :  { %v5264_v2 = vadd.f32 %v295_v50, %v5259_v52 }
  0xba   :  { %6663 = vst [vmem:[#allocation20_spill] sm:$0xff] %v5264_v2 }
  0xbb   :  { %v288_v17 = vpop.f32.mrf.mxu0 }
  0xbc   :  { %v5267_v36 = vadd.f32 %v288_v17, %v5259_v52  ;;  %v284_v17 = vadd.f32 %v283_v35, %v5259_v52 }
  0xbd   :  { %v5261_v0 = vpop.f32.mrf.mxu3 }
  0xbe   :  { %6662 = vst [vmem:[#allocation19_spill] sm:$0xff] %v5261_v0  ;;  %v5279_v0 = vperm.slane %v433_v38, 0 }
  0xbf   :  { %6664 = vst [vmem:[#allocation21_spill] sm:$0xff] %v5267_v36  ;;  %v5269_v23 = vpop.f32.mrf.mxu2 }
  0xc0   :  { %6665 = vst [vmem:[#allocation22_spill] sm:$0xff] %v5269_v23 }
  0xc1   :  { %6668 = vst [vmem:[#allocation25_spill] sm:$0xff] %v5279_v0 }
  0xc3   :  { %v290_v57 = vpop.f32.mrf.mxu0 }
  0xc4   :  { %v5277_v20 = vadd.f32 %v290_v57, %v5259_v52  ;;  %v5286_v57 = vperm.slane %v114_v45, 1 }
  0xc5   :  { %v5271_v26 = vpop.f32.mrf.mxu3 }
  0xc6   :  { %6666 = vst [vmem:[#allocation23_spill] sm:$0xff] %v5271_v26 }
  0xc7   :  { %6667 = vst [vmem:[#allocation24_spill] sm:$0xff] %v5277_v20  ;;  %v300_v50 = vpop.f32.mrf.mxu2  ;;  %v5288_v20 = vperm.slane %v433_v38, 1 }
  0xc8   :  { %v5282_v2 = vadd.f32 %v300_v50, %v5259_v52  ;;  %6670 = vst [vmem:[#allocation27_spill] sm:$0xff] %v5286_v57  ;;  %v313_v50 = vadd.f32 %v312_v41, %v5286_v57 }
  0xc9   :  { %6671 = vst [vmem:[#allocation28_spill] sm:$0xff] %v5288_v20 }
  0xca   :  { %6669 = vst [vmem:[#allocation26_spill] sm:$0xff] %v5282_v2 }
  0xcd   :  { %v460_v36 = vpop.f32.mrf.mxu3 }
  0xce   :  { %v461_v23 = vadd.f32 %v460_v36, %v5279_v0 }
  0xd0   :  { %v506_v26 = vadd.f32 %v461_v23, %v284_v17  ;;  %v341_v27 = vpop.f32.mrf.mxu2 }
  0xd2   :  { %v3494_v7 = vmul.f32 -1.442695, %v506_v26 }
  0xd4   :  { %4346 = vpow2.f32 %v3494_v7 }
  0xda   :  { %v4347_v46 = vpop.eup %4346 }
  0xdb   :  { %v510_v13 = vadd.f32 1.0, %v4347_v46 }
  0xdd   :  { %4348 = vrcp.f32 %v510_v13  ;;  %vm516_vm5 = vweird.f32 %v510_v13  ;;  %v522_v7 = vand.u32 2147483648, %v510_v13  ;;  %v520_v17 = vand.u32 2147483647, %v510_v13 }
  0xdf   :  { %vm521_vm10 = vcmp.eq.f32.partialorder %v520_v17, 8.507059e+37 }
  0xe3   :  { %v4349_v3 = vpop.eup %4348 }
  0xe4   :  { %v512_v10 = vmul.f32 %v4349_v3, %v510_v13  ;;  %vm517_vm6 = vweird.f32 %v4349_v3 }
  0xe5   :  { %vm5292_vm7 = vmor %vm516_vm5, %vm517_vm6 }
  0xe6   :  { %v513_v52 = vsub.f32 1.0, %v512_v10  ;;  %v500_v10 = vpop.f32.mrf.mxu0 }
  0xe7   :  { %v501_v38 = vadd.f32 %v500_v10, %v5296_v61 }
  0xe8   :  { %v514_v26 = vmul.f32 %v4349_v3, %v513_v52  ;;  %v6674_v52 = vmov 0.0  }
  0xea   :  { %v515_v46 = vadd.f32 %v4349_v3, %v514_v26 }
  0xec   :  { %v519_v13 = vsel %vm5292_vm7, %v4349_v3, %v515_v46 }
  0xed   :  { %v480_v2 = vpop.f32.mrf.mxu3 }
  0xee   :  { %v481_v35 = vadd.f32 %v480_v2, %v5288_v20  ;;  %v523_v2 = vor.u32 1.1754944e-38, %v522_v7  ;;  %v1343_v7 = vsub.f32 1.0, %v5155_v63 }
  0xf0   :  { %v526_v36 = vadd.f32 %v481_v35, %v313_v50  ;;  %v3511_v50 = vsel %vm1202_vm8, 1.0, %v6674_v52  ;;  %v3502_v35 = vsel %vm812_vm9, 1.0, %v6674_v52  ;;  %v524_v26 = vsel %vm521_vm10, %v523_v2, %v519_v13 }
  0xf1   :  { %1207 = vperm.xlu1 %4342, %v3511_v50   ;;  %817 = vperm.xlu2 %4343, %v3502_v35   ;;  %v823_v20 = vsub.f32 1.0, %v3502_v35  ;;  %v546_v57 = vmul.f32 %v524_v26, %v501_v38  ;;  %v1213_v38 = vsub.f32 1.0, %v3511_v50 }
  0xf2   :  { %v3495_v23 = vmul.f32 -1.442695, %v526_v36 }
  0xf4   :  { %4350 = vpow2.f32 %v3495_v23  ;;  %v5305_v23 = vperm.slane %v114_v45, 2  ;;  %v559_v45 = vpop.permute.xlu0 %558 }
  0xf6   :  { %v342_v52 = vadd.f32 %v341_v27, %v5305_v23 }
  0xf8   :  { %v547_v0 = vadd.f32 %v546_v57, %v342_v52 }
  0xf9   :  { %1346 = vperm.xlu1 %4342, %v1343_v7   ;;  %826 = vperm.xlu2 %4343, %v823_v20  }
  0xfa   :  { %v4351_v41 = vpop.eup %4350 }
  0xfb   :  { %v530_v36 = vadd.f32 1.0, %v4351_v41 }
  0xfc   :  { %v567_v7 = vpop.permute.xlu0 %566 }
  0xfd   :  { %4352 = vrcp.f32 %v530_v36  ;;  %v542_v17 = vand.u32 2147483648, %v530_v36  ;;  %v540_v10 = vand.u32 2147483647, %v530_v36  ;;  %vm536_vm12 = vweird.f32 %v530_v36 }
  0xfe   :  { %4354 = vtanh.f32 %v547_v0 }
  0xff   :  { %v543_v13 = vor.u32 1.1754944e-38, %v542_v17  ;;  %vm541_vm14 = vcmp.eq.f32.partialorder %v540_v10, 8.507059e+37  ;;  %v6692_v17 = vld [vmem:[#allocation18_spill] sm:$0xff]  ;;  %v6693_v10 = vld [vmem:[#allocation17_spill] sm:$0xff] }
 0x101   :  { %1077 = vperm.xlu2 %4343, %v5118_v11  }
 0x103   :  { %v4353_v41 = vpop.eup %4352 }
 0x104   :  { %v532_v3 = vmul.f32 %v4353_v41, %v530_v36  ;;  %vm537_vm11 = vweird.f32 %v4353_v41  ;;  %v4355_v20 = vpop.eup %4354 }
 0x105   :  { %vm538_vm13 = vmor %vm536_vm12, %vm537_vm11 }
 0x106   :  { %v533_v46 = vsub.f32 1.0, %v532_v3  ;;  %v569_v3 = vmul.f32 %v567_v7, %v5000_v29 }
 0x108   :  { %v534_v39 = vmul.f32 %v4353_v41, %v533_v46 }
 0x109   :  { %1216 = vperm.xlu2 %4343, %v1213_v38  }
 0x10a   :  { %v535_v2 = vadd.f32 %v4353_v41, %v534_v39 }
 0x10c   :  { %v539_v63 = vsel %vm538_vm13, %v4353_v41, %v535_v2  ;;  %v6694_v2 = vld [vmem:[#allocation25_spill] sm:$0xff] }
 0x10d   :  { %v544_v27 = vsel %vm541_vm14, %v543_v13, %v539_v63 }
 0x10e   :  { %v549_v35 = vsub.f32 1.0, %v544_v27  ;;  %v551_v52 = vmul.f32 %v544_v27, %v5000_v29 }
 0x110   :  { %v550_v57 = vmul.f32 %v4355_v20, %v549_v35  ;;  %v6695_v20 = vld [vmem:[#allocation27_spill] sm:$0xff] }
 0x112   :  { %v552_v26 = vadd.f32 %v551_v52, %v550_v57  ;;  %v6696_v57 = vld [vmem:[#allocation28_spill] sm:$0xff] }
 0x114   :  { %v5312_v36 = vmul.f32 %v559_v45, %v552_v26  ;;  %v286_v45 = vadd.f32 %v6693_v10, %v6692_v17 }
 0x116   :  { %6675 = vst [vmem:[#allocation29_spill] sm:$0xff] %v5312_v36  ;;  %v5315_v39 = vadd.f32 %v569_v3, %v5312_v36 }
 0x118   :  { %587 = vmatmul.f32.vlgmr.msrb.gmra.mxu1 %v5315_v39  ;;  %607 = vmatmul.f32.vlgmr.msra.gmra.mxu2 %v5315_v39 }
 0x119   :  { %627 = vmatmul.f32.vlgmr.msrb.gmra.mxu3 %v5315_v39  ;;  %871 = vmatpush.msrb.mxu1 %v4798_v24  ;;  %v6683_v24 = vld [vmem:[#allocation6_spill] sm:$0xff] }
 0x11a   :  { %961 = vmatpush.msra.mxu2 %v4726_v54  ;;  %981 = vmatpush.msrb.mxu3 %v4944_v8  ;;  %v6676_v54 = vld [vmem:[#allocation8_spill] sm:$0xff] }
 0x11b   :  { %872 = vmatpush.msrb.mxu1 %v4810_v28  ;;  %v343_v28 = vpop.f32.mrf.mxu2 }
 0x11c   :  { %962 = vmatpush.msra.mxu2 %v4731_v56  ;;  %982 = vmatpush.msrb.mxu3 %v4965_v14  ;;  %v6677_v56 = vld [vmem:[#allocation4_spill] sm:$0xff] }
 0x11d   :  { %873 = vmatpush.msrb.mxu1 %v4830_v33 }
 0x11e   :  { %963 = vmatpush.msra.mxu2 %v4749_v1  ;;  %983 = vmatpush.msrb.mxu3 %v4988_v21  ;;  %v6678_v1 = vld [vmem:[#allocation11_spill] sm:$0xff] }
 0x11f   :  { %874 = vmatpush.msrb.mxu1 %v4847_v37 }
 0x120   :  { %964 = vmatpush.msra.mxu2 %v4756_v5  ;;  %984 = vmatpush.msrb.mxu3 %v5011_v32  ;;  %v6679_v5 = vld [vmem:[#allocation9_spill] sm:$0xff] }
 0x121   :  { %875 = vmatpush.msrb.mxu1 %v4866_v44 }
 0x122   :  { %965 = vmatpush.msra.mxu2 %v4769_v12  ;;  %985 = vmatpush.msrb.mxu3 %v5026_v40  ;;  %v6680_v12 = vld [vmem:[#allocation5_spill] sm:$0xff] }
 0x123   :  { %876 = vmatpush.msrb.mxu1 %v4880_v48 }
 0x124   :  { %966 = vmatpush.msra.mxu2 %v4775_v16  ;;  %986 = vmatpush.msrb.mxu3 %v5039_v43  ;;  %v6681_v16 = vld [vmem:[#allocation12_spill] sm:$0xff] }
 0x125   :  { %877 = vmatpush.msrb.mxu1 %v4899_v58 }
 0x126   :  { %967 = vmatpush.msra.mxu2 %v4790_v22  ;;  %987 = vmatpush.msrb.mxu3 %v5053_v49  ;;  %v6682_v22 = vld [vmem:[#allocation10_spill] sm:$0xff] }
 0x127   :  { %878 = vmatpush.msrb.mxu1 %v4912_v62 }
 0x128   :  { %968 = vmatpush.msra.mxu2 %v4803_v25  ;;  %988 = vmatpush.msrb.mxu3 %v5062_v51  ;;  %v6684_v25 = vld [vmem:[#allocation13_spill] sm:$0xff] }
 0x129   :  { %879 = vmatpush.msrb.mxu1 %v4934_v6 }
 0x12a   :  { %969 = vmatpush.msra.mxu2 %v4822_v31  ;;  %989 = vmatpush.msrb.mxu3 %v5071_v55  ;;  %v5368_v31 = vpop.f32.mrf.mxu2 }
 0x12b   :  { %880 = vmatpush.msrb.mxu1 %v4952_v9  ;;  %6685 = vst [vmem:[#allocation8_spill] sm:$0xff] %v5368_v31 }
 0x12c   :  { %970 = vmatpush.msra.mxu2 %v4835_v34  ;;  %990 = vmatpush.msrb.mxu3 %v5079_v19 }
 0x12d   :  { %881 = vmatpush.msrb.mxu1 %v4971_v15 }
 0x12e   :  { %971 = vmatpush.msra.mxu2 %v4859_v42  ;;  %991 = vmatpush.msrb.mxu3 %v5088_v59 }
 0x12f   :  { %882 = vmatpush.msrb.mxu1 %v4980_v18 }
 0x130   :  { %972 = vmatpush.msra.mxu2 %v4873_v47  ;;  %992 = vmatpush.msrb.mxu3 %v5096_v60  ;;  %v314_v47 = vpop.f32.mrf.mxu1 }
 0x131   :  { %883 = vmatpush.msrb.mxu1 %v5005_v30  ;;  %v315_v38 = vadd.f32 %v314_v47, %v6695_v20 }
 0x132   :  { %973 = vmatpush.msra.mxu2 %v4891_v53  ;;  %993 = vmatpush.msrb.mxu3 %v5107_v4  ;;  %v5370_v34 = vpop.f32.mrf.mxu2 }
 0x133   :  { %884 = vmatpush.msrb.mxu1 %v6676_v54  ;;  %6686 = vst [vmem:[#allocation4_spill] sm:$0xff] %v5370_v34 }
 0x134   :  { %974 = vmatpush.msra.mxu2 %v6677_v56  ;;  %994 = vmatpush.msrb.mxu3 %v6678_v1 }
 0x135   :  { %885 = vmatpush.msrb.mxu1 %v6679_v5 }
 0x136   :  { %975 = vmatpush.msra.mxu2 %v6680_v12  ;;  %995 = vmatpush.msrb.mxu3 %v6681_v16 }
 0x137   :  { %886 = vmatpush.msrb.mxu1 %v6682_v22 }
 0x138   :  { %976 = vmatpush.msra.mxu2 %v6683_v24  ;;  %996 = vmatpush.msrb.mxu3 %v6684_v25  ;;  %v5376_v11 = vpop.f32.mrf.mxu1 }
 0x13a   :  { %v5372_v42 = vpop.f32.mrf.mxu2 }
 0x13b   :  { %6687 = vst [vmem:[#allocation11_spill] sm:$0xff] %v5372_v42  ;;  %v6697_v42 = vld [vmem:[#allocation7_spill] sm:$0xff] }
 0x13c   :  { %vm1462_vm15 = vcmp.gt.s32.totalorder %v6697_v42, 7 }
 0x140   :  { %v5380_v41 = vpop.f32.mrf.mxu1 }
 0x141   :  { %6690 = vst [vmem:[#allocation12_spill] sm:$0xff] %v5380_v41  ;;  %v688_v41 = vpop.permute.xlu1 %687 }
 0x142   :  { %v5374_v29 = vpop.f32.mrf.mxu2 }
 0x143   :  { %6688 = vst [vmem:[#allocation9_spill] sm:$0xff] %v5374_v29 }
 0x14a   :  { %v5378_v50 = vpop.f32.mrf.mxu2 }
 0x14b   :  { %6689 = vst [vmem:[#allocation5_spill] sm:$0xff] %v5378_v50 }
 0x152   :  { %v5382_v0 = vpop.f32.mrf.mxu2 }
 0x153   :  { %6691 = vst [vmem:[#allocation10_spill] sm:$0xff] %v5382_v0 }
 0x195   :  { %v588_v46 = vpop.f32.mrf.mxu1 }
 0x196   :  { %v589_v13 = vadd.f32 %v588_v46, %v6694_v2 }
 0x198   :  { %v635_v63 = vadd.f32 %v589_v13, %v286_v45  ;;  %v6698_v45 = vmov 0.0  }
 0x199   :  { %v5391_v13 = vsel %vm1462_vm15, 1.0, %v6698_v45  ;;  %v344_v45 = vadd.f32 %v343_v28, %v5305_v23 }
 0x19a   :  { %v3497_v27 = vmul.f32 -1.442695, %v635_v63  ;;  %6699 = vst [vmem:[#allocation6_spill] sm:$0xff] %v5391_v13  ;;  %1467 = vperm.xlu2 %4343, %v5391_v13  }
 0x19b   :  { %v608_v35 = vpop.f32.mrf.mxu2 }
 0x19c   :  { %4356 = vpow2.f32 %v3497_v27  ;;  %v609_v52 = vadd.f32 %v608_v35, %v6696_v57 }
 0x19e   :  { %v655_v26 = vadd.f32 %v609_v52, %v315_v38  ;;  %v628_v52 = vpop.f32.mrf.mxu3 }
 0x1a0   :  { %v3498_v7 = vmul.f32 -1.442695, %v655_v26 }
 0x1a2   :  { %v4357_v3 = vpop.eup %4356  ;;  %4358 = vpow2.f32 %v3498_v7 }
 0x1a3   :  { %v639_v50 = vadd.f32 1.0, %v4357_v3  ;;  %v629_v3 = vadd.f32 %v628_v52, %v5296_v61 }
 0x1a5   :  { %4360 = vrcp.f32 %v639_v50  ;;  %v651_v63 = vand.u32 2147483648, %v639_v50  ;;  %v649_v35 = vand.u32 2147483647, %v639_v50  ;;  %vm645_vm1 = vweird.f32 %v639_v50 }
 0x1a7   :  { %v652_v42 = vor.u32 1.1754944e-38, %v651_v63  ;;  %vm650_vm3 = vcmp.eq.f32.partialorder %v649_v35, 8.507059e+37 }
 0x1a8   :  { %v4359_v0 = vpop.eup %4358 }
 0x1a9   :  { %v659_v29 = vadd.f32 1.0, %v4359_v0 }
 0x1ab   :  { %v4361_v10 = vpop.eup %4360  ;;  %4362 = vrcp.f32 %v659_v29  ;;  %v669_v34 = vand.u32 2147483647, %v659_v29  ;;  %vm665_vm5 = vweird.f32 %v659_v29 }
 0x1ac   :  { %v641_v46 = vmul.f32 %v4361_v10, %v639_v50  ;;  %vm646_vm0 = vweird.f32 %v4361_v10 }
 0x1ad   :  { %vm647_vm2 = vmor %vm645_vm1, %vm646_vm0  ;;  %vm670_vm7 = vcmp.eq.f32.partialorder %v669_v34, 8.507059e+37  ;;  %v5428_v34 = vld [vmem:[%s6584_s7 + $0x150] sm:$0xff] }
 0x1ae   :  { %v642_v47 = vsub.f32 1.0, %v641_v46 }
 0x1b0   :  { %v643_v27 = vmul.f32 %v4361_v10, %v642_v47  ;;  %v671_v47 = vand.u32 2147483648, %v659_v29 }
 0x1b1   :  { %v4363_v38 = vpop.eup %4362 }
 0x1b2   :  { %v661_v26 = vmul.f32 %v4363_v38, %v659_v29  ;;  %v644_v7 = vadd.f32 %v4361_v10, %v643_v27  ;;  %vm666_vm4 = vweird.f32 %v4363_v38  ;;  %v672_v50 = vor.u32 1.1754944e-38, %v671_v47 }
 0x1b3   :  { %vm667_vm6 = vmor %vm665_vm5, %vm666_vm4 }
 0x1b4   :  { %v662_v0 = vsub.f32 1.0, %v661_v26  ;;  %v648_v17 = vsel %vm647_vm2, %v4361_v10, %v644_v7 }
 0x1b5   :  { %v653_v13 = vsel %vm650_vm3, %v652_v42, %v648_v17  ;;  %v697_v17 = vpop.permute.xlu1 %696 }
 0x1b6   :  { %v663_v46 = vmul.f32 %v4363_v38, %v662_v0  ;;  %v675_v36 = vmul.f32 %v653_v13, %v629_v3  ;;  %v699_v13 = vmul.f32 %v697_v17, %v5315_v39  ;;  %v818_v17 = vpop.permute.xlu2 %817 }
 0x1b8   :  { %v664_v31 = vadd.f32 %v4363_v38, %v663_v46  ;;  %v676_v27 = vadd.f32 %v675_v36, %v344_v45  ;;  %v5409_v36 = vld [vmem:[%s6584_s7 + $0x178] sm:$0xff] }
 0x1ba   :  { %v668_v63 = vsel %vm667_vm6, %v4363_v38, %v664_v31  ;;  %4364 = vtanh.f32 %v676_v27  ;;  %v5422_v31 = vld [vmem:[%s6584_s7 + $0x160] sm:$0xff] }
 0x1bb   :  { %v673_v52 = vsel %vm670_vm7, %v672_v50, %v668_v63 }
 0x1bc   :  { %v678_v10 = vsub.f32 1.0, %v673_v52  ;;  %v680_v28 = vmul.f32 %v673_v52, %v5315_v39  ;;  %v5415_v39 = vld [vmem:[%s6584_s7 + $0x168] sm:$0xff]  ;;  %v6701_v52 = vld [vmem:[#allocation8_spill] sm:$0xff] }
 0x1c0   :  { %v4365_v35 = vpop.eup %4364 }
 0x1c1   :  { %v679_v26 = vmul.f32 %v4365_v35, %v678_v10  ;;  %v347_v10 = vadd.f32 %v6701_v52, %v5305_v23  ;;  %v5685_v52 = vld [vmem:[%s6584_s7 + $0x68] sm:$0xff] }
 0x1c3   :  { %v681_v7 = vadd.f32 %v680_v28, %v679_v26 }
 0x1c5   :  { %v5398_v42 = vmul.f32 %v688_v41, %v681_v7  ;;  %v5444_v41 = vld [vmem:[%s6584_s7 + $0x120] sm:$0xff] }
 0x1c7   :  { %v5401_v29 = vadd.f32 %v699_v13, %v5398_v42 }
 0x1c9   :  { %717 = vmatmul.f32.vlgmr.msra.gmra.mxu0 %v5401_v29  ;;  %737 = vmatmul.f32.vlgmr.msra.gmra.mxu1 %v5401_v29 }
 0x1ca   :  { %757 = vmatmul.f32.vlgmr.msrb.gmra.mxu2 %v5401_v29  ;;  %1001 = vmatpush.msra.mxu0 %v5409_v36 }
 0x1cb   :  { %1091 = vmatpush.msra.mxu1 %v5415_v39  ;;  %1111 = vmatpush.msrb.mxu2 %v4944_v8  ;;  %v5436_v8 = vld [vmem:[%s6584_s7 + $0x138] sm:$0xff] }
 0x1cc   :  { %1002 = vmatpush.msra.mxu0 %v5422_v31 }
 0x1cd   :  { %1092 = vmatpush.msra.mxu1 %v5428_v34  ;;  %1112 = vmatpush.msrb.mxu2 %v4965_v14 }
 0x1ce   :  { %1003 = vmatpush.msra.mxu0 %v4830_v33  ;;  %v5452_v33 = vld [vmem:[%s6584_s7 + $0x108] sm:$0xff] }
 0x1cf   :  { %1093 = vmatpush.msra.mxu1 %v5436_v8  ;;  %1113 = vmatpush.msrb.mxu2 %v4988_v21 }
 0x1d0   :  { %1004 = vmatpush.msra.mxu0 %v4847_v37  ;;  %v5460_v37 = vld [vmem:[%s6584_s7 + $0xf0] sm:$0xff] }
 0x1d1   :  { %1094 = vmatpush.msra.mxu1 %v5444_v41  ;;  %1114 = vmatpush.msrb.mxu2 %v5011_v32 }
 0x1d2   :  { %1005 = vmatpush.msra.mxu0 %v4866_v44  ;;  %v5468_v44 = vld [vmem:[%s6584_s7 + $0xd8] sm:$0xff] }
 0x1d3   :  { %1095 = vmatpush.msra.mxu1 %v5452_v33  ;;  %1115 = vmatpush.msrb.mxu2 %v5026_v40 }
 0x1d4   :  { %1006 = vmatpush.msra.mxu0 %v4880_v48  ;;  %v5476_v48 = vld [vmem:[%s6584_s7 + $0xc0] sm:$0xff] }
 0x1d5   :  { %1096 = vmatpush.msra.mxu1 %v5460_v37  ;;  %1116 = vmatpush.msrb.mxu2 %v5039_v43 }
 0x1d6   :  { %1007 = vmatpush.msra.mxu0 %v4899_v58  ;;  %v5484_v58 = vld [vmem:[%s6584_s7 + $0xa8] sm:$0xff] }
 0x1d7   :  { %1097 = vmatpush.msra.mxu1 %v5468_v44  ;;  %1117 = vmatpush.msrb.mxu2 %v5053_v49 }
 0x1d8   :  { %1008 = vmatpush.msra.mxu0 %v4912_v62  ;;  %v5492_v62 = vld [vmem:[%s6584_s7 + $0x90] sm:$0xff] }
 0x1d9   :  { %1098 = vmatpush.msra.mxu1 %v5476_v48  ;;  %1118 = vmatpush.msrb.mxu2 %v5062_v51 }
 0x1da   :  { %1009 = vmatpush.msra.mxu0 %v4934_v6  ;;  %v5500_v6 = vld [vmem:[%s6584_s7 + $0x78] sm:$0xff] }
 0x1db   :  { %1099 = vmatpush.msra.mxu1 %v5484_v58  ;;  %1119 = vmatpush.msrb.mxu2 %v5071_v55 }
 0x1dc   :  { %1010 = vmatpush.msra.mxu0 %v4952_v9  ;;  %v5508_v9 = vld [vmem:[%s6584_s7 + $0x60] sm:$0xff] }
 0x1dd   :  { %1100 = vmatpush.msra.mxu1 %v5492_v62  ;;  %1120 = vmatpush.msrb.mxu2 %v5079_v19 }
 0x1de   :  { %1011 = vmatpush.msra.mxu0 %v4971_v15  ;;  %v318_v15 = vadd.f32 %v5376_v11, %v6695_v20 }
 0x1df   :  { %1101 = vmatpush.msra.mxu1 %v5500_v6  ;;  %1121 = vmatpush.msrb.mxu2 %v5088_v59 }
 0x1e0   :  { %1012 = vmatpush.msra.mxu0 %v4980_v18 }
 0x1e1   :  { %1102 = vmatpush.msra.mxu1 %v5508_v9  ;;  %1122 = vmatpush.msrb.mxu2 %v5096_v60 }
 0x1e2   :  { %1013 = vmatpush.msra.mxu0 %v5005_v30  ;;  %v6700_v30 = vld [vmem:[#allocation21_spill] sm:$0xff] }
 0x1e3   :  { %1103 = vmatpush.msra.mxu1 %v4891_v53  ;;  %1123 = vmatpush.msrb.mxu2 %v5107_v4 }
 0x1e4   :  { %1014 = vmatpush.msra.mxu0 %v6676_v54 }
 0x1e5   :  { %1104 = vmatpush.msra.mxu1 %v6677_v56  ;;  %1124 = vmatpush.msrb.mxu2 %v6678_v1 }
 0x1e6   :  { %1015 = vmatpush.msra.mxu0 %v6679_v5 }
 0x1e7   :  { %1105 = vmatpush.msra.mxu1 %v6680_v12  ;;  %1125 = vmatpush.msrb.mxu2 %v6681_v16 }
 0x1e8   :  { %1016 = vmatpush.msra.mxu0 %v6682_v22 }
 0x1e9   :  { %1106 = vmatpush.msra.mxu1 %v6683_v24  ;;  %1126 = vmatpush.msrb.mxu2 %v6684_v25 }
 0x246   :  { %v718_v53 = vpop.f32.mrf.mxu0  ;;  %v738_v14 = vpop.f32.mrf.mxu1 }
 0x247   :  { %v719_v18 = vadd.f32 %v718_v53, %v6694_v2  ;;  %v739_v21 = vadd.f32 %v738_v14, %v6696_v57 }
 0x249   :  { %v765_v32 = vadd.f32 %v719_v18, %v6700_v30  ;;  %v785_v40 = vadd.f32 %v739_v21, %v318_v15 }
 0x24b   :  { %v3500_v43 = vmul.f32 -1.442695, %v765_v32  ;;  %v3501_v49 = vmul.f32 -1.442695, %v785_v40  ;;  %v827_v32 = vpop.permute.xlu2 %826 }
 0x24d   :  { %4366 = vpow2.f32 %v3500_v43  ;;  %v758_v3 = vpop.f32.mrf.mxu2  ;;  %v829_v43 = vmul.f32 %v827_v32, %v5401_v29  ;;  %v6709_v32 = vld [vmem:[#allocation24_spill] sm:$0xff] }
 0x24e   :  { %4368 = vpow2.f32 %v3501_v49  ;;  %v759_v47 = vadd.f32 %v758_v3, %v5296_v61  ;;  %v5639_v3 = vld [vmem:[%s6584_s7 + $0xb8] sm:$0xff] }
 0x253   :  { %v4367_v51 = vpop.eup %4366 }
 0x254   :  { %v4369_v55 = vpop.eup %4368  ;;  %v769_v19 = vadd.f32 1.0, %v4367_v51 }
 0x255   :  { %v789_v59 = vadd.f32 1.0, %v4369_v55  ;;  %v5547_v55 = vld [vmem:[%s6584_s7 + $0x170] sm:$0xff] }
 0x256   :  { %4370 = vrcp.f32 %v769_v19  ;;  %v781_v24 = vand.u32 2147483648, %v769_v19  ;;  %v779_v38 = vand.u32 2147483647, %v769_v19  ;;  %vm775_vm9 = vweird.f32 %v769_v19 }
 0x257   :  { %4372 = vrcp.f32 %v789_v59  ;;  %v801_v35 = vand.u32 2147483648, %v789_v59  ;;  %vm795_vm13 = vweird.f32 %v789_v59  ;;  %v799_v28 = vand.u32 2147483647, %v789_v59 }
 0x258   :  { %v782_v46 = vor.u32 1.1754944e-38, %v781_v24  ;;  %vm780_vm11 = vcmp.eq.f32.partialorder %v779_v38, 8.507059e+37  ;;  %v5613_v24 = vld [vmem:[%s6584_s7 + $0xe8] sm:$0xff]  ;;  %v5626_v38 = vld [vmem:[%s6584_s7 + $0xd0] sm:$0xff] }
 0x259   :  { %v802_v53 = vor.u32 1.1754944e-38, %v801_v35  ;;  %vm800_vm15 = vcmp.eq.f32.partialorder %v799_v28, 8.507059e+37  ;;  %v5697_v35 = vld [vmem:[%s6584_s7 + $0x48] sm:$0xff]  ;;  %v5710_v28 = vld [vmem:[%s6584_s7 + $0x30] sm:$0xff] }
 0x25a   :  { %6703 = vst [vmem:[#allocation17_spill] sm:$0xff] %v5710_v28 }
 0x25c   :  { %v4371_v60 = vpop.eup %4370 }
 0x25d   :  { %v4373_v54 = vpop.eup %4372  ;;  %v771_v56 = vmul.f32 %v4371_v60, %v769_v19  ;;  %vm776_vm8 = vweird.f32 %v4371_v60  ;;  %v5561_v19 = vld [vmem:[%s6584_s7 + $0x148] sm:$0xff] }
 0x25e   :  { %v791_v5 = vmul.f32 %v4373_v54, %v789_v59  ;;  %vm777_vm10 = vmor %vm775_vm9, %vm776_vm8  ;;  %vm796_vm12 = vweird.f32 %v4373_v54  ;;  %v5568_v59 = vld [vmem:[%s6584_s7 + $0x140] sm:$0xff]  ;;  %vm1491_vm8 = vcmask 1047556  }
 0x25f   :  { %v772_v12 = vsub.f32 1.0, %v771_v56  ;;  %vm797_vm14 = vmor %vm795_vm13, %vm796_vm12  ;;  %v5587_v56 = vld [vmem:[%s6584_s7 + $0x118] sm:$0xff] }
 0x260   :  { %v792_v22 = vsub.f32 1.0, %v791_v5  ;;  %v5594_v5 = vld [vmem:[%s6584_s7 + $0x110] sm:$0xff] }
 0x261   :  { %v773_v11 = vmul.f32 %v4371_v60, %v772_v12  ;;  %v5600_v12 = vld [vmem:[%s6584_s7 + $0x100] sm:$0xff] }
 0x262   :  { %v793_v0 = vmul.f32 %v4373_v54, %v792_v22  ;;  %v5607_v22 = vld [vmem:[%s6584_s7 + $0xf8] sm:$0xff] }
 0x263   :  { %v774_v45 = vadd.f32 %v4371_v60, %v773_v11  ;;  %v5620_v11 = vld [vmem:[%s6584_s7 + $0xe0] sm:$0xff] }
 0x264   :  { %v794_v63 = vadd.f32 %v4373_v54, %v793_v0  ;;  %v5633_v0 = vld [vmem:[%s6584_s7 + $0xc8] sm:$0xff] }
 0x265   :  { %v778_v27 = vsel %vm777_vm10, %v4371_v60, %v774_v45  ;;  %v5574_v60 = vld [vmem:[%s6584_s7 + $0x130] sm:$0xff] }
 0x266   :  { %v783_v50 = vsel %vm780_vm11, %v782_v46, %v778_v27  ;;  %v798_v13 = vsel %vm797_vm14, %v4373_v54, %v794_v63  ;;  %v5581_v54 = vld [vmem:[%s6584_s7 + $0x128] sm:$0xff]  ;;  %v5646_v45 = vld [vmem:[%s6584_s7 + $0xb0] sm:$0xff]  ;;  %v5652_v46 = vld [vmem:[%s6584_s7 + $0xa0] sm:$0xff] }
 0x267   :  { %v805_v26 = vmul.f32 %v783_v50, %v759_v47  ;;  %v803_v14 = vsel %vm800_vm15, %v802_v53, %v798_v13  ;;  %v5659_v47 = vld [vmem:[%s6584_s7 + $0x98] sm:$0xff]  ;;  %v5665_v27 = vld [vmem:[%s6584_s7 + $0x88] sm:$0xff]  ;;  %v5672_v50 = vld [vmem:[%s6584_s7 + $0x80] sm:$0xff] }
 0x268   :  { %v808_v15 = vsub.f32 1.0, %v803_v14  ;;  %v810_v30 = vmul.f32 %v803_v14, %v5401_v29  ;;  %v5555_v29 = vld [vmem:[%s6584_s7 + $0x158] sm:$0xff]  ;;  %v5678_v63 = vld [vmem:[%s6584_s7 + $0x70] sm:$0xff]  ;;  %v6708_v53 = vld [vmem:[#allocation12_spill] sm:$0xff] }
 0x269   :  { %v806_v7 = vadd.f32 %v805_v26, %v347_v10  ;;  %v5691_v10 = vld [vmem:[%s6584_s7 + $0x58] sm:$0xff]  ;;  %v5704_v26 = vld [vmem:[%s6584_s7 + $0x40] sm:$0xff] }
 0x26a   :  { %6702 = vst [vmem:[#allocation13_spill] sm:$0xff] %v5704_v26 }
 0x26b   :  { %4374 = vtanh.f32 %v806_v7  ;;  %v5736_v7 = vld [vmem:[%s6584_s7] sm:$0xff] }
 0x26c   :  { %6707 = vst [vmem:[#allocation30_spill] sm:$0xff] %v5736_v7 }
 0x271   :  { %v4375_v18 = vpop.eup %4374 }
 0x272   :  { %v809_v21 = vmul.f32 %v4375_v18, %v808_v15 }
 0x274   :  { %v811_v40 = vadd.f32 %v810_v30, %v809_v21 }
 0x276   :  { %v5534_v49 = vmul.f32 %v818_v17, %v811_v40  ;;  %v5723_v17 = vld [vmem:[%s6584_s7 + $0x18] sm:$0xff] }
 0x277   :  { %6705 = vst [vmem:[#allocation21_spill] sm:$0xff] %v5723_v17 }
 0x278   :  { %v5537_v51 = vadd.f32 %v829_v43, %v5534_v49 }
 0x27a   :  { %847 = vmatmul.f32.vlgmr.msra.gmra.mxu3 %v5537_v51  ;;  %867 = vmatmul.f32.vlgmr.msrb.gmra.mxu0 %v5537_v51 }
 0x27b   :  { %887 = vmatmul.f32.vlgmr.msrb.gmra.mxu1 %v5537_v51  ;;  %1131 = vmatpush.msra.mxu3 %v5409_v36 }
 0x27c   :  { %1221 = vmatpush.msrb.mxu0 %v5415_v39  ;;  %1241 = vmatpush.msrb.mxu1 %v5547_v55 }
 0x27d   :  { %1132 = vmatpush.msra.mxu3 %v5422_v31 }
 0x27e   :  { %1222 = vmatpush.msrb.mxu0 %v5428_v34  ;;  %1242 = vmatpush.msrb.mxu1 %v5555_v29 }
 0x27f   :  { %1133 = vmatpush.msra.mxu3 %v5561_v19 }
 0x280   :  { %1223 = vmatpush.msrb.mxu0 %v5436_v8  ;;  %1243 = vmatpush.msrb.mxu1 %v5568_v59 }
 0x281   :  { %1134 = vmatpush.msra.mxu3 %v5574_v60 }
 0x282   :  { %1224 = vmatpush.msrb.mxu0 %v5444_v41  ;;  %1244 = vmatpush.msrb.mxu1 %v5581_v54 }
 0x283   :  { %1135 = vmatpush.msra.mxu3 %v5587_v56 }
 0x284   :  { %1225 = vmatpush.msrb.mxu0 %v5452_v33  ;;  %1245 = vmatpush.msrb.mxu1 %v5594_v5 }
 0x285   :  { %1136 = vmatpush.msra.mxu3 %v5600_v12 }
 0x286   :  { %1226 = vmatpush.msrb.mxu0 %v5460_v37  ;;  %1246 = vmatpush.msrb.mxu1 %v5607_v22 }
 0x287   :  { %1137 = vmatpush.msra.mxu3 %v5613_v24 }
 0x288   :  { %1227 = vmatpush.msrb.mxu0 %v5468_v44  ;;  %1247 = vmatpush.msrb.mxu1 %v5620_v11 }
 0x289   :  { %1138 = vmatpush.msra.mxu3 %v5626_v38 }
 0x28a   :  { %1228 = vmatpush.msrb.mxu0 %v5476_v48  ;;  %1248 = vmatpush.msrb.mxu1 %v5633_v0 }
 0x28b   :  { %1139 = vmatpush.msra.mxu3 %v5639_v3 }
 0x28c   :  { %1229 = vmatpush.msrb.mxu0 %v5484_v58  ;;  %1249 = vmatpush.msrb.mxu1 %v5646_v45 }
 0x28d   :  { %1140 = vmatpush.msra.mxu3 %v5652_v46 }
 0x28e   :  { %1230 = vmatpush.msrb.mxu0 %v5492_v62  ;;  %1250 = vmatpush.msrb.mxu1 %v5659_v47 }
 0x28f   :  { %1141 = vmatpush.msra.mxu3 %v5665_v27 }
 0x290   :  { %1231 = vmatpush.msrb.mxu0 %v5500_v6  ;;  %1251 = vmatpush.msrb.mxu1 %v5672_v50 }
 0x291   :  { %1142 = vmatpush.msra.mxu3 %v5678_v63 }
 0x292   :  { %1232 = vmatpush.msrb.mxu0 %v5508_v9  ;;  %1252 = vmatpush.msrb.mxu1 %v5685_v52 }
 0x293   :  { %1143 = vmatpush.msra.mxu3 %v5691_v10 }
 0x294   :  { %1233 = vmatpush.msrb.mxu0 %v5697_v35  ;;  %1253 = vmatpush.msrb.mxu1 %v5107_v4  ;;  %v5717_v4 = vld [vmem:[%s6584_s7 + $0x28] sm:$0xff] }
 0x295   :  { %1144 = vmatpush.msra.mxu3 %v5704_v26  ;;  %6704 = vst [vmem:[#allocation7_spill] sm:$0xff] %v5717_v4 }
 0x296   :  { %1234 = vmatpush.msrb.mxu0 %v5710_v28  ;;  %1254 = vmatpush.msrb.mxu1 %v6678_v1  ;;  %v5730_v1 = vld [vmem:[%s6584_s7 + $0x10] sm:$0xff] }
 0x297   :  { %1145 = vmatpush.msra.mxu3 %v5717_v4  ;;  %6706 = vst [vmem:[#allocation8_spill] sm:$0xff] %v5730_v1 }
 0x298   :  { %1235 = vmatpush.msrb.mxu0 %v5723_v17  ;;  %1255 = vmatpush.msrb.mxu1 %v6681_v16  ;;  %v320_v16 = vadd.f32 %v6708_v53, %v6695_v20 }
 0x299   :  { %1146 = vmatpush.msra.mxu3 %v5730_v1 }
 0x29a   :  { %1236 = vmatpush.msrb.mxu0 %v5736_v7  ;;  %1256 = vmatpush.msrb.mxu1 %v6684_v25 }
 0x2f7   :  { %v868_v13 = vpop.f32.mrf.mxu0 }
 0x2f8   :  { %v869_v14 = vadd.f32 %v868_v13, %v6696_v57 }
 0x2fa   :  { %v915_v15 = vadd.f32 %v869_v14, %v320_v16 }
 0x2fc   :  { %v3504_v18 = vmul.f32 -1.442695, %v915_v15 }
 0x2fd   :  { %v848_v21 = vpop.f32.mrf.mxu3 }
 0x2fe   :  { %4376 = vpow2.f32 %v3504_v18  ;;  %v849_v30 = vadd.f32 %v848_v21, %v6694_v2 }
 0x300   :  { %v895_v40 = vadd.f32 %v849_v30, %v6709_v32  ;;  %v888_v30 = vpop.f32.mrf.mxu1 }
 0x302   :  { %v3503_v43 = vmul.f32 -1.442695, %v895_v40  ;;  %v889_v40 = vadd.f32 %v888_v30, %v5296_v61  ;;  %v4540_v30 = vmov 1983009808  }
 0x304   :  { %v4377_v1 = vpop.eup %4376  ;;  %4378 = vpow2.f32 %v3503_v43 }
 0x305   :  { %v919_v7 = vadd.f32 1.0, %v4377_v1 }
 0x307   :  { %4380 = vrcp.f32 %v919_v7  ;;  %v931_v28 = vand.u32 2147483648, %v919_v7  ;;  %vm925_vm5 = vweird.f32 %v919_v7  ;;  %v929_v26 = vand.u32 2147483647, %v919_v7 }
 0x309   :  { %vm930_vm7 = vcmp.eq.f32.partialorder %v929_v26, 8.507059e+37 }
 0x30a   :  { %v4379_v25 = vpop.eup %4378 }
 0x30b   :  { %v899_v17 = vadd.f32 1.0, %v4379_v25 }
 0x30d   :  { %4382 = vrcp.f32 %v899_v17  ;;  %v4381_v4 = vpop.eup %4380  ;;  %v911_v15 = vand.u32 2147483648, %v899_v17  ;;  %v909_v21 = vand.u32 2147483647, %v899_v17  ;;  %vm905_vm1 = vweird.f32 %v899_v17 }
 0x30e   :  { %v921_v53 = vmul.f32 %v4381_v4, %v919_v7  ;;  %vm926_vm4 = vweird.f32 %v4381_v4 }
 0x30f   :  { %v912_v1 = vor.u32 1.1754944e-38, %v911_v15  ;;  %vm910_vm3 = vcmp.eq.f32.partialorder %v909_v21, 8.507059e+37  ;;  %vm927_vm6 = vmor %vm925_vm5, %vm926_vm4 }
 0x310   :  { %v922_v16 = vsub.f32 1.0, %v921_v53  ;;  %v6710_v53 = vld [vmem:[#allocation4_spill] sm:$0xff] }
 0x312   :  { %v923_v57 = vmul.f32 %v4381_v4, %v922_v16 }
 0x313   :  { %v4383_v20 = vpop.eup %4382 }
 0x314   :  { %v901_v13 = vmul.f32 %v4383_v20, %v899_v17  ;;  %vm906_vm0 = vweird.f32 %v4383_v20  ;;  %v924_v25 = vadd.f32 %v4381_v4, %v923_v57  ;;  %v932_v17 = vor.u32 1.1754944e-38, %v931_v28 }
 0x315   :  { %vm907_vm2 = vmor %vm905_vm1, %vm906_vm0  ;;  %v1490_v57 = vrot.slane %v5534_v49, 4 }
 0x316   :  { %v902_v14 = vsub.f32 1.0, %v901_v13  ;;  %v349_v13 = vadd.f32 %v6710_v53, %v5305_v23 }
 0x318   :  { %v903_v18 = vmul.f32 %v4383_v20, %v902_v14 }
 0x31a   :  { %v904_v32 = vadd.f32 %v4383_v20, %v903_v18  ;;  %v928_v18 = vsel %vm927_vm6, %v4381_v4, %v924_v25  ;;  %v957_v25 = vpop.permute.xlu1 %956 }
 0x31b   :  { %v933_v15 = vsel %vm930_vm7, %v932_v17, %v928_v18  ;;  %v959_v18 = vmul.f32 %v957_v25, %v5537_v51 }
 0x31c   :  { %v908_v43 = vsel %vm907_vm2, %v4383_v20, %v904_v32  ;;  %v1496_v20 = vunpack.c.l.s4 %v4540_v30  ;;  %v938_v21 = vsub.f32 1.0, %v933_v15  ;;  %v6711_v32 = vld [vmem:[#allocation29_spill] sm:$0xff]  ;;  %v940_v7 = vmul.f32 %v933_v15, %v5537_v51 }
 0x31d   :  { %v913_v2 = vsel %vm910_vm3, %v912_v1, %v908_v43  ;;  %v1493_v1 = vrot.slane %v6711_v32, 4  ;;  %v1492_v26 = vsel %vm1491_vm8, %v1490_v57, %v6711_v32 }
 0x31e   :  { %v935_v14 = vmul.f32 %v913_v2, %v889_v40  ;;  %v5750_v53 = vunpack.c.0.s8 %v1496_v20  ;;  %v948_v40 = vpop.permute.xlu0 %947 }
 0x31f   :  { %v1494_v28 = vsel %vm1491_vm8, %v5534_v49, %v1493_v1 }
 0x320   :  { %v936_v16 = vadd.f32 %v935_v14, %v349_v13  ;;  %v1502_v13 = vperm.slane %v1494_v28, %v5750_v53  ;;  %v1505_v14 = vrot.slane %v5398_v42, 4  ;;  %v1498_v17 = vperm.slane %v1492_v26, %v5750_v53 }
 0x322   :  { %4384 = vtanh.f32 %v936_v16  ;;  %v1541_v32 = vrot.slane %v1498_v17, 4 }
 0x328   :  { %v4385_v43 = vpop.eup %4384 }
 0x329   :  { %v939_v2 = vmul.f32 %v4385_v43, %v938_v21  ;;  %v1553_v21 = vrot.slane %v1502_v13, 4 }
 0x32b   :  { %v941_v4 = vadd.f32 %v940_v7, %v939_v2 }
 0x32d   :  { %v950_v16 = vmul.f32 %v948_v40, %v941_v4 }
 0x32f   :  { %v5761_v30 = vadd.f32 %v959_v18, %v950_v16  ;;  %v1503_v15 = vrot.slane %v950_v16, 4  ;;  %v1506_v49 = vsel %vm1491_vm8, %v950_v16, %v1505_v14 }
 0x330   :  { %v1514_v20 = vperm.slane %v1506_v49, %v5750_v53 }
 0x331   :  { %977 = vmatmul.f32.vlgmr.msra.gmra.mxu2 %v5761_v30  ;;  %997 = vmatmul.f32.vlgmr.msrb.gmra.mxu3 %v5761_v30  ;;  %v1504_v57 = vsel %vm1491_vm8, %v1503_v15, %v5398_v42 }
 0x332   :  { %1017 = vmatmul.f32.vlgmr.msra.gmra.mxu0 %v5761_v30  ;;  %1261 = vmatpush.msra.mxu2 %v5409_v36  ;;  %v1510_v51 = vperm.slane %v1504_v57, %v5750_v53  ;;  %v1551_v1 = vrot.slane %v1514_v20, 4  ;;  %v5773_v43 = vsel %vm1491_vm8, %v1514_v20, %v1553_v21 }
 0x333   :  { %1351 = vmatpush.msrb.mxu3 %v5415_v39  ;;  %1371 = vmatpush.msra.mxu0 %v5547_v55  ;;  %v4534_v39 = vld [vmem:[%s6584_s7 + $0x50] sm:$0xff]  ;;  %v6718_v55 = vld [vmem:[#allocation27_spill] sm:$0xff] }
 0x334   :  { %1262 = vmatpush.msra.mxu2 %v5422_v31  ;;  %v1539_v2 = vrot.slane %v1510_v51, 4  ;;  %v5779_v42 = vsel %vm1491_vm8, %v1510_v51, %v1541_v32  ;;  %v5782_v7 = vsel %vm1491_vm8, %v1551_v1, %v1502_v13 }
 0x335   :  { %1352 = vmatpush.msrb.mxu3 %v5428_v34  ;;  %1372 = vmatpush.msra.mxu0 %v5555_v29  ;;  %v6712_v34 = vld [vmem:[#allocation13_spill] sm:$0xff]  ;;  %v6719_v29 = vld [vmem:[#allocation14_spill] sm:$0xff] }
 0x336   :  { %1263 = vmatpush.msra.mxu2 %v5561_v19  ;;  %v5788_v28 = vsel %vm1491_vm8, %v1539_v2, %v1498_v17 }
 0x337   :  { %1353 = vmatpush.msrb.mxu3 %v5436_v8  ;;  %1373 = vmatpush.msra.mxu0 %v5568_v59  ;;  %v6713_v8 = vld [vmem:[#allocation17_spill] sm:$0xff]  ;;  %v323_v59 = vadd.f32 %v6719_v29, %v6718_v55 }
 0x338   :  { %1264 = vmatpush.msra.mxu2 %v5574_v60 }
 0x339   :  { %1354 = vmatpush.msrb.mxu3 %v5444_v41  ;;  %1374 = vmatpush.msra.mxu0 %v5581_v54  ;;  %v4535_v41 = vld [vmem:[%s6584_s7 + $0x38] sm:$0xff]  ;;  %v6720_v54 = vld [vmem:[#allocation18_spill] sm:$0xff] }
 0x33a   :  { %1265 = vmatpush.msra.mxu2 %v5587_v56 }
 0x33b   :  { %1355 = vmatpush.msrb.mxu3 %v5452_v33  ;;  %1375 = vmatpush.msra.mxu0 %v5594_v5  ;;  %v6714_v33 = vld [vmem:[#allocation7_spill] sm:$0xff] }
 0x33c   :  { %1266 = vmatpush.msra.mxu2 %v5600_v12  ;;  %v6721_v5 = vld [vmem:[#allocation15_spill] sm:$0xff] }
 0x33d   :  { %1356 = vmatpush.msrb.mxu3 %v5460_v37  ;;  %1376 = vmatpush.msra.mxu0 %v5607_v22  ;;  %v6715_v37 = vld [vmem:[#allocation21_spill] sm:$0xff]  ;;  %v294_v22 = vadd.f32 %v6721_v5, %v6720_v54 }
 0x33e   :  { %1267 = vmatpush.msra.mxu2 %v5613_v24 }
 0x33f   :  { %1357 = vmatpush.msrb.mxu3 %v5468_v44  ;;  %1377 = vmatpush.msra.mxu0 %v5620_v11  ;;  %v4536_v44 = vld [vmem:[%s6584_s7 + $0x20] sm:$0xff]  ;;  %v6722_v11 = vld [vmem:[#allocation25_spill] sm:$0xff] }
 0x340   :  { %1268 = vmatpush.msra.mxu2 %v5626_v38 }
 0x341   :  { %1358 = vmatpush.msrb.mxu3 %v5476_v48  ;;  %1378 = vmatpush.msra.mxu0 %v5633_v0  ;;  %v6716_v48 = vld [vmem:[#allocation8_spill] sm:$0xff] }
 0x342   :  { %1269 = vmatpush.msra.mxu2 %v5639_v3 }
 0x343   :  { %1359 = vmatpush.msrb.mxu3 %v5484_v58  ;;  %1379 = vmatpush.msra.mxu0 %v5646_v45  ;;  %v6717_v58 = vld [vmem:[#allocation30_spill] sm:$0xff]  ;;  %v6723_v45 = vld [vmem:[#allocation28_spill] sm:$0xff] }
 0x344   :  { %1270 = vmatpush.msra.mxu2 %v5652_v46 }
 0x345   :  { %1360 = vmatpush.msrb.mxu3 %v5492_v62  ;;  %1380 = vmatpush.msra.mxu0 %v5659_v47  ;;  %v4537_v62 = vld [vmem:[%s6584_s7 + $0x8] sm:$0xff] }
 0x346   :  { %1271 = vmatpush.msra.mxu2 %v5665_v27 }
 0x347   :  { %1361 = vmatpush.msrb.mxu3 %v5500_v6  ;;  %1381 = vmatpush.msra.mxu0 %v5672_v50 }
 0x348   :  { %1272 = vmatpush.msra.mxu2 %v5678_v63 }
 0x349   :  { %1362 = vmatpush.msrb.mxu3 %v5508_v9  ;;  %1382 = vmatpush.msra.mxu0 %v5685_v52 }
 0x34a   :  { %1273 = vmatpush.msra.mxu2 %v5691_v10 }
 0x34b   :  { %1363 = vmatpush.msrb.mxu3 %v5697_v35  ;;  %1383 = vmatpush.msra.mxu0 %v4534_v39 }
 0x34c   :  { %1274 = vmatpush.msra.mxu2 %v6712_v34 }
 0x34d   :  { %1364 = vmatpush.msrb.mxu3 %v6713_v8  ;;  %1384 = vmatpush.msra.mxu0 %v4535_v41 }
 0x34e   :  { %1275 = vmatpush.msra.mxu2 %v6714_v33 }
 0x34f   :  { %1365 = vmatpush.msrb.mxu3 %v6715_v37  ;;  %1385 = vmatpush.msra.mxu0 %v4536_v44  ;;  %v6724_v44 = vld [vmem:[#allocation11_spill] sm:$0xff] }
 0x350   :  { %1276 = vmatpush.msra.mxu2 %v6716_v48 }
 0x351   :  { %1366 = vmatpush.msrb.mxu3 %v6717_v58  ;;  %1386 = vmatpush.msra.mxu0 %v4537_v62  ;;  %v352_v58 = vadd.f32 %v6724_v44, %v5305_v23 }
 0x3af   :  { %v1018_v51 = vpop.f32.mrf.mxu0 }
 0x3b0   :  { %v1019_v39 = vadd.f32 %v1018_v51, %v5296_v61 }
 0x3b4   :  { %v978_v6 = vpop.f32.mrf.mxu2  ;;  %v998_v9 = vpop.f32.mrf.mxu3 }
 0x3b5   :  { %v979_v0 = vadd.f32 %v978_v6, %v6722_v11  ;;  %v999_v47 = vadd.f32 %v998_v9, %v6723_v45 }
 0x3b7   :  { %v1025_v50 = vadd.f32 %v979_v0, %v294_v22  ;;  %v1045_v52 = vadd.f32 %v999_v47, %v323_v59 }
 0x3b9   :  { %v3506_v35 = vmul.f32 -1.442695, %v1025_v50  ;;  %v3507_v4 = vmul.f32 -1.442695, %v1045_v52 }
 0x3bb   :  { %4386 = vpow2.f32 %v3506_v35 }
 0x3bc   :  { %4388 = vpow2.f32 %v3507_v4  ;;  %v1087_v4 = vpop.permute.xlu0 %1086 }
 0x3c1   :  { %v4387_v26 = vpop.eup %4386 }
 0x3c2   :  { %v4389_v40 = vpop.eup %4388  ;;  %v1029_v25 = vadd.f32 1.0, %v4387_v26  ;;  %v1078_v26 = vpop.permute.xlu2 %1077 }
 0x3c3   :  { %v1049_v13 = vadd.f32 1.0, %v4389_v40 }
 0x3c4   :  { %4390 = vrcp.f32 %v1029_v25  ;;  %v1041_v49 = vand.u32 2147483648, %v1029_v25  ;;  %v1039_v57 = vand.u32 2147483647, %v1029_v25  ;;  %vm1035_vm10 = vweird.f32 %v1029_v25 }
 0x3c5   :  { %4392 = vrcp.f32 %v1049_v13  ;;  %v1061_v6 = vand.u32 2147483648, %v1049_v13  ;;  %vm1055_vm14 = vweird.f32 %v1049_v13  ;;  %v1059_v9 = vand.u32 2147483647, %v1049_v13 }
 0x3c6   :  { %v1042_v2 = vor.u32 1.1754944e-38, %v1041_v49  ;;  %vm1040_vm12 = vcmp.eq.f32.partialorder %v1039_v57, 8.507059e+37 }
 0x3c7   :  { %v1062_v5 = vor.u32 1.1754944e-38, %v1061_v6  ;;  %vm1060_vm0 = vcmp.eq.f32.partialorder %v1059_v9, 8.507059e+37 }
 0x3ca   :  { %v4391_v14 = vpop.eup %4390 }
 0x3cb   :  { %v4393_v16 = vpop.eup %4392  ;;  %v1031_v18 = vmul.f32 %v4391_v14, %v1029_v25  ;;  %vm1036_vm9 = vweird.f32 %v4391_v14  ;;  %v1089_v25 = vmul.f32 %v1087_v4, %v5761_v30 }
 0x3cc   :  { %v1051_v17 = vmul.f32 %v4393_v16, %v1049_v13  ;;  %vm1037_vm11 = vmor %vm1035_vm10, %vm1036_vm9  ;;  %vm1056_vm13 = vweird.f32 %v4393_v16 }
 0x3cd   :  { %v1032_v15 = vsub.f32 1.0, %v1031_v18  ;;  %vm1057_vm15 = vmor %vm1055_vm14, %vm1056_vm13 }
 0x3ce   :  { %v1052_v20 = vsub.f32 1.0, %v1051_v17 }
 0x3cf   :  { %v1033_v21 = vmul.f32 %v4391_v14, %v1032_v15 }
 0x3d0   :  { %v1053_v32 = vmul.f32 %v4393_v16, %v1052_v20 }
 0x3d1   :  { %v1034_v1 = vadd.f32 %v4391_v14, %v1033_v21 }
 0x3d2   :  { %v1054_v37 = vadd.f32 %v4393_v16, %v1053_v32 }
 0x3d3   :  { %v1038_v8 = vsel %vm1037_vm11, %v4391_v14, %v1034_v1 }
 0x3d4   :  { %v1043_v41 = vsel %vm1040_vm12, %v1042_v2, %v1038_v8  ;;  %v1058_v59 = vsel %vm1057_vm15, %v4393_v16, %v1054_v37  ;;  %v6727_v2 = vld [vmem:[#allocation9_spill] sm:$0xff] }
 0x3d5   :  { %v1065_v62 = vmul.f32 %v1043_v41, %v1019_v39  ;;  %v1063_v22 = vsel %vm1060_vm0, %v1062_v5, %v1058_v59  ;;  %v354_v39 = vadd.f32 %v6727_v2, %v5305_v23 }
 0x3d6   :  { %v1068_v0 = vsub.f32 1.0, %v1063_v22  ;;  %v1070_v52 = vmul.f32 %v1063_v22, %v5761_v30 }
 0x3d7   :  { %v1066_v29 = vadd.f32 %v1065_v62, %v352_v58 }
 0x3d9   :  { %4394 = vtanh.f32 %v1066_v29 }
 0x3df   :  { %v4395_v47 = vpop.eup %4394 }
 0x3e0   :  { %v1069_v50 = vmul.f32 %v4395_v47, %v1068_v0 }
 0x3e2   :  { %v1071_v35 = vadd.f32 %v1070_v52, %v1069_v50  ;;  %v1208_v52 = vpop.permute.xlu1 %1207 }
 0x3e4   :  { %v5849_v40 = vmul.f32 %v1078_v26, %v1071_v35  ;;  %v1217_v35 = vpop.permute.xlu2 %1216 }
 0x3e6   :  { %v5853_v13 = vadd.f32 %v1089_v25, %v5849_v40 }
 0x3e8   :  { %1107 = vmatmul.f32.vlgmr.msra.gmra.mxu1 %v5853_v13  ;;  %1127 = vmatmul.f32.vlgmr.msrb.gmra.mxu2 %v5853_v13  ;;  %v1219_v26 = vmul.f32 %v1217_v35, %v5853_v13 }
 0x3e9   :  { %1147 = vmatmul.f32.vlgmr.msra.gmra.mxu3 %v5853_v13  ;;  %1391 = vmatpush.msra.mxu1 %v5409_v36 }
 0x3eb   :  { %1392 = vmatpush.msra.mxu1 %v5422_v31 }
 0x3ed   :  { %1393 = vmatpush.msra.mxu1 %v5561_v19  ;;  %v6725_v19 = vld [vmem:[#allocation20_spill] sm:$0xff] }
 0x3ef   :  { %1394 = vmatpush.msra.mxu1 %v5574_v60 }
 0x3f1   :  { %1395 = vmatpush.msra.mxu1 %v5587_v56 }
 0x3f3   :  { %1396 = vmatpush.msra.mxu1 %v5600_v12 }
 0x3f5   :  { %1397 = vmatpush.msra.mxu1 %v5613_v24  ;;  %v6726_v24 = vld [vmem:[#allocation16_spill] sm:$0xff] }
 0x3f7   :  { %1398 = vmatpush.msra.mxu1 %v5626_v38  ;;  %v325_v38 = vadd.f32 %v6726_v24, %v6718_v55 }
 0x3f9   :  { %1399 = vmatpush.msra.mxu1 %v5639_v3 }
 0x3fb   :  { %1400 = vmatpush.msra.mxu1 %v5652_v46 }
 0x3fd   :  { %1401 = vmatpush.msra.mxu1 %v5665_v27 }
 0x3ff   :  { %1402 = vmatpush.msra.mxu1 %v5678_v63 }
 0x401   :  { %1403 = vmatpush.msra.mxu1 %v5691_v10 }
 0x403   :  { %1404 = vmatpush.msra.mxu1 %v6712_v34 }
 0x405   :  { %1405 = vmatpush.msra.mxu1 %v6714_v33 }
 0x407   :  { %1406 = vmatpush.msra.mxu1 %v6716_v48 }
 0x465   :  { %v1108_v36 = vpop.f32.mrf.mxu1 }
 0x466   :  { %v1109_v31 = vadd.f32 %v1108_v36, %v6722_v11 }
 0x468   :  { %v1155_v60 = vadd.f32 %v1109_v31, %v6725_v19  ;;  %v6728_v19 = vld [vmem:[#allocation19_spill] sm:$0xff] }
 0x46a   :  { %v3509_v56 = vmul.f32 -1.442695, %v1155_v60  ;;  %v328_v60 = vadd.f32 %v6728_v19, %v6718_v55  ;;  %v6731_v19 = vld [vmem:[#allocation23_spill] sm:$0xff] }
 0x46b   :  { %v1128_v12 = vpop.f32.mrf.mxu2 }
 0x46c   :  { %4396 = vpow2.f32 %v3509_v56  ;;  %v1129_v3 = vadd.f32 %v1128_v12, %v6723_v45  ;;  %v1148_v49 = vpop.f32.mrf.mxu3  ;;  %v6729_v56 = vld [vmem:[#allocation22_spill] sm:$0xff] }
 0x46d   :  { %v1149_v32 = vadd.f32 %v1148_v49, %v5296_v61  ;;  %v299_v12 = vadd.f32 %v6729_v56, %v6720_v54 }
 0x46e   :  { %v1175_v46 = vadd.f32 %v1129_v3, %v325_v38 }
 0x470   :  { %v3510_v27 = vmul.f32 -1.442695, %v1175_v46 }
 0x472   :  { %v4397_v63 = vpop.eup %4396  ;;  %4398 = vpow2.f32 %v3510_v27 }
 0x473   :  { %v1159_v10 = vadd.f32 1.0, %v4397_v63 }
 0x475   :  { %4400 = vrcp.f32 %v1159_v10  ;;  %v1171_v16 = vand.u32 2147483648, %v1159_v10  ;;  %v1169_v17 = vand.u32 2147483647, %v1159_v10  ;;  %vm1165_vm2 = vweird.f32 %v1159_v10 }
 0x477   :  { %v1172_v57 = vor.u32 1.1754944e-38, %v1171_v16  ;;  %vm1170_vm4 = vcmp.eq.f32.partialorder %v1169_v17, 8.507059e+37 }
 0x478   :  { %v4399_v30 = vpop.eup %4398 }
 0x479   :  { %v1179_v34 = vadd.f32 1.0, %v4399_v30 }
 0x47b   :  { %v4401_v33 = vpop.eup %4400  ;;  %4402 = vrcp.f32 %v1179_v34  ;;  %v1191_v37 = vand.u32 2147483648, %v1179_v34  ;;  %v1189_v58 = vand.u32 2147483647, %v1179_v34  ;;  %vm1185_vm6 = vweird.f32 %v1179_v34 }
 0x47c   :  { %v1161_v48 = vmul.f32 %v4401_v33, %v1159_v10  ;;  %vm1166_vm1 = vweird.f32 %v4401_v33 }
 0x47d   :  { %vm1167_vm3 = vmor %vm1165_vm2, %vm1166_vm1  ;;  %v1192_v9 = vor.u32 1.1754944e-38, %v1191_v37  ;;  %vm1190_vm9 = vcmp.eq.f32.partialorder %v1189_v58, 8.507059e+37 }
 0x47e   :  { %v1162_v14 = vsub.f32 1.0, %v1161_v48 }
 0x480   :  { %v1163_v18 = vmul.f32 %v4401_v33, %v1162_v14 }
 0x481   :  { %v4403_v15 = vpop.eup %4402 }
 0x482   :  { %v1181_v20 = vmul.f32 %v4403_v15, %v1179_v34  ;;  %v1164_v21 = vadd.f32 %v4401_v33, %v1163_v18  ;;  %vm1186_vm5 = vweird.f32 %v4403_v15 }
 0x483   :  { %vm1187_vm7 = vmor %vm1185_vm6, %vm1186_vm5 }
 0x484   :  { %v1182_v51 = vsub.f32 1.0, %v1181_v20  ;;  %v1168_v1 = vsel %vm1167_vm3, %v4401_v33, %v1164_v21 }
 0x485   :  { %v1173_v8 = vsel %vm1170_vm4, %v1172_v57, %v1168_v1 }
 0x486   :  { %v1183_v41 = vmul.f32 %v4403_v15, %v1182_v51  ;;  %v1195_v44 = vmul.f32 %v1173_v8, %v1149_v32  ;;  %v6730_v8 = vld [vmem:[#allocation5_spill] sm:$0xff] }
 0x488   :  { %v1184_v62 = vadd.f32 %v4403_v15, %v1183_v41  ;;  %v1196_v6 = vadd.f32 %v1195_v44, %v354_v39  ;;  %v357_v41 = vadd.f32 %v6730_v8, %v5305_v23 }
 0x48a   :  { %v1188_v29 = vsel %vm1187_vm7, %v4403_v15, %v1184_v62  ;;  %4404 = vtanh.f32 %v1196_v6 }
 0x48b   :  { %v1193_v59 = vsel %vm1190_vm9, %v1192_v9, %v1188_v29 }
 0x48c   :  { %v1198_v5 = vsub.f32 1.0, %v1193_v59  ;;  %v1200_v47 = vmul.f32 %v1193_v59, %v5853_v13 }
 0x490   :  { %v4405_v22 = vpop.eup %4404 }
 0x491   :  { %v1199_v0 = vmul.f32 %v4405_v22, %v1198_v5 }
 0x493   :  { %v1201_v50 = vadd.f32 %v1200_v47, %v1199_v0 }
 0x495   :  { %v5883_v4 = vmul.f32 %v1208_v52, %v1201_v50  ;;  %v1338_v50 = vpop.permute.xlu0 %1337  ;;  %v1347_v52 = vpop.permute.xlu1 %1346 }
 0x497   :  { %v5887_v25 = vadd.f32 %v1219_v26, %v5883_v4 }
 0x499   :  { %1237 = vmatmul.f32.vlgmr.msrb.gmra.mxu0 %v5887_v25  ;;  %1257 = vmatmul.f32.vlgmr.msrb.gmra.mxu1 %v5887_v25  ;;  %v1349_v26 = vmul.f32 %v1347_v52, %v5887_v25 }
 0x49a   :  { %1277 = vmatmul.f32.vlgmr.msra.gmra.mxu2 %v5887_v25 }
 0x516   :  { %v1238_v36 = vpop.f32.mrf.mxu0  ;;  %v1258_v31 = vpop.f32.mrf.mxu1 }
 0x517   :  { %v1239_v24 = vadd.f32 %v1238_v36, %v6722_v11  ;;  %v1259_v13 = vadd.f32 %v1258_v31, %v6723_v45 }
 0x519   :  { %v1285_v38 = vadd.f32 %v1239_v24, %v299_v12  ;;  %v1305_v3 = vadd.f32 %v1259_v13, %v328_v60  ;;  %v330_v60 = vadd.f32 %v6731_v19, %v6718_v55  ;;  %v4156_v55 = vld [vmem:[%s6589_s10 + $0x30] sm:$0xff] }
 0x51b   :  { %v3512_v46 = vmul.f32 -1.442695, %v1285_v38  ;;  %v3513_v27 = vmul.f32 -1.442695, %v1305_v3  ;;  %v6732_v38 = vld [vmem:[#allocation26_spill] sm:$0xff] }
 0x51d   :  { %4406 = vpow2.f32 %v3512_v46  ;;  %v1278_v21 = vpop.f32.mrf.mxu2 }
 0x51e   :  { %4408 = vpow2.f32 %v3513_v27  ;;  %v1279_v32 = vadd.f32 %v1278_v21, %v5296_v61  ;;  %v4157_v27 = vld [vmem:[%s6589_s10 + $0x38] sm:$0xff] }
 0x51f   :  { %1699 = vmatpush.bf16.msrb.mxu2 %v4157_v27 }
 0x523   :  { %v4407_v63 = vpop.eup %4406  ;;  %1700 = vmatpush.bf16.msrb.mxu2 %v4156_v55 }
 0x524   :  { %v4409_v10 = vpop.eup %4408  ;;  %v1289_v30 = vadd.f32 1.0, %v4407_v63 }
 0x525   :  { %v1309_v34 = vadd.f32 1.0, %v4409_v10 }
 0x526   :  { %4410 = vrcp.f32 %v1289_v30  ;;  %v1301_v17 = vand.u32 2147483648, %v1289_v30  ;;  %v1299_v49 = vand.u32 2147483647, %v1289_v30  ;;  %vm1295_vm11 = vweird.f32 %v1289_v30 }
 0x527   :  { %4412 = vrcp.f32 %v1309_v34  ;;  %v1321_v37 = vand.u32 2147483648, %v1309_v34  ;;  %vm1315_vm15 = vweird.f32 %v1309_v34  ;;  %v1319_v58 = vand.u32 2147483647, %v1309_v34 }
 0x528   :  { %v1302_v51 = vor.u32 1.1754944e-38, %v1301_v17  ;;  %vm1300_vm13 = vcmp.eq.f32.partialorder %v1299_v49, 8.507059e+37 }
 0x529   :  { %v1322_v9 = vor.u32 1.1754944e-38, %v1321_v37  ;;  %vm1320_vm1 = vcmp.eq.f32.partialorder %v1319_v58, 8.507059e+37  ;;  %v6733_v58 = vld [vmem:[#allocation10_spill] sm:$0xff] }
 0x52c   :  { %v4411_v33 = vpop.eup %4410 }
 0x52d   :  { %v4413_v48 = vpop.eup %4412  ;;  %v1291_v14 = vmul.f32 %v4411_v33, %v1289_v30  ;;  %vm1296_vm10 = vweird.f32 %v4411_v33 }
 0x52e   :  { %v1311_v54 = vmul.f32 %v4413_v48, %v1309_v34  ;;  %vm1297_vm12 = vmor %vm1295_vm11, %vm1296_vm10  ;;  %vm1316_vm14 = vweird.f32 %v4413_v48  ;;  %v4154_v34 = vld [vmem:[%s6589_s10 + $0x20] sm:$0xff] }
 0x52f   :  { %v1292_v16 = vsub.f32 1.0, %v1291_v14  ;;  %vm1317_vm0 = vmor %vm1315_vm15, %vm1316_vm14 }
 0x530   :  { %v1312_v18 = vsub.f32 1.0, %v1311_v54 }
 0x531   :  { %v1293_v15 = vmul.f32 %v4411_v33, %v1292_v16 }
 0x532   :  { %v1313_v20 = vmul.f32 %v4413_v48, %v1312_v18  ;;  %v4152_v18 = vld [vmem:[%s6589_s10 + $0x10] sm:$0xff] }
 0x533   :  { %v1294_v57 = vadd.f32 %v4411_v33, %v1293_v15 }
 0x534   :  { %v1314_v39 = vadd.f32 %v4413_v48, %v1313_v20 }
 0x535   :  { %v1298_v1 = vsel %vm1297_vm12, %v4411_v33, %v1294_v57  ;;  %v4151_v57 = vld [vmem:[%s6589_s10 + $0x8] sm:$0xff] }
 0x536   :  { %v1303_v2 = vsel %vm1300_vm13, %v1302_v51, %v1298_v1  ;;  %v1318_v6 = vsel %vm1317_vm0, %v4413_v48, %v1314_v39  ;;  %v4153_v48 = vld [vmem:[%s6589_s10 + $0x18] sm:$0xff] }
 0x537   :  { %v1325_v44 = vmul.f32 %v1303_v2, %v1279_v32  ;;  %v1323_v29 = vsel %vm1320_vm1, %v1322_v9, %v1318_v6 }
 0x538   :  { %v1328_v59 = vsub.f32 1.0, %v1323_v29  ;;  %v1330_v0 = vmul.f32 %v1323_v29, %v5887_v25 }
 0x539   :  { %v1326_v62 = vadd.f32 %v1325_v44, %v357_v41  ;;  %v4150_v41 = vld [vmem:[%s6589_s10] sm:$0xff] }
 0x53b   :  { %4414 = vtanh.f32 %v1326_v62  ;;  %v359_v62 = vadd.f32 %v6733_v58, %v5305_v23 }
 0x541   :  { %v4415_v5 = vpop.eup %4414 }
 0x542   :  { %v1329_v22 = vmul.f32 %v4415_v5, %v1328_v59 }
 0x544   :  { %v1331_v47 = vadd.f32 %v1330_v0, %v1329_v22 }
 0x546   :  { %v5902_v35 = vmul.f32 %v1338_v50, %v1331_v47  ;;  %v4541_v50 = vmov 1934713408  }
 0x547   :  { %v1544_v52 = vunpack.c.l.s4 %v4541_v50 }
 0x548   :  { %v5906_v36 = vadd.f32 %v1349_v26, %v5902_v35  ;;  %v1515_v0 = vrot.slane %v5902_v35, 4  ;;  %v1517_v26 = vrot.slane %v5849_v40, 4 }
 0x54a   :  { %1367 = vmatmul.f32.vlgmr.msrb.gmra.mxu3 %v5906_v36  ;;  %1387 = vmatmul.f32.vlgmr.msra.gmra.mxu0 %v5906_v36 }
 0x54b   :  { %1407 = vmatmul.f32.vlgmr.msra.gmra.mxu1 %v5906_v36 }
 0x5c7   :  { %v1388_v31 = vpop.f32.mrf.mxu0 }
 0x5c8   :  { %v1389_v56 = vadd.f32 %v1388_v31, %v6723_v45  ;;  %v1408_v32 = vpop.f32.mrf.mxu1 }
 0x5c9   :  { %v1409_v39 = vadd.f32 %v1408_v32, %v5296_v61 }
 0x5ca   :  { %v1435_v12 = vadd.f32 %v1389_v56, %v330_v60  ;;  %v1518_v60 = vsel %vm1491_vm8, %v5902_v35, %v1517_v26 }
 0x5cc   :  { %v3516_v24 = vmul.f32 -1.442695, %v1435_v12  ;;  %v1516_v12 = vsel %vm1491_vm8, %v1515_v0, %v5849_v40 }
 0x5cd   :  { %v1368_v13 = vpop.f32.mrf.mxu3 }
 0x5ce   :  { %4416 = vpow2.f32 %v3516_v24  ;;  %v1369_v25 = vadd.f32 %v1368_v13, %v6722_v11  ;;  %v4155_v11 = vld [vmem:[%s6589_s10 + $0x28] sm:$0xff]  ;;  %v1545_v24 = vunpack.c.0.s8 %v1544_v52  ;;  %v1468_v13 = vpop.permute.xlu2 %1467 }
 0x5cf   :  { %1701 = vmatpush.bf16.msrb.mxu2 %v4155_v11 }
 0x5d0   :  { %v1415_v3 = vadd.f32 %v1369_v25, %v6732_v38  ;;  %v1526_v25 = vperm.slane %v1518_v60, %v5750_v53  ;;  %v1529_v38 = vrot.slane %v5883_v4, 4  ;;  %v1562_v35 = vperm.slane %v5773_v43, %v1545_v24 }
 0x5d1   :  { %v1546_v11 = vperm.slane %v5788_v28, %v1545_v24 }
 0x5d2   :  { %v3515_v46 = vmul.f32 -1.442695, %v1415_v3  ;;  %v1577_v55 = vrot.slane %v1526_v25, 4  ;;  %v1601_v43 = vrot.slane %v1562_v35, 4 }
 0x5d3   :  { %1702 = vmatpush.bf16.msrb.mxu2 %v4154_v34 }
 0x5d4   :  { %v4417_v63 = vpop.eup %4416  ;;  %4418 = vpow2.f32 %v3515_v46  ;;  %v1522_v46 = vperm.slane %v1516_v12, %v5750_v53 }
 0x5d5   :  { %v1439_v10 = vadd.f32 1.0, %v4417_v63 }
 0x5d7   :  { %4420 = vrcp.f32 %v1439_v10  ;;  %1703 = vmatpush.bf16.msrb.mxu2 %v4153_v48  ;;  %v1451_v6 = vand.u32 2147483648, %v1439_v10  ;;  %vm1445_vm7 = vweird.f32 %v1439_v10  ;;  %v1449_v29 = vand.u32 2147483647, %v1439_v10 }
 0x5d9   :  { %v1452_v5 = vor.u32 1.1754944e-38, %v1451_v6  ;;  %vm1450_vm10 = vcmp.eq.f32.partialorder %v1449_v29, 8.507059e+37 }
 0x5da   :  { %v4419_v45 = vpop.eup %4418 }
 0x5db   :  { %v1419_v30 = vadd.f32 1.0, %v4419_v45  ;;  %1704 = vmatpush.bf16.msrb.mxu2 %v4152_v18 }
 0x5dd   :  { %4422 = vrcp.f32 %v1419_v30  ;;  %v4421_v33 = vpop.eup %4420  ;;  %v1431_v49 = vand.u32 2147483648, %v1419_v30  ;;  %v1429_v21 = vand.u32 2147483647, %v1419_v30  ;;  %vm1425_vm3 = vweird.f32 %v1419_v30 }
 0x5de   :  { %v1441_v14 = vmul.f32 %v4421_v33, %v1439_v10  ;;  %vm1446_vm6 = vweird.f32 %v4421_v33  ;;  %v1550_v10 = vperm.slane %v5779_v42, %v1545_v24 }
 0x5df   :  { %v1432_v2 = vor.u32 1.1754944e-38, %v1431_v49  ;;  %vm1430_vm5 = vcmp.eq.f32.partialorder %v1429_v21, 8.507059e+37  ;;  %1705 = vmatpush.bf16.msrb.mxu2 %v4151_v57  ;;  %vm1447_vm9 = vmor %vm1445_vm7, %vm1446_vm6 }
 0x5e0   :  { %v1442_v17 = vsub.f32 1.0, %v1441_v14  ;;  %v1593_v18 = vrot.slane %v1550_v10, 4 }
 0x5e2   :  { %v1443_v51 = vmul.f32 %v4421_v33, %v1442_v17 }
 0x5e3   :  { %v4423_v54 = vpop.eup %4422  ;;  %1706 = vmatpush.bf16.msrb.mxu2 %v4150_v41 }
 0x5e4   :  { %v1421_v16 = vmul.f32 %v4423_v54, %v1419_v30  ;;  %vm1426_vm2 = vweird.f32 %v4423_v54  ;;  %v1444_v37 = vadd.f32 %v4421_v33, %v1443_v51  ;;  %v1558_v30 = vperm.slane %v5782_v7, %v1545_v24 }
 0x5e5   :  { %vm1427_vm4 = vmor %vm1425_vm3, %vm1426_vm2 }
 0x5e6   :  { %v1422_v15 = vsub.f32 1.0, %v1421_v16  ;;  %v1448_v61 = vsel %vm1447_vm9, %v4421_v33, %v1444_v37  ;;  %v1565_v33 = vrot.slane %v1522_v46, 4 }
 0x5e7   :  { %v1453_v22 = vsel %vm1450_vm10, %v1452_v5, %v1448_v61 }
 0x5e8   :  { %v1423_v20 = vmul.f32 %v4423_v54, %v1422_v15  ;;  %v1458_v47 = vsub.f32 1.0, %v1453_v22  ;;  %v1460_v31 = vmul.f32 %v1453_v22, %v5906_v36 }
 0x5ea   :  { %v1424_v1 = vadd.f32 %v4423_v54, %v1423_v20  ;;  %v1597_v20 = vrot.slane %v1558_v30, 4 }
 0x5ec   :  { %v1428_v8 = vsel %vm1427_vm4, %v4423_v54, %v1424_v1 }
 0x5ed   :  { %v1433_v44 = vsel %vm1430_vm5, %v1432_v2, %v1428_v8 }
 0x5ee   :  { %v1455_v9 = vmul.f32 %v1433_v44, %v1409_v39 }
 0x5f0   :  { %v1456_v59 = vadd.f32 %v1455_v9, %v359_v62 }
 0x5f2   :  { %4424 = vtanh.f32 %v1456_v59 }
 0x5f8   :  { %v4425_v23 = vpop.eup %4424 }
 0x5f9   :  { %v1459_v19 = vmul.f32 %v4425_v23, %v1458_v47 }
 0x5fb   :  { %v1461_v56 = vadd.f32 %v1460_v31, %v1459_v19 }
 0x5fd   :  { %v5952_v3 = vmul.f32 %v1468_v13, %v1461_v56  ;;  %v4173_v13 = vld [vmem:[%s6590_s4 + $0x78] sm:$0xff] }
 0x5fe   :  { %1977 = vmatpush.bf16.msrb.mxu0 %v4173_v13 }
 0x5ff   :  { %v1527_v27 = vrot.slane %v5952_v3, 4  ;;  %v1530_v63 = vsel %vm1491_vm8, %v5952_v3, %v1529_v38  ;;  %v4181_v38 = vld [vmem:[%s6590_s4 + $0xb8] sm:$0xff] }
 0x600   :  { %v1538_v40 = vperm.slane %v1530_v63, %v5750_v53  ;;  %2038 = vmatpush.bf16.msrb.mxu1 %v4181_v38  ;;  %v4163_v63 = vld [vmem:[%s6590_s4 + $0x28] sm:$0xff] }
 0x601   :  { %v1528_v45 = vsel %vm1491_vm8, %v1527_v27, %v5883_v4  ;;  %v4180_v27 = vld [vmem:[%s6590_s4 + $0xb0] sm:$0xff]  ;;  %v4207_v38 = vld [vmem:[%s6590_s4 + $0x188] sm:$0xff] }
 0x602   :  { %v1534_v34 = vperm.slane %v1528_v45, %v5750_v53  ;;  %v1575_v48 = vrot.slane %v1538_v40, 4  ;;  %v1578_v14 = vsel %vm1491_vm8, %v1538_v40, %v1577_v55  ;;  %v1589_v53 = vrot.slane %v1546_v11, 4  ;;  %v4179_v40 = vld [vmem:[%s6590_s4 + $0xa8] sm:$0xff]  ;;  %v4162_v55 = vld [vmem:[%s6590_s4 + $0x20] sm:$0xff] }
 0x603   :  { %v1586_v54 = vperm.slane %v1578_v14, %v1545_v24  ;;  %v4170_v45 = vld [vmem:[%s6590_s4 + $0x60] sm:$0xff]  ;;  %v4168_v14 = vld [vmem:[%s6590_s4 + $0x50] sm:$0xff] }
 0x604   :  { %v1563_v16 = vrot.slane %v1534_v34, 4  ;;  %v1566_v42 = vsel %vm1491_vm8, %v1534_v34, %v1565_v33  ;;  %v1576_v17 = vsel %vm1491_vm8, %v1575_v48, %v1526_v25  ;;  %v4164_v25 = vld [vmem:[%s6590_s4 + $0x30] sm:$0xff]  ;;  %2039 = vmatpush.bf16.msrb.mxu1 %v4180_v27  ;;  %v4169_v34 = vld [vmem:[%s6590_s4 + $0x58] sm:$0xff] }
 0x605   :  { %v1574_v15 = vperm.slane %v1566_v42, %v1545_v24  ;;  %v1582_v4 = vperm.slane %v1576_v17, %v1545_v24  ;;  %v1599_v49 = vrot.slane %v1586_v54, 4  ;;  %v1602_v28 = vsel %vm1491_vm8, %v1586_v54, %v1601_v43  ;;  %v4177_v33 = vld [vmem:[%s6590_s4 + $0x98] sm:$0xff]  ;;  %v4160_v48 = vld [vmem:[%s6590_s4 + $0x10] sm:$0xff]  ;;  %v4159_v54 = vld [vmem:[%s6590_s4 + $0x8] sm:$0xff] }
 0x606   :  { %v1564_v7 = vsel %vm1491_vm8, %v1563_v16, %v1522_v46  ;;  %v1610_v8 = vpack.c.bf16 %v1602_v28, %v1602_v28  ;;  %v4172_v46 = vld [vmem:[%s6590_s4 + $0x70] sm:$0xff]  ;;  %v4167_v43 = vld [vmem:[%s6590_s4 + $0x48] sm:$0xff]  ;;  %v4158_v16 = vld [vmem:[%s6590_s4] sm:$0xff] }
 0x607   :  { %v1570_v21 = vperm.slane %v1564_v7, %v1545_v24  ;;  %v1591_v57 = vrot.slane %v1574_v15, 4  ;;  %v1594_v51 = vsel %vm1491_vm8, %v1574_v15, %v1593_v18  ;;  %v1595_v32 = vrot.slane %v1582_v4, 4  ;;  %v4165_v24 = vld [vmem:[%s6590_s4 + $0x38] sm:$0xff]  ;;  %1978 = vmatpush.bf16.msrb.mxu0 %v4172_v46  ;;  %v4188_v18 = vld [vmem:[%s6590_s4 + $0xf0] sm:$0xff]  ;;  %v4166_v17 = vld [vmem:[%s6590_s4 + $0x40] sm:$0xff] }
 0x608   :  { %v1606_v1 = vpack.c.bf16 %v1594_v51, %v1594_v51  ;;  %v1598_v2 = vsel %vm1491_vm8, %v1582_v4, %v1597_v20  ;;  %v1600_v39 = vsel %vm1491_vm8, %v1599_v49, %v1562_v35  ;;  %v1642_v26 = vunpack.c.l.b16 %v1610_v8  ;;  %1916 = vmatpush.bf16.msra.mxu3 %v4165_v24  ;;  %v4213_v35 = vld [vmem:[%s6590_s4 + $0x1b8] sm:$0xff]  ;;  %2040 = vmatpush.bf16.msrb.mxu1 %v4179_v40  ;;  %v4176_v15 = vld [vmem:[%s6590_s4 + $0x90] sm:$0xff]  ;;  %v4187_v49 = vld [vmem:[%s6590_s4 + $0xe8] sm:$0xff] }
 0x609   :  { %v1587_v41 = vrot.slane %v1570_v21, 4  ;;  %v1590_v37 = vsel %vm1491_vm8, %v1570_v21, %v1589_v53  ;;  %v1592_v44 = vsel %vm1491_vm8, %v1591_v57, %v1550_v10  ;;  %v1596_v58 = vsel %vm1491_vm8, %v1595_v32, %v1558_v30  ;;  %v4171_v10 = vld [vmem:[%s6590_s4 + $0x68] sm:$0xff]  ;;  %2282 = vmatpush.bf16.msra.mxu2 %v4213_v35  ;;  %v4161_v30 = vld [vmem:[%s6590_s4 + $0x18] sm:$0xff]  ;;  %v4212_v4 = vld [vmem:[%s6590_s4 + $0x1b0] sm:$0xff] }
 0x60a   :  { %v1604_v62 = vpack.c.bf16 %v1590_v37, %v1590_v37  ;;  %v1605_v6 = vpack.c.bf16 %v1592_v44, %v1592_v44  ;;  %v1607_v9 = vpack.c.bf16 %v1596_v58, %v1596_v58  ;;  %v1608_v59 = vpack.c.bf16 %v1598_v2, %v1598_v2  ;;  %v4189_v42 = vld [vmem:[%s6590_s4 + $0xf8] sm:$0xff]  ;;  %v4175_v7 = vld [vmem:[%s6590_s4 + $0x88] sm:$0xff]  ;;  %v4186_v53 = vld [vmem:[%s6590_s4 + $0xe0] sm:$0xff] }
 0x60b   :  { %v1588_v29 = vsel %vm1491_vm8, %v1587_v41, %v1546_v11  ;;  %v1609_v61 = vpack.c.bf16 %v1600_v39, %v1600_v39  ;;  %v1638_v0 = vunpack.c.l.b16 %v1606_v1  ;;  %1979 = vmatpush.bf16.msrb.mxu0 %v4171_v10  ;;  %v4178_v11 = vld [vmem:[%s6590_s4 + $0xa0] sm:$0xff]  ;;  %v4197_v28 = vld [vmem:[%s6590_s4 + $0x138] sm:$0xff]  ;;  %v4196_v20 = vld [vmem:[%s6590_s4 + $0x130] sm:$0xff] }
 0x60c   :  { %v1603_v5 = vpack.c.bf16 %v1588_v29, %v1588_v29  ;;  %v1637_v22 = vunpack.c.l.b16 %v1605_v6  ;;  %v1639_v47 = vunpack.c.l.b16 %v1607_v9  ;;  %v1640_v50 = vunpack.c.l.b16 %v1608_v59  ;;  %1917 = vmatpush.bf16.msra.mxu3 %v4164_v25  ;;  %2041 = vmatpush.bf16.msrb.mxu1 %v4178_v11  ;;  %v4174_v21 = vld [vmem:[%s6590_s4 + $0x80] sm:$0xff]  ;;  %v4211_v57 = vld [vmem:[%s6590_s4 + $0x1a8] sm:$0xff]  ;;  %v4185_v51 = vld [vmem:[%s6590_s4 + $0xd8] sm:$0xff] }
 0x60d   :  { %v1641_v52 = vunpack.c.l.b16 %v1609_v61  ;;  %v1636_v31 = vunpack.c.l.b16 %v1604_v62  ;;  %2283 = vmatpush.bf16.msra.mxu2 %v4212_v4  ;;  %v4195_v32 = vld [vmem:[%s6590_s4 + $0x128] sm:$0xff]  ;;  %v4205_v1 = vld [vmem:[%s6590_s4 + $0x178] sm:$0xff]  ;;  %v4184_v2 = vld [vmem:[%s6590_s4 + $0xd0] sm:$0xff] }
 0x60e   :  { %v1635_v23 = vunpack.c.l.b16 %v1603_v5  ;;  %v5978_v19 = vpack.c.b16 %v1638_v0, %v1637_v22  ;;  %v5980_v60 = vpack.c.b16 %v1640_v50, %v1639_v47  ;;  %v4194_v39 = vld [vmem:[%s6590_s4 + $0x120] sm:$0xff]  ;;  %v4204_v8 = vld [vmem:[%s6590_s4 + $0x170] sm:$0xff]  ;;  %v4183_v37 = vld [vmem:[%s6590_s4 + $0xc8] sm:$0xff] }
 0x60f   :  { %v5982_v56 = vpack.c.b16 %v1642_v26, %v1641_v52  ;;  %1980 = vmatpush.bf16.msrb.mxu0 %v4170_v45  ;;  %v4210_v41 = vld [vmem:[%s6590_s4 + $0x1a0] sm:$0xff]  ;;  %v4193_v44 = vld [vmem:[%s6590_s4 + $0x118] sm:$0xff]  ;;  %v4203_v58 = vld [vmem:[%s6590_s4 + $0x168] sm:$0xff] }
 0x610   :  { %v5984_v12 = vpack.c.b16 %v1636_v31, %v1635_v23  ;;  %1918 = vmatpush.bf16.msra.mxu3 %v4163_v63  ;;  %2042 = vmatpush.bf16.msrb.mxu1 %v4177_v33  ;;  %v4182_v62 = vld [vmem:[%s6590_s4 + $0xc0] sm:$0xff]  ;;  %v4192_v6 = vld [vmem:[%s6590_s4 + $0x110] sm:$0xff]  ;;  %v4209_v29 = vld [vmem:[%s6590_s4 + $0x198] sm:$0xff] }
 0x611   :  { %2284 = vmatpush.bf16.msra.mxu2 %v4211_v57  ;;  %v4202_v9 = vld [vmem:[%s6590_s4 + $0x160] sm:$0xff]  ;;  %v4191_v59 = vld [vmem:[%s6590_s4 + $0x108] sm:$0xff]  ;;  %v4201_v61 = vld [vmem:[%s6590_s4 + $0x158] sm:$0xff] }
 0x612   :  { %1707 = vmatmul.bf16.vlgmr.msrb.gmra.mxu2 %v5984_v12  ;;  %v4221_v22 = vld [vmem:[%s6590_s4 + $0x1f8] sm:$0xff]  ;;  %v4190_v47 = vld [vmem:[%s6590_s4 + $0x100] sm:$0xff]  ;;  %v4200_v50 = vld [vmem:[%s6590_s4 + $0x150] sm:$0xff] }
 0x613   :  { %1981 = vmatpush.bf16.msrb.mxu0 %v4169_v34  ;;  %v4208_v52 = vld [vmem:[%s6590_s4 + $0x190] sm:$0xff]  ;;  %v4199_v23 = vld [vmem:[%s6590_s4 + $0x148] sm:$0xff]  ;;  %v4198_v25 = vld [vmem:[%s6590_s4 + $0x140] sm:$0xff] }
 0x614   :  { %1919 = vmatpush.bf16.msra.mxu3 %v4162_v55  ;;  %2043 = vmatpush.bf16.msrb.mxu1 %v4176_v15  ;;  %v4220_v26 = vld [vmem:[%s6590_s4 + $0x1f0] sm:$0xff]  ;;  %v4219_v24 = vld [vmem:[%s6590_s4 + $0x1e8] sm:$0xff]  ;;  %v4218_v46 = vld [vmem:[%s6590_s4 + $0x1e0] sm:$0xff] }
 0x615   :  { %2285 = vmatpush.bf16.msra.mxu2 %v4210_v41  ;;  %v4217_v63 = vld [vmem:[%s6590_s4 + $0x1d8] sm:$0xff]  ;;  %v4206_v10 = vld [vmem:[%s6590_s4 + $0x180] sm:$0xff]  ;;  %v4216_v40 = vld [vmem:[%s6590_s4 + $0x1d0] sm:$0xff] }
 0x616   :  { %v4215_v45 = vld [vmem:[%s6590_s4 + $0x1c8] sm:$0xff] }
 0x617   :  { %1982 = vmatpush.bf16.msrb.mxu0 %v4168_v14 }
 0x618   :  { %1920 = vmatpush.bf16.msra.mxu3 %v4161_v30  ;;  %2044 = vmatpush.bf16.msrb.mxu1 %v4175_v7  ;;  %v4214_v30 = vld [vmem:[%s6590_s4 + $0x1c0] sm:$0xff] }
 0x619   :  { %2286 = vmatpush.bf16.msra.mxu2 %v4209_v29 }
 0x61b   :  { %1983 = vmatpush.bf16.msrb.mxu0 %v4167_v43 }
 0x61c   :  { %1921 = vmatpush.bf16.msra.mxu3 %v4160_v48  ;;  %2045 = vmatpush.bf16.msrb.mxu1 %v4174_v21 }
 0x61d   :  { %2287 = vmatpush.bf16.msra.mxu2 %v4208_v52 }
 0x61f   :  { %1984 = vmatpush.bf16.msrb.mxu0 %v4166_v17 }
 0x620   :  { %1922 = vmatpush.bf16.msra.mxu3 %v4159_v54  ;;  %2221 = vmatpush.bf16.msra.mxu1 %v4205_v1 }
 0x621   :  { %2288 = vmatpush.bf16.msra.mxu2 %v4207_v38 }
 0x622   :  { %1712 = vmatmul.bf16.gmra.mxu2 %v5978_v19 }
 0x623   :  { %2160 = vmatpush.bf16.msra.mxu0 %v4197_v28 }
 0x624   :  { %1923 = vmatpush.bf16.msra.mxu3 %v4158_v16  ;;  %2222 = vmatpush.bf16.msra.mxu1 %v4204_v8 }
 0x625   :  { %2289 = vmatpush.bf16.msra.mxu2 %v4206_v10 }
 0x627   :  { %2161 = vmatpush.bf16.msra.mxu0 %v4196_v20 }
 0x628   :  { %2099 = vmatpush.bf16.msrb.mxu3 %v4189_v42  ;;  %2223 = vmatpush.bf16.msra.mxu1 %v4203_v58 }
 0x62b   :  { %2162 = vmatpush.bf16.msra.mxu0 %v4195_v32 }
 0x62c   :  { %2100 = vmatpush.bf16.msrb.mxu3 %v4188_v18  ;;  %2224 = vmatpush.bf16.msra.mxu1 %v4202_v9  ;;  %v4344_v18 = vld [vmem:[%s6591_s5] ss:$0 sm:$0xff] }
 0x62f   :  { %2163 = vmatpush.bf16.msra.mxu0 %v4194_v39 }
 0x630   :  { %2101 = vmatpush.bf16.msrb.mxu3 %v4187_v49  ;;  %2225 = vmatpush.bf16.msra.mxu1 %v4201_v61 }
 0x632   :  { %1717 = vmatmul.bf16.gmra.mxu2 %v5980_v60 }
 0x633   :  { %2164 = vmatpush.bf16.msra.mxu0 %v4193_v44 }
 0x634   :  { %2102 = vmatpush.bf16.msrb.mxu3 %v4186_v53  ;;  %2226 = vmatpush.bf16.msra.mxu1 %v4200_v50 }
 0x637   :  { %2165 = vmatpush.bf16.msra.mxu0 %v4192_v6 }
 0x638   :  { %2103 = vmatpush.bf16.msrb.mxu3 %v4185_v51  ;;  %2227 = vmatpush.bf16.msra.mxu1 %v4199_v23 }
 0x63b   :  { %2166 = vmatpush.bf16.msra.mxu0 %v4191_v59 }
 0x63c   :  { %2104 = vmatpush.bf16.msrb.mxu3 %v4184_v2  ;;  %2228 = vmatpush.bf16.msra.mxu1 %v4198_v25 }
 0x63f   :  { %2167 = vmatpush.bf16.msra.mxu0 %v4190_v47 }
 0x640   :  { %2105 = vmatpush.bf16.msrb.mxu3 %v4183_v37 }
 0x642   :  { %1722 = vmatmul.bf16.gmra.mxu2 %v5982_v56 }
 0x644   :  { %2106 = vmatpush.bf16.msrb.mxu3 %v4182_v62 }
 0x695   :  { %v1708_v5 = vpop.f32.mrf.mxu2 }
 0x696   :  { %v1728_v0 = vpack.c.bf16 %v1708_v5, %v1708_v5 }
 0x698   :  { %1924 = vmatmul.bf16.vlgmr.msra.gmra.mxu3 %v1728_v0 }
 0x699   :  { %2343 = vmatpush.bf16.msra.mxu3 %v4221_v22 }
 0x69d   :  { %v1710_v31 = vpop.f32.mrf.mxu2  ;;  %2344 = vmatpush.bf16.msra.mxu3 %v4220_v26 }
 0x69e   :  { %v1729_v13 = vpack.c.bf16 %v1710_v31, %v1710_v31 }
 0x6a0   :  { %1985 = vmatmul.bf16.vlgmr.msrb.gmra.mxu0 %v1729_v13 }
 0x6a1   :  { %2345 = vmatpush.bf16.msra.mxu3 %v4219_v24 }
 0x6a5   :  { %v1713_v27 = vpop.f32.mrf.mxu2  ;;  %2346 = vmatpush.bf16.msra.mxu3 %v4218_v46 }
 0x6a6   :  { %v1730_v35 = vpack.c.bf16 %v1713_v27, %v1713_v27 }
 0x6a8   :  { %2046 = vmatmul.bf16.vlgmr.msrb.gmra.mxu1 %v1730_v35 }
 0x6a9   :  { %2347 = vmatpush.bf16.msra.mxu3 %v4217_v63 }
 0x6ad   :  { %v1715_v55 = vpop.f32.mrf.mxu2  ;;  %2348 = vmatpush.bf16.msra.mxu3 %v4216_v40 }
 0x6ae   :  { %v1731_v11 = vpack.c.bf16 %v1715_v55, %v1715_v55  ;;  %v4237_v55 = vld [vmem:[%s6592_s3 + $0x78] sm:$0xff] }
 0x6af   :  { %2681 = vmatpush.bf16.msrb.mxu1 %v4237_v55  ;;  %v4247_v55 = vld [vmem:[%s6592_s3 + $0xc8] sm:$0xff] }
 0x6b0   :  { %2107 = vmatmul.bf16.vlgmr.msrb.gmra.mxu3 %v1731_v11 }
 0x6b1   :  { %2349 = vmatpush.bf16.msra.mxu3 %v4215_v45  ;;  %v4229_v45 = vld [vmem:[%s6592_s3 + $0x38] sm:$0xff] }
 0x6b2   :  { %2620 = vmatpush.bf16.msrb.mxu0 %v4229_v45  ;;  %v4277_v45 = vld [vmem:[%s6592_s3 + $0x1b8] sm:$0xff] }
 0x6b5   :  { %v1718_v34 = vpop.f32.mrf.mxu2  ;;  %2350 = vmatpush.bf16.msra.mxu3 %v4214_v30 }
 0x6b6   :  { %v1732_v33 = vpack.c.bf16 %v1718_v34, %v1718_v34  ;;  %v4236_v34 = vld [vmem:[%s6592_s3 + $0x70] sm:$0xff] }
 0x6b7   :  { %2682 = vmatpush.bf16.msrb.mxu1 %v4236_v34 }
 0x6b8   :  { %2168 = vmatmul.bf16.vlgmr.msra.gmra.mxu0 %v1732_v33  ;;  %v4228_v33 = vld [vmem:[%s6592_s3 + $0x30] sm:$0xff] }
 0x6b9   :  { %2621 = vmatpush.bf16.msrb.mxu0 %v4228_v33  ;;  %v4255_v33 = vld [vmem:[%s6592_s3 + $0x108] sm:$0xff] }
 0x6bd   :  { %v1720_v48 = vpop.f32.mrf.mxu2 }
 0x6be   :  { %v1733_v14 = vpack.c.bf16 %v1720_v48, %v1720_v48  ;;  %v4245_v48 = vld [vmem:[%s6592_s3 + $0xb8] sm:$0xff] }
 0x6bf   :  { %2742 = vmatpush.bf16.msrb.mxu2 %v4245_v48 }
 0x6c0   :  { %2229 = vmatmul.bf16.vlgmr.msra.gmra.mxu1 %v1733_v14  ;;  %v4244_v14 = vld [vmem:[%s6592_s3 + $0xb0] sm:$0xff] }
 0x6c3   :  { %2743 = vmatpush.bf16.msrb.mxu2 %v4244_v14  ;;  %v4246_v14 = vld [vmem:[%s6592_s3 + $0xc0] sm:$0xff] }
 0x6c5   :  { %v1723_v54 = vpop.f32.mrf.mxu2 }
 0x6c6   :  { %v1734_v43 = vpack.c.bf16 %v1723_v54, %v1723_v54  ;;  %v4235_v54 = vld [vmem:[%s6592_s3 + $0x68] sm:$0xff] }
 0x6c7   :  { %2683 = vmatpush.bf16.msrb.mxu1 %v4235_v54  ;;  %v4276_v54 = vld [vmem:[%s6592_s3 + $0x1b0] sm:$0xff] }
 0x6c8   :  { %2290 = vmatmul.bf16.vlgmr.msra.gmra.mxu2 %v1734_v43  ;;  %v4227_v43 = vld [vmem:[%s6592_s3 + $0x28] sm:$0xff] }
 0x6c9   :  { %2622 = vmatpush.bf16.msrb.mxu0 %v4227_v43  ;;  %v4254_v43 = vld [vmem:[%s6592_s3 + $0x100] sm:$0xff] }
 0x6cd   :  { %v1725_v16 = vpop.f32.mrf.mxu2 }
 0x6ce   :  { %v1735_v42 = vpack.c.bf16 %v1725_v16, %v1725_v16 }
 0x6d0   :  { %2351 = vmatmul.bf16.vlgmr.msra.gmra.mxu3 %v1735_v42  ;;  %v4243_v42 = vld [vmem:[%s6592_s3 + $0xa8] sm:$0xff] }
 0x6d1   :  { %2744 = vmatpush.bf16.msrb.mxu2 %v4243_v42  ;;  %v4275_v42 = vld [vmem:[%s6592_s3 + $0x1a8] sm:$0xff] }
 0x71b   :  { %v1925_v17 = vpop.f32.mrf.mxu3 }
 0x71c   :  { %v1926_v15 = vadd.f32 %v4344_v18, %v1925_v17  ;;  %v4226_v17 = vld [vmem:[%s6592_s3 + $0x20] sm:$0xff] }
 0x71d   :  { %v1986_v4 = vpop.f32.mrf.mxu0  ;;  %2623 = vmatpush.bf16.msrb.mxu0 %v4226_v17 }
 0x71e   :  { %v1987_v49 = vadd.f32 %v4344_v18, %v1986_v4  ;;  %2356 = vmax.xlane.f32.xlu0 %v1926_v15 }
 0x720   :  { %2358 = vmax.xlane.f32.xlu1 %v1987_v49 }
 0x723   :  { %v1927_v28 = vpop.f32.mrf.mxu3 }
 0x725   :  { %v1988_v7 = vpop.f32.mrf.mxu0  ;;  %v2047_v53 = vpop.f32.mrf.mxu1 }
 0x726   :  { %v2048_v20 = vadd.f32 %v4344_v18, %v2047_v53  ;;  %v4225_v7 = vld [vmem:[%s6592_s3 + $0x18] sm:$0xff]  ;;  %v4232_v53 = vld [vmem:[%s6592_s3 + $0x50] sm:$0xff] }
 0x727   :  { %2624 = vmatpush.bf16.msrb.mxu0 %v4225_v7 }
 0x728   :  { %2360 = vmax.xlane.f32.xlu2 %v2048_v20 }
 0x72d   :  { %v2049_v21 = vpop.f32.mrf.mxu1 }
 0x733   :  { %v2108_v57 = vpop.f32.mrf.mxu3 }
 0x734   :  { %v2109_v51 = vadd.f32 %v4344_v18, %v2108_v57 }
 0x735   :  { %v2169_v32 = vpop.f32.mrf.mxu0 }
 0x736   :  { %v2170_v1 = vadd.f32 %v4344_v18, %v2169_v32  ;;  %2362 = vmax.xlane.f32.xlu2 %v2109_v51 }
 0x738   :  { %2364 = vmax.xlane.f32.xlu0 %v2170_v1 }
 0x73b   :  { %v2110_v2 = vpop.f32.mrf.mxu3 }
 0x73d   :  { %v2171_v39 = vpop.f32.mrf.mxu0  ;;  %v2230_v8 = vpop.f32.mrf.mxu1 }
 0x73e   :  { %v2231_v41 = vadd.f32 %v4344_v18, %v2230_v8  ;;  %v4230_v39 = vld [vmem:[%s6592_s3 + $0x40] sm:$0xff]  ;;  %v4223_v8 = vld [vmem:[%s6592_s3 + $0x8] sm:$0xff] }
 0x740   :  { %2366 = vmax.xlane.f32.xlu1 %v2231_v41 }
 0x745   :  { %v2232_v37 = vpop.f32.mrf.mxu1 }
 0x746   :  { %v4242_v37 = vld [vmem:[%s6592_s3 + $0xa0] sm:$0xff] }
 0x747   :  { %2745 = vmatpush.bf16.msrb.mxu2 %v4242_v37  ;;  %v4291_v37 = vld [vmem:[%s6594_s11 + $0x28] sm:$0xff] }
 0x74b   :  { %v2291_v44 = vpop.f32.mrf.mxu2 }
 0x74c   :  { %v6185_v58 = vadd.f32 %v4344_v18, %v2291_v44  ;;  %v4253_v44 = vld [vmem:[%s6592_s3 + $0xf8] sm:$0xff] }
 0x74d   :  { %2803 = vmatpush.bf16.msrb.mxu3 %v4253_v44 }
 0x74e   :  { %2368 = vmax.xlane.f32.xlu2 %v6185_v58 }
 0x753   :  { %v2293_v62 = vpop.f32.mrf.mxu2  ;;  %v2352_v6 = vpop.f32.mrf.mxu3 }
 0x754   :  { %v6188_v9 = vadd.f32 %v4344_v18, %v2352_v6  ;;  %v4234_v18 = vld [vmem:[%s6592_s3 + $0x60] sm:$0xff]  ;;  %v4268_v62 = vld [vmem:[%s6592_s3 + $0x170] sm:$0xff]  ;;  %v4241_v6 = vld [vmem:[%s6592_s3 + $0x98] sm:$0xff] }
 0x755   :  { %2684 = vmatpush.bf16.msrb.mxu1 %v4234_v18  ;;  %2746 = vmatpush.bf16.msrb.mxu2 %v4241_v6  ;;  %v4285_v18 = vld [vmem:[%s6592_s3 + $0x1f8] sm:$0xff] }
 0x756   :  { %2370 = vmax.xlane.f32.xlu0 %v6188_v9 }
 0x75b   :  { %v2354_v29 = vpop.f32.mrf.mxu3 }
 0x75c   :  { %v4252_v29 = vld [vmem:[%s6592_s3 + $0xf0] sm:$0xff] }
 0x75d   :  { %2804 = vmatpush.bf16.msrb.mxu3 %v4252_v29  ;;  %v4270_v29 = vld [vmem:[%s6592_s3 + $0x180] sm:$0xff] }
 0x791   :  { %v2357_v59 = vpop.xlane.xlu0 %2356 }
 0x792   :  { %v2372_v61 = vsub.f32 %v1926_v15, %v2357_v59  ;;  %v4267_v59 = vld [vmem:[%s6592_s3 + $0x168] sm:$0xff] }
 0x793   :  { %v2359_v5 = vpop.xlane.xlu1 %2358 }
 0x794   :  { %v2380_v22 = vmul.f32 1.442695, %v2372_v61  ;;  %v2373_v0 = vsub.f32 %v1987_v49, %v2359_v5  ;;  %v4233_v49 = vld [vmem:[%s6592_s3 + $0x58] sm:$0xff]  ;;  %v4240_v61 = vld [vmem:[%s6592_s3 + $0x90] sm:$0xff] }
 0x795   :  { %2685 = vmatpush.bf16.msrb.mxu1 %v4233_v49  ;;  %v4260_v5 = vld [vmem:[%s6592_s3 + $0x130] sm:$0xff]  ;;  %2747 = vmatpush.bf16.msrb.mxu2 %v4240_v61  ;;  %v4289_v61 = vld [vmem:[%s6594_s11 + $0x18] sm:$0xff] }
 0x796   :  { %4426 = vpow2.f32 %v2380_v22  ;;  %v2382_v47 = vmul.f32 1.442695, %v2373_v0  ;;  %v4251_v22 = vld [vmem:[%s6592_s3 + $0xe8] sm:$0xff]  ;;  %v4266_v0 = vld [vmem:[%s6592_s3 + $0x160] sm:$0xff] }
 0x797   :  { %2805 = vmatpush.bf16.msrb.mxu3 %v4251_v22 }
 0x798   :  { %4428 = vpow2.f32 %v2382_v47  ;;  %v4239_v47 = vld [vmem:[%s6592_s3 + $0x88] sm:$0xff] }
 0x799   :  { %2686 = vmatpush.bf16.msrb.mxu1 %v4232_v53  ;;  %2748 = vmatpush.bf16.msrb.mxu2 %v4239_v47  ;;  %v4274_v53 = vld [vmem:[%s6592_s3 + $0x1a0] sm:$0xff] }
 0x79b   :  { %v2361_v50 = vpop.xlane.xlu2 %2360 }
 0x79c   :  { %v6191_v52 = vpop.eup %4426  ;;  %v2374_v26 = vsub.f32 %v2048_v20, %v2361_v50  ;;  %v4224_v20 = vld [vmem:[%s6592_s3 + $0x10] sm:$0xff]  ;;  %v4259_v50 = vld [vmem:[%s6592_s3 + $0x128] sm:$0xff] }
 0x79d   :  { %2396 = vadd.xlane.f32.xlu1 %v6191_v52  ;;  %2625 = vmatpush.bf16.msrb.mxu0 %v4224_v20  ;;  %v4284_v20 = vld [vmem:[%s6592_s3 + $0x1f0] sm:$0xff] }
 0x79e   :  { %v6194_v23 = vpop.eup %4428  ;;  %v2384_v31 = vmul.f32 1.442695, %v2374_v26  ;;  %v4250_v26 = vld [vmem:[%s6592_s3 + $0xe0] sm:$0xff] }
 0x79f   :  { %2398 = vadd.xlane.f32.xlu2 %v6194_v23  ;;  %2806 = vmatpush.bf16.msrb.mxu3 %v4250_v26 }
 0x7a0   :  { %4430 = vpow2.f32 %v2384_v31  ;;  %v4265_v31 = vld [vmem:[%s6592_s3 + $0x158] sm:$0xff] }
 0x7a1   :  { %2626 = vmatpush.bf16.msrb.mxu0 %v4223_v8  ;;  %v4272_v8 = vld [vmem:[%s6592_s3 + $0x190] sm:$0xff] }
 0x7a6   :  { %v6197_v24 = vpop.eup %4430 }
 0x7a7   :  { %2400 = vadd.xlane.f32.xlu0 %v6197_v24 }
 0x7a9   :  { %v2363_v13 = vpop.xlane.xlu2 %2362 }
 0x7aa   :  { %v2375_v25 = vsub.f32 %v2109_v51, %v2363_v13  ;;  %v4231_v51 = vld [vmem:[%s6592_s3 + $0x48] sm:$0xff]  ;;  %v4238_v13 = vld [vmem:[%s6592_s3 + $0x80] sm:$0xff] }
 0x7ab   :  { %v2365_v38 = vpop.xlane.xlu0 %2364  ;;  %2687 = vmatpush.bf16.msrb.mxu1 %v4231_v51  ;;  %2749 = vmatpush.bf16.msrb.mxu2 %v4238_v13  ;;  %v4292_v51 = vld [vmem:[%s6594_s11 + $0x30] sm:$0xff] }
 0x7ac   :  { %v2386_v46 = vmul.f32 1.442695, %v2375_v25  ;;  %v2376_v27 = vsub.f32 %v2170_v1, %v2365_v38  ;;  %v4258_v25 = vld [vmem:[%s6592_s3 + $0x120] sm:$0xff]  ;;  %v4249_v38 = vld [vmem:[%s6592_s3 + $0xd8] sm:$0xff] }
 0x7ad   :  { %2807 = vmatpush.bf16.msrb.mxu3 %v4249_v38 }
 0x7ae   :  { %4432 = vpow2.f32 %v2386_v46  ;;  %v2388_v63 = vmul.f32 1.442695, %v2376_v27  ;;  %v4264_v46 = vld [vmem:[%s6592_s3 + $0x150] sm:$0xff]  ;;  %v4257_v27 = vld [vmem:[%s6592_s3 + $0x118] sm:$0xff] }
 0x7af   :  { %2688 = vmatpush.bf16.msrb.mxu1 %v4230_v39  ;;  %2986 = vmatpush.bf16.msra.mxu2 %v4277_v45 }
 0x7b0   :  { %4434 = vpow2.f32 %v2388_v63  ;;  %v4248_v63 = vld [vmem:[%s6592_s3 + $0xd0] sm:$0xff] }
 0x7b1   :  { %2808 = vmatpush.bf16.msrb.mxu3 %v4248_v63 }
 0x7b3   :  { %v2367_v35 = vpop.xlane.xlu1 %2366  ;;  %2987 = vmatpush.bf16.msra.mxu2 %v4276_v54  ;;  %v4295_v54 = vld [vmem:[%s6595_s12 + $0x8] sm:$0xff] }
 0x7b4   :  { %v6200_v10 = vpop.eup %4432  ;;  %v2377_v40 = vsub.f32 %v2231_v41, %v2367_v35  ;;  %v4269_v41 = vld [vmem:[%s6592_s3 + $0x178] sm:$0xff]  ;;  %v4263_v35 = vld [vmem:[%s6592_s3 + $0x148] sm:$0xff] }
 0x7b5   :  { %2402 = vadd.xlane.f32.xlu1 %v6200_v10  ;;  %2925 = vmatpush.bf16.msra.mxu1 %v4269_v41  ;;  %v4282_v41 = vld [vmem:[%s6592_s3 + $0x1e0] sm:$0xff] }
 0x7b6   :  { %v6209_v11 = vpop.eup %4434  ;;  %v2390_v30 = vmul.f32 1.442695, %v2377_v40  ;;  %v4256_v40 = vld [vmem:[%s6592_s3 + $0x110] sm:$0xff]  ;;  %2809 = vmatpush.bf16.msrb.mxu3 %v4247_v55 }
 0x7b7   :  { %2404 = vadd.xlane.f32.xlu2 %v6209_v11  ;;  %2988 = vmatpush.bf16.msra.mxu2 %v4275_v42 }
 0x7b8   :  { %4436 = vpow2.f32 %v2390_v30  ;;  %v4262_v30 = vld [vmem:[%s6592_s3 + $0x140] sm:$0xff] }
 0x7b9   :  { %2926 = vmatpush.bf16.msra.mxu1 %v4268_v62  ;;  %v4290_v62 = vld [vmem:[%s6594_s11 + $0x20] sm:$0xff] }
 0x7ba   :  { %2810 = vmatpush.bf16.msrb.mxu3 %v4246_v14  ;;  %v4296_v14 = vld [vmem:[%s6595_s12 + $0x10] sm:$0xff] }
 0x7bb   :  { %2989 = vmatpush.bf16.msra.mxu2 %v4274_v53 }
 0x7bd   :  { %2927 = vmatpush.bf16.msra.mxu1 %v4267_v59  ;;  %v4280_v59 = vld [vmem:[%s6592_s3 + $0x1d0] sm:$0xff] }
 0x7be   :  { %v6230_v16 = vpop.eup %4436  ;;  %3047 = vmatpush.bf16.msra.mxu3 %v4285_v18 }
 0x7bf   :  { %2406 = vadd.xlane.f32.xlu0 %v6230_v16 }
 0x7c1   :  { %v2369_v15 = vpop.xlane.xlu2 %2368  ;;  %2928 = vmatpush.bf16.msra.mxu1 %v4266_v0  ;;  %v4288_v0 = vld [vmem:[%s6594_s11 + $0x10] sm:$0xff] }
 0x7c2   :  { %v2378_v4 = vsub.f32 %v6185_v58, %v2369_v15  ;;  %v4222_v58 = vld [vmem:[%s6592_s3] sm:$0xff]  ;;  %3048 = vmatpush.bf16.msra.mxu3 %v4284_v20 }
 0x7c3   :  { %2627 = vmatpush.bf16.msrb.mxu0 %v4222_v58  ;;  %v4281_v58 = vld [vmem:[%s6592_s3 + $0x1d8] sm:$0xff] }
 0x7c4   :  { %v2392_v28 = vmul.f32 1.442695, %v2378_v4 }
 0x7c5   :  { %2929 = vmatpush.bf16.msra.mxu1 %v4265_v31 }
 0x7c6   :  { %4438 = vpow2.f32 %v2392_v28 }
 0x7c9   :  { %v2371_v21 = vpop.xlane.xlu0 %2370  ;;  %2930 = vmatpush.bf16.msra.mxu1 %v4264_v46 }
 0x7ca   :  { %v2379_v57 = vsub.f32 %v6188_v9, %v2371_v21  ;;  %v4261_v9 = vld [vmem:[%s6592_s3 + $0x138] sm:$0xff] }
 0x7cb   :  { %2864 = vmatpush.bf16.msra.mxu0 %v4261_v9  ;;  %v4273_v21 = vld [vmem:[%s6592_s3 + $0x198] sm:$0xff] }
 0x7cc   :  { %v6259_v32 = vpop.eup %4438  ;;  %v2394_v1 = vmul.f32 1.442695, %v2379_v57  ;;  %v4283_v57 = vld [vmem:[%s6592_s3 + $0x1e8] sm:$0xff]  ;;  %2990 = vmatpush.bf16.msra.mxu2 %v4273_v21 }
 0x7cd   :  { %2408 = vadd.xlane.f32.xlu1 %v6259_v32  ;;  %2931 = vmatpush.bf16.msra.mxu1 %v4263_v35 }
 0x7ce   :  { %4440 = vpow2.f32 %v2394_v1  ;;  %3049 = vmatpush.bf16.msra.mxu3 %v4283_v57 }
 0x7cf   :  { %2865 = vmatpush.bf16.msra.mxu0 %v4260_v5  ;;  %v4279_v5 = vld [vmem:[%s6592_s3 + $0x1c8] sm:$0xff] }
 0x7d0   :  { %2991 = vmatpush.bf16.msra.mxu2 %v4272_v8 }
 0x7d1   :  { %2932 = vmatpush.bf16.msra.mxu1 %v4262_v30 }
 0x7d2   :  { %3050 = vmatpush.bf16.msra.mxu3 %v4282_v41 }
 0x7d3   :  { %2866 = vmatpush.bf16.msra.mxu0 %v4259_v50 }
 0x7d4   :  { %v6262_v2 = vpop.eup %4440 }
 0x7d5   :  { %2410 = vadd.xlane.f32.xlu2 %v6262_v2 }
 0x7d6   :  { %3051 = vmatpush.bf16.msra.mxu3 %v4281_v58 }
 0x7d7   :  { %2867 = vmatpush.bf16.msra.mxu0 %v4258_v25  ;;  %v4278_v25 = vld [vmem:[%s6592_s3 + $0x1c0] sm:$0xff] }
 0x7da   :  { %3052 = vmatpush.bf16.msra.mxu3 %v4280_v59 }
 0x7db   :  { %2868 = vmatpush.bf16.msra.mxu0 %v4257_v27 }
 0x7de   :  { %3053 = vmatpush.bf16.msra.mxu3 %v4279_v5 }
 0x7df   :  { %2869 = vmatpush.bf16.msra.mxu0 %v4256_v40 }
 0x7e2   :  { %3054 = vmatpush.bf16.msra.mxu3 %v4278_v25 }
 0x7e3   :  { %2870 = vmatpush.bf16.msra.mxu0 %v4255_v33 }
 0x7e7   :  { %2871 = vmatpush.bf16.msra.mxu0 %v4254_v43  ;;  %v4294_v43 = vld [vmem:[%s6595_s12] sm:$0xff] }
 0x810   :  { %v2397_v34 = vpop.xlane.xlu1 %2396 }
 0x811   :  { %4442 = vrcp.f32 %v2397_v34 }
 0x812   :  { %v2399_v48 = vpop.xlane.xlu2 %2398 }
 0x813   :  { %4444 = vrcp.f32 %v2399_v48  ;;  %v4298_v48 = vld [vmem:[%s6595_s12 + $0x20] sm:$0xff] }
 0x817   :  { %v4443_v17 = vpop.eup %4442 }
 0x818   :  { %v2420_v15 = vmul.f32 %v4443_v17, %v6191_v52  ;;  %v4293_v52 = vld [vmem:[%s6594_s11 + $0x38] sm:$0xff] }
 0x819   :  { %v4445_v4 = vpop.eup %4444 }
 0x81a   :  { %2428 = vst [vmem:[%s6593_s16] sm:$0xff] %v2420_v15  ;;  %v2421_v49 = vmul.f32 %v4445_v4, %v6194_v23  ;;  %v2401_v28 = vpop.xlane.xlu0 %2400  ;;  %v2436_v7 = vpack.c.bf16 %v2420_v15, %v2420_v15 }
 0x81b   :  { %4446 = vrcp.f32 %v2401_v28 }
 0x81c   :  { %2429 = vst [vmem:[%s6593_s16 + $0x8] sm:$0xff] %v2421_v49  ;;  %2628 = vmatmul.bf16.vlgmr.msrb.gmra.mxu0 %v2436_v7  ;;  %v2437_v23 = vpack.c.bf16 %v2421_v49, %v2421_v49 }
 0x81e   :  { %2689 = vmatmul.bf16.vlgmr.msrb.gmra.mxu1 %v2437_v23 }
 0x81f   :  { %3249 = vmatpush.bf16.msrb.mxu1 %v4293_v52 }
 0x821   :  { %v4447_v1 = vpop.eup %4446 }
 0x822   :  { %v2422_v39 = vmul.f32 %v4447_v1, %v6197_v24  ;;  %v4271_v24 = vld [vmem:[%s6592_s3 + $0x188] sm:$0xff] }
 0x823   :  { %3250 = vmatpush.bf16.msrb.mxu1 %v4292_v51  ;;  %2992 = vmatpush.bf16.msra.mxu2 %v4271_v24 }
 0x824   :  { %2430 = vst [vmem:[%s6593_s16 + $0x10] sm:$0xff] %v2422_v39  ;;  %v2438_v44 = vpack.c.bf16 %v2422_v39, %v2422_v39 }
 0x826   :  { %2750 = vmatmul.bf16.vlgmr.msrb.gmra.mxu2 %v2438_v44 }
 0x827   :  { %3251 = vmatpush.bf16.msrb.mxu1 %v4291_v37  ;;  %2993 = vmatpush.bf16.msra.mxu2 %v4270_v29 }
 0x828   :  { %v2403_v6 = vpop.xlane.xlu1 %2402 }
 0x829   :  { %4448 = vrcp.f32 %v2403_v6 }
 0x82a   :  { %v2405_v9 = vpop.xlane.xlu2 %2404 }
 0x82b   :  { %4450 = vrcp.f32 %v2405_v9  ;;  %3252 = vmatpush.bf16.msrb.mxu1 %v4290_v62 }
 0x82f   :  { %v4449_v22 = vpop.eup %4448  ;;  %3253 = vmatpush.bf16.msrb.mxu1 %v4289_v61 }
 0x830   :  { %v2423_v47 = vmul.f32 %v4449_v22, %v6200_v10  ;;  %v4287_v10 = vld [vmem:[%s6594_s11 + $0x8] sm:$0xff] }
 0x831   :  { %v4451_v50 = vpop.eup %4450 }
 0x832   :  { %2431 = vst [vmem:[%s6593_s16 + $0x18] sm:$0xff] %v2423_v47  ;;  %v2424_v26 = vmul.f32 %v4451_v50, %v6209_v11  ;;  %v2407_v31 = vpop.xlane.xlu0 %2406  ;;  %v2439_v13 = vpack.c.bf16 %v2423_v47, %v2423_v47  ;;  %v4286_v11 = vld [vmem:[%s6594_s11] sm:$0xff] }
 0x833   :  { %4452 = vrcp.f32 %v2407_v31  ;;  %3254 = vmatpush.bf16.msrb.mxu1 %v4288_v0  ;;  %v4345_v31 = vld [vmem:[%s6596_s13] ss:$0 sm:$0xff] }
 0x834   :  { %2432 = vst [vmem:[%s6593_s16 + $0x20] sm:$0xff] %v2424_v26  ;;  %2811 = vmatmul.bf16.vlgmr.msrb.gmra.mxu3 %v2439_v13  ;;  %v2440_v38 = vpack.c.bf16 %v2424_v26, %v2424_v26 }
 0x836   :  { %2872 = vmatmul.bf16.vlgmr.msra.gmra.mxu0 %v2440_v38 }
 0x837   :  { %3255 = vmatpush.bf16.msrb.mxu1 %v4287_v10 }
 0x839   :  { %v4453_v46 = vpop.eup %4452 }
 0x83a   :  { %v2425_v27 = vmul.f32 %v4453_v46, %v6230_v16 }
 0x83b   :  { %3256 = vmatpush.bf16.msrb.mxu1 %v4286_v11 }
 0x83c   :  { %2433 = vst [vmem:[%s6593_s16 + $0x28] sm:$0xff] %v2425_v27  ;;  %v2441_v63 = vpack.c.bf16 %v2425_v27, %v2425_v27 }
 0x83e   :  { %2933 = vmatmul.bf16.vlgmr.msra.gmra.mxu1 %v2441_v63 }
 0x840   :  { %v2409_v35 = vpop.xlane.xlu1 %2408 }
 0x841   :  { %4454 = vrcp.f32 %v2409_v35 }
 0x847   :  { %v4455_v40 = vpop.eup %4454 }
 0x848   :  { %v2426_v55 = vmul.f32 %v4455_v40, %v6259_v32  ;;  %v2411_v45 = vpop.xlane.xlu2 %2410  ;;  %v4301_v32 = vld [vmem:[%s6595_s12 + $0x38] sm:$0xff] }
 0x849   :  { %4456 = vrcp.f32 %v2411_v45  ;;  %3172 = vmatpush.bf16.msrb.mxu0 %v4301_v32 }
 0x84a   :  { %2434 = vst [vmem:[%s6593_s16 + $0x30] sm:$0xff] %v2426_v55  ;;  %v2442_v30 = vpack.c.bf16 %v2426_v55, %v2426_v55 }
 0x84c   :  { %2994 = vmatmul.bf16.vlgmr.msra.gmra.mxu2 %v2442_v30 }
 0x84e   :  { %3257 = vmatmul.bf16.vlgmr.msrb.gmra.mxu1 %v5984_v12  ;;  %v4300_v12 = vld [vmem:[%s6595_s12 + $0x30] sm:$0xff] }
 0x84f   :  { %v4457_v16 = vpop.eup %4456  ;;  %3173 = vmatpush.bf16.msrb.mxu0 %v4300_v12 }
 0x850   :  { %v2427_v34 = vmul.f32 %v4457_v16, %v6262_v2  ;;  %v4299_v2 = vld [vmem:[%s6595_s12 + $0x28] sm:$0xff] }
 0x852   :  { %2435 = vst [vmem:[%s6593_s16 + $0x38] sm:$0xff] %v2427_v34  ;;  %v2443_v33 = vpack.c.bf16 %v2427_v34, %v2427_v34 }
 0x853   :  { %3174 = vmatpush.bf16.msrb.mxu0 %v4299_v2 }
 0x854   :  { %3055 = vmatmul.bf16.vlgmr.msra.gmra.mxu3 %v2443_v33 }
 0x857   :  { %3175 = vmatpush.bf16.msrb.mxu0 %v4298_v48 }
 0x85e   :  { %3262 = vmatmul.bf16.gmra.mxu1 %v5978_v19  ;;  %v4297_v19 = vld [vmem:[%s6595_s12 + $0x18] sm:$0xff] }
 0x85f   :  { %3176 = vmatpush.bf16.msrb.mxu0 %v4297_v19 }
 0x863   :  { %3177 = vmatpush.bf16.msrb.mxu0 %v4296_v14 }
 0x867   :  { %3178 = vmatpush.bf16.msrb.mxu0 %v4295_v54 }
 0x86b   :  { %3179 = vmatpush.bf16.msrb.mxu0 %v4294_v43 }
 0x86e   :  { %3267 = vmatmul.bf16.gmra.mxu1 %v5980_v60 }
 0x87e   :  { %3272 = vmatmul.bf16.gmra.mxu1 %v5982_v56 }
 0x899   :  { %v2629_v42 = vpop.f32.mrf.mxu0 }
 0x89a   :  { %v3076_v60 = vpack.c.bf16 %v2629_v42, %v2629_v42 }
 0x89b   :  { %v2690_v18 = vpop.f32.mrf.mxu1 }
 0x89c   :  { %v3077_v17 = vpack.c.bf16 %v2690_v18, %v2690_v18  ;;  %v3108_v15 = vunpack.c.l.b16 %v3076_v60 }
 0x89e   :  { %v3109_v4 = vunpack.c.l.b16 %v3077_v17 }
 0x8a0   :  { %v3116_v49 = vpack.c.b16 %v3109_v4, %v3108_v15 }
 0x8a1   :  { %v2631_v28 = vpop.f32.mrf.mxu0 }
 0x8a2   :  { %3180 = vmatmul.bf16.vlgmr.msrb.gmra.mxu0 %v3116_v49 }
 0x8a3   :  { %v2692_v7 = vpop.f32.mrf.mxu1 }
 0x8a9   :  { %v2751_v53 = vpop.f32.mrf.mxu2 }
 0x8aa   :  { %v3078_v56 = vpack.c.bf16 %v2751_v53, %v2751_v53 }
 0x8ac   :  { %v3110_v57 = vunpack.c.l.b16 %v3078_v56 }
 0x8b1   :  { %v2753_v20 = vpop.f32.mrf.mxu2 }
 0x8b3   :  { %v2873_v52 = vpop.f32.mrf.mxu0 }
 0x8b4   :  { %v3080_v24 = vpack.c.bf16 %v2873_v52, %v2873_v52 }
 0x8b6   :  { %v3112_v62 = vunpack.c.l.b16 %v3080_v24 }
 0x8b7   :  { %v2812_v23 = vpop.f32.mrf.mxu3 }
 0x8b8   :  { %v3079_v21 = vpack.c.bf16 %v2812_v23, %v2812_v23 }
 0x8ba   :  { %v3111_v51 = vunpack.c.l.b16 %v3079_v21 }
 0x8bb   :  { %v2875_v1 = vpop.f32.mrf.mxu0  ;;  %v2934_v39 = vpop.f32.mrf.mxu1 }
 0x8bc   :  { %v3117_v8 = vpack.c.b16 %v3111_v51, %v3110_v57  ;;  %v3081_v44 = vpack.c.bf16 %v2934_v39, %v2934_v39 }
 0x8be   :  { %3185 = vmatmul.bf16.gmra.mxu0 %v3117_v8  ;;  %v3113_v58 = vunpack.c.l.b16 %v3081_v44 }
 0x8bf   :  { %v2814_v41 = vpop.f32.mrf.mxu3 }
 0x8c0   :  { %v3118_v6 = vpack.c.b16 %v3113_v58, %v3112_v62 }
 0x8c3   :  { %v2936_v37 = vpop.f32.mrf.mxu1 }
 0x8cb   :  { %v3258_v26 = vpop.f32.mrf.mxu1 }
 0x8ce   :  { %3190 = vmatmul.bf16.gmra.mxu0 %v3118_v6 }
 0x8cf   :  { %v2995_v9 = vpop.f32.mrf.mxu2 }
 0x8d0   :  { %v3082_v29 = vpack.c.bf16 %v2995_v9, %v2995_v9 }
 0x8d2   :  { %v3114_v22 = vunpack.c.l.b16 %v3082_v29 }
 0x8d3   :  { %v3260_v38 = vpop.f32.mrf.mxu1 }
 0x8d7   :  { %v2997_v59 = vpop.f32.mrf.mxu2  ;;  %v3056_v61 = vpop.f32.mrf.mxu3 }
 0x8d8   :  { %v3083_v5 = vpack.c.bf16 %v3056_v61, %v3056_v61 }
 0x8da   :  { %v3115_v0 = vunpack.c.l.b16 %v3083_v5 }
 0x8db   :  { %v3263_v63 = vpop.f32.mrf.mxu1 }
 0x8dc   :  { %v3119_v47 = vpack.c.b16 %v3115_v0, %v3114_v22 }
 0x8de   :  { %3195 = vmatmul.bf16.gmra.mxu0 %v3119_v47 }
 0x8df   :  { %v3058_v50 = vpop.f32.mrf.mxu3 }
 0x8e3   :  { %v3265_v35 = vpop.f32.mrf.mxu1 }
 0x8eb   :  { %v3268_v34 = vpop.f32.mrf.mxu1 }
 0x8f3   :  { %v3270_v48 = vpop.f32.mrf.mxu1 }
 0x8fb   :  { %v3273_v43 = vpop.f32.mrf.mxu1 }
 0x903   :  { %v3275_v17 = vpop.f32.mrf.mxu1 }
 0x91f   :  { %v3181_v13 = vpop.f32.mrf.mxu0 }
 0x920   :  { %v3259_v25 = vadd.f32 %v3258_v26, %v3181_v13 }
 0x922   :  { %v6496_v10 = vadd.f32 %v4345_v31, %v3259_v25  ;;  %v6734_v25 = vld [vmem:[#allocation6_spill] sm:$0xff] }
 0x924   :  { %3290 = vmax.xlane.f32.xlu0 %v6496_v10 }
 0x927   :  { %v3183_v11 = vpop.f32.mrf.mxu0 }
 0x928   :  { %v3261_v46 = vadd.f32 %v3260_v38, %v3183_v11  ;;  %v1473_v38 = vsub.f32 1.0, %v6734_v25 }
 0x92a   :  { %v6499_v27 = vadd.f32 %v4345_v31, %v3261_v46 }
 0x92c   :  { %3292 = vmax.xlane.f32.xlu1 %v6499_v27 }
 0x93b   :  { %v3186_v40 = vpop.f32.mrf.mxu0 }
 0x93c   :  { %v3264_v55 = vadd.f32 %v3263_v63, %v3186_v40 }
 0x93e   :  { %v6502_v45 = vadd.f32 %v4345_v31, %v3264_v55 }
 0x940   :  { %3294 = vmax.xlane.f32.xlu2 %v6502_v45 }
 0x943   :  { %v3188_v30 = vpop.f32.mrf.mxu0 }
 0x944   :  { %v3266_v16 = vadd.f32 %v3265_v35, %v3188_v30 }
 0x946   :  { %v6505_v33 = vadd.f32 %v4345_v31, %v3266_v16 }
 0x948   :  { %3296 = vmax.xlane.f32.xlu0 %v6505_v33 }
 0x94b   :  { %v3191_v32 = vpop.f32.mrf.mxu0 }
 0x94c   :  { %v3269_v12 = vadd.f32 %v3268_v34, %v3191_v32 }
 0x94e   :  { %v6508_v2 = vadd.f32 %v4345_v31, %v3269_v12 }
 0x950   :  { %3298 = vmax.xlane.f32.xlu1 %v6508_v2 }
 0x953   :  { %v3193_v19 = vpop.f32.mrf.mxu0 }
 0x954   :  { %v3271_v14 = vadd.f32 %v3270_v48, %v3193_v19 }
 0x956   :  { %v6511_v54 = vadd.f32 %v4345_v31, %v3271_v14 }
 0x958   :  { %3300 = vmax.xlane.f32.xlu2 %v6511_v54 }
 0x95b   :  { %v3196_v42 = vpop.f32.mrf.mxu0 }
 0x95c   :  { %v3274_v60 = vadd.f32 %v3273_v43, %v3196_v42 }
 0x95e   :  { %v6514_v18 = vadd.f32 %v4345_v31, %v3274_v60 }
 0x960   :  { %3302 = vmax.xlane.f32.xlu0 %v6514_v18 }
 0x963   :  { %v3198_v15 = vpop.f32.mrf.mxu0 }
 0x964   :  { %v3276_v4 = vadd.f32 %v3275_v17, %v3198_v15 }
 0x966   :  { %v6517_v49 = vadd.f32 %v4345_v31, %v3276_v4 }
 0x968   :  { %3304 = vmax.xlane.f32.xlu1 %v6517_v49 }
 0x997   :  { %v3291_v28 = vpop.xlane.xlu0 %3290 }
 0x998   :  { %v3306_v7 = vsub.f32 %v6496_v10, %v3291_v28 }
 0x99a   :  { %v3314_v53 = vmul.f32 1.442695, %v3306_v7 }
 0x99c   :  { %4458 = vpow2.f32 %v3314_v53 }
 0x99f   :  { %v3293_v20 = vpop.xlane.xlu1 %3292 }
 0x9a0   :  { %v3307_v52 = vsub.f32 %v6499_v27, %v3293_v20 }
 0x9a2   :  { %v4459_v56 = vpop.eup %4458  ;;  %v3316_v23 = vmul.f32 1.442695, %v3307_v52 }
 0x9a3   :  { %3330 = vadd.xlane.f32.xlu2 %v4459_v56 }
 0x9a4   :  { %4460 = vpow2.f32 %v3316_v23 }
 0x9aa   :  { %v4461_v21 = vpop.eup %4460 }
 0x9ab   :  { %3332 = vadd.xlane.f32.xlu0 %v4461_v21 }
 0x9b3   :  { %v3295_v57 = vpop.xlane.xlu2 %3294 }
 0x9b4   :  { %v3308_v51 = vsub.f32 %v6502_v45, %v3295_v57 }
 0x9b6   :  { %v3318_v1 = vmul.f32 1.442695, %v3308_v51 }
 0x9b8   :  { %4462 = vpow2.f32 %v3318_v1 }
 0x9bb   :  { %v3297_v39 = vpop.xlane.xlu0 %3296 }
 0x9bc   :  { %v3309_v8 = vsub.f32 %v6505_v33, %v3297_v39 }
 0x9be   :  { %v4463_v41 = vpop.eup %4462  ;;  %v3320_v37 = vmul.f32 1.442695, %v3309_v8 }
 0x9bf   :  { %3334 = vadd.xlane.f32.xlu1 %v4463_v41 }
 0x9c0   :  { %4464 = vpow2.f32 %v3320_v37 }
 0x9c3   :  { %v6524_v44 = vpop.xlane.xlu1 %3298 }
 0x9c4   :  { %v3310_v24 = vsub.f32 %v6508_v2, %v6524_v44 }
 0x9c6   :  { %v4465_v58 = vpop.eup %4464  ;;  %v3322_v62 = vmul.f32 1.442695, %v3310_v24 }
 0x9c7   :  { %3336 = vadd.xlane.f32.xlu2 %v4465_v58 }
 0x9c8   :  { %4466 = vpow2.f32 %v3322_v62 }
 0x9cb   :  { %v6528_v6 = vpop.xlane.xlu2 %3300 }
 0x9cc   :  { %v3311_v9 = vsub.f32 %v6511_v54, %v6528_v6 }
 0x9ce   :  { %v4467_v29 = vpop.eup %4466  ;;  %v3324_v59 = vmul.f32 1.442695, %v3311_v9 }
 0x9cf   :  { %3338 = vadd.xlane.f32.xlu0 %v4467_v29 }
 0x9d0   :  { %4468 = vpow2.f32 %v3324_v59 }
 0x9d3   :  { %v6532_v61 = vpop.xlane.xlu0 %3302 }
 0x9d4   :  { %v3312_v5 = vsub.f32 %v6514_v18, %v6532_v61 }
 0x9d6   :  { %v4469_v22 = vpop.eup %4468  ;;  %v3326_v0 = vmul.f32 1.442695, %v3312_v5 }
 0x9d7   :  { %3340 = vadd.xlane.f32.xlu1 %v4469_v22 }
 0x9d8   :  { %4470 = vpow2.f32 %v3326_v0 }
 0x9db   :  { %v6536_v47 = vpop.xlane.xlu1 %3304 }
 0x9dc   :  { %v3313_v50 = vsub.f32 %v6517_v49, %v6536_v47 }
 0x9de   :  { %v4471_v26 = vpop.eup %4470  ;;  %v3328_v31 = vmul.f32 1.442695, %v3313_v50 }
 0x9df   :  { %3342 = vadd.xlane.f32.xlu2 %v4471_v26 }
 0x9e0   :  { %4472 = vpow2.f32 %v3328_v31 }
 0x9e6   :  { %v4473_v13 = vpop.eup %4472 }
 0x9e7   :  { %3344 = vadd.xlane.f32.xlu0 %v4473_v13 }
 0x9f0   :  { %1476 = vperm.xlu1 %4342, %v1473_v38  }
 0xa16   :  { %v3331_v11 = vpop.xlane.xlu2 %3330 }
 0xa17   :  { %4474 = vlog2.f32 %v3331_v11 }
 0xa1d   :  { %v4475_v46 = vpop.eup %4474 }
 0xa1e   :  { %v3347_v63 = vmul.f32 0.6931472, %v4475_v46  ;;  %v3333_v35 = vpop.xlane.xlu0 %3332 }
 0xa1f   :  { %4476 = vlog2.f32 %v3333_v35 }
 0xa20   :  { %v3362_v40 = vadd.f32 %v3347_v63, %v3291_v28 }
 0xa22   :  { %v3370_v55 = vsub.f32 %v6496_v10, %v3362_v40 }
 0xa24   :  { %3378 = vst [vmem:[%s6597_s14] sm:$0xff] %v3370_v55 }
 0xa25   :  { %v4477_v30 = vpop.eup %4476 }
 0xa26   :  { %v3349_v16 = vmul.f32 0.6931472, %v4477_v30 }
 0xa28   :  { %v3363_v34 = vadd.f32 %v3349_v16, %v3293_v20 }
 0xa2a   :  { %v3371_v32 = vsub.f32 %v6499_v27, %v3363_v34 }
 0xa2c   :  { %3379 = vst [vmem:[%s6597_s14 + $0x8] sm:$0xff] %v3371_v32 }
 0xa32   :  { %v3335_v12 = vpop.xlane.xlu1 %3334 }
 0xa33   :  { %4478 = vlog2.f32 %v3335_v12 }
 0xa39   :  { %v4479_v48 = vpop.eup %4478 }
 0xa3a   :  { %v3351_v19 = vmul.f32 0.6931472, %v4479_v48  ;;  %v3337_v14 = vpop.xlane.xlu2 %3336 }
 0xa3b   :  { %4480 = vlog2.f32 %v3337_v14 }
 0xa3c   :  { %v3364_v10 = vadd.f32 %v3351_v19, %v3295_v57 }
 0xa3e   :  { %v3372_v43 = vsub.f32 %v6502_v45, %v3364_v10 }
 0xa40   :  { %3380 = vst [vmem:[%s6597_s14 + $0x10] sm:$0xff] %v3372_v43 }
 0xa41   :  { %v4481_v42 = vpop.eup %4480 }
 0xa42   :  { %v3353_v60 = vmul.f32 0.6931472, %v4481_v42  ;;  %v3339_v27 = vpop.xlane.xlu0 %3338 }
 0xa43   :  { %4482 = vlog2.f32 %v3339_v27 }
 0xa44   :  { %v3365_v17 = vadd.f32 %v3353_v60, %v3297_v39 }
 0xa46   :  { %v3373_v15 = vsub.f32 %v6505_v33, %v3365_v17 }
 0xa48   :  { %3381 = vst [vmem:[%s6597_s14 + $0x18] sm:$0xff] %v3373_v15 }
 0xa49   :  { %v4483_v4 = vpop.eup %4482 }
 0xa4a   :  { %v3355_v28 = vmul.f32 0.6931472, %v4483_v4  ;;  %v3341_v7 = vpop.xlane.xlu1 %3340 }
 0xa4b   :  { %4484 = vlog2.f32 %v3341_v7 }
 0xa4c   :  { %v3366_v45 = vadd.f32 %v3355_v28, %v6524_v44 }
 0xa4e   :  { %v3374_v53 = vsub.f32 %v6508_v2, %v3366_v45 }
 0xa50   :  { %3382 = vst [vmem:[%s6597_s14 + $0x20] sm:$0xff] %v3374_v53 }
 0xa51   :  { %v4485_v20 = vpop.eup %4484 }
 0xa52   :  { %v3357_v52 = vmul.f32 0.6931472, %v4485_v20  ;;  %v3343_v56 = vpop.xlane.xlu2 %3342 }
 0xa53   :  { %4486 = vlog2.f32 %v3343_v56 }
 0xa54   :  { %v3367_v33 = vadd.f32 %v3357_v52, %v6528_v6 }
 0xa56   :  { %v3375_v23 = vsub.f32 %v6511_v54, %v3367_v33 }
 0xa58   :  { %3383 = vst [vmem:[%s6597_s14 + $0x28] sm:$0xff] %v3375_v23 }
 0xa59   :  { %v4487_v21 = vpop.eup %4486 }
 0xa5a   :  { %v3359_v57 = vmul.f32 0.6931472, %v4487_v21  ;;  %v3345_v51 = vpop.xlane.xlu0 %3344 }
 0xa5b   :  { %4488 = vlog2.f32 %v3345_v51 }
 0xa5c   :  { %v3368_v2 = vadd.f32 %v3359_v57, %v6532_v61 }
 0xa5e   :  { %v3376_v1 = vsub.f32 %v6514_v18, %v3368_v2 }
 0xa60   :  { %3384 = vst [vmem:[%s6597_s14 + $0x30] sm:$0xff] %v3376_v1 }
 0xa61   :  { %v4489_v39 = vpop.eup %4488 }
 0xa62   :  { %v3361_v8 = vmul.f32 0.6931472, %v4489_v39  ;;  %v1477_v41 = vpop.permute.xlu1 %1476 }
 0xa63   :  { %v1479_v54 = vmul.f32 %v1477_v41, %v5906_v36 }
 0xa64   :  { %v3369_v37 = vadd.f32 %v3361_v8, %v6536_v47 }
 0xa65   :  { %v1480_v44 = vadd.f32 %v1479_v54, %v5952_v3 }
 0xa66   :  { %v3377_v24 = vsub.f32 %v6517_v49, %v3369_v37 }
 0xa67   :  { %1481 = vst [vmem:[%s6598_s15] sm:$0xff] %v1480_v44 }
 0xa68   :  { %3385 = vst [vmem:[%s6597_s14 + $0x38] sm:$0xff] %v3377_v24 }

</bundles_post_ra>
